<compile_context>
chip_gen: v5e
topology: v5e:2x2
jax: 0.10.0
libtpu: 0.0.40
codegen_flags: <defaults>
</compile_context>

<pallas_src>
import numpy as np
import jax
import jax.numpy as jnp
from jax import lax
from jax.experimental import pallas as pl
from jax.experimental.pallas import tpu as pltpu


# ----------------------------------------------------------------------------- kernel

def _caption_decode_kernel(
    embg_ref,    # (Tm1, BC, 4H)  emb @ W_ih[:, :E].T + (b_ih + b_hh), per step
    h0_ref,      # (BC, H)
    op_ref,      # (BC, P, D)     object proposals
    whvs_ref,    # (1, H)         rowsum over V of (emb @ wh_w.T + wh_b).T
    lbase_ref,   # (BC, P)        torch.sum(wr,1) + r_lin + sum_V(w_lin)   (time-invariant)
    rhlin_ref,   # (BC, P, H)     op @ rh_w.T + rh_b
    wr_ref,      # (D, 4H)        W_ih[:, E:].T  (region-feedback recurrent weights)
    wh_ref,      # (H, 4H)        W_hh.T         (hidden recurrent weights)
    h_out_ref,   # (Tm1, BC, H)   hidden state per step (for the post-kernel vocab GEMM)
    att_ref,     # (Tm1, BC, P)   attention per step (unmasked; masked in wrapper)
):
    Tm1 = embg_ref.shape[0]
    BC, H = h0_ref.shape
    D = op_ref.shape[2]

    # hoist loop-invariant loads once; closed over by the (unrolled) loop body
    op = op_ref[...]
    whvs = whvs_ref[...]
    lbase = lbase_ref[...]
    rhlin = rhlin_ref[...]
    w_r = wr_ref[...]
    w_h = wh_ref[...]

    def step(t, carry):
        h, c, rf = carry

        # ------------- LSTMCell: no concat, two MXU pushes on pre-split weights -------------
        gates = (embg_ref[t]
                 + jnp.dot(rf, w_r, preferred_element_type=jnp.float32)
                 + jnp.dot(h, w_h, preferred_element_type=jnp.float32))      # (BC, 4H)
        i_g = jax.nn.sigmoid(gates[:, 0 * H:1 * H])
        f_g = jax.nn.sigmoid(gates[:, 1 * H:2 * H])
        g_g = jnp.tanh(gates[:, 2 * H:3 * H])
        o_g = jax.nn.sigmoid(gates[:, 3 * H:4 * H])
        c_n = f_g * c + i_g * g_g
        h_n = o_g * jnp.tanh(c_n)

        # ------------- RegionAttention: only h-dependent, P-wide terms remain ---------------
        rh = jnp.sum(rhlin * h_n[:, None, :], axis=-1)                       # (BC, P)  XLU
        sum_w = jnp.sum(h_n * whvs, axis=1, keepdims=True)                   # (BC, 1)
        logits = sum_w + lbase + rh                                          # (BC, P)
        att = jax.nn.softmax(logits, axis=-1)                                # (BC, P)
        rf_n = jnp.sum(att[:, :, None] * op, axis=1)                         # (BC, D)

        h_out_ref[t] = h_n
        att_ref[t] = att
        return (h_n, c_n, rf_n)

    # reference: step 0 uses (h0, h0) as the LSTM state and zero region feedback
    h0 = h0_ref[...]
    rf0 = jnp.zeros((BC, D), jnp.float32)
    unroll = True if Tm1 <= 16 else 4
    lax.fori_loop(0, Tm1, step, (h0, h0, rf0), unroll=unroll)


# ----------------------------------------------------------------------------- wrapper

def caption_generator_forward(params, h0, object_proposals, captions, caption_lengths,
                              use_bf16_vocab_gemm=False):
    """Replicates CaptionGenerator.forward.  Returns (predictions, attention,
    captions[:, 1:], decode_lengths, sort_ind)."""
    B, T = captions.shape
    P, D = object_proposals.shape[1], object_proposals.shape[2]
    H = h0.shape[1]
    V, E = params["embedding"].shape
    Tm1 = T - 1                      # static loop extent -> no recompile on varying max_dec

    # host-side glue: sort by caption length (descending), same as torch .sort(descending=True)
    lengths = np.asarray(caption_lengths)[:, 0]
    sort_ind = np.argsort(-lengths, kind="stable")
    decode_lengths = lengths[sort_ind] - 1
    max_dec = int(decode_lengths.max())

    h0_s = jnp.asarray(h0)[sort_ind]
    op_s = jnp.asarray(object_proposals)[sort_ind]
    captions_s = jnp.asarray(captions)[sort_ind]

    # pad batch to full sublane tiles; grow the per-chunk batch (BC) with the batch size so
    # production batches fill the MXU and give >=2 chunks for v7x's two TensorCores.
    SUB = 8
    b8 = ((B + SUB - 1) // SUB) * SUB
    BC = min(128, b8)
    B_pad = ((B + BC - 1) // BC) * BC
    pad = B_pad - B
    h0_p = jnp.pad(h0_s, ((0, pad), (0, 0)))
    op_p = jnp.pad(op_s, ((0, pad), (0, 0), (0, 0)))
    cap_p = jnp.pad(captions_s, ((0, pad), (0, 0)))
    dl_p = jnp.pad(jnp.asarray(decode_lengths, jnp.int32), (0, pad))[:, None]   # (B_pad, 1)

    emb_w = params["embedding"]

    # ---- LSTM weights, pre-split; embedding gate contribution folded in up-front ----
    wih_T = params["lstm_w_ih"].T                                             # (E+D, 4H)
    w_emb = wih_T[:E]                                                         # (E, 4H)
    w_r = wih_T[E:]                                                           # (D, 4H)
    w_h = params["lstm_w_hh"].T                                               # (H, 4H)
    b_fused = (params["lstm_b_ih"] + params["lstm_b_hh"])[None, :]            # (1, 4H)
    emb_seq = emb_w[cap_p[:, :Tm1]]                                           # (B_pad, Tm1, E)
    emb_gates = jnp.transpose(emb_seq @ w_emb + b_fused, (1, 0, 2))           # (Tm1, B_pad, 4H)

    # ---- hoisted, time-invariant RegionAttention terms (one-shot XLA GEMMs) ----
    whV = (emb_w @ params["wh_w"].T + params["wh_b"]).T                       # (H, V)
    w_lin = (emb_w @ params["w_w"].T + params["w_b"])[:, 0]                   # (V,)
    wr_emb = emb_w @ params["wr_w"].T + params["wr_b"]                        # (V, D)
    rh_lin = op_p @ params["rh_w"].T + params["rh_b"]                         # (B_pad, P, H)
    r_lin = op_p @ params["r_w"][0] + params["r_b"][0]                        # (B_pad, P)

    # in-kernel (attention-logit) invariants, folded into two small operands
    whv_rowsum = jnp.sum(whV, axis=1)[None, :]                                # (1, H)
    logits_base = (op_p @ jnp.sum(wr_emb, axis=0)                             # torch.sum(wr, 1)
                   + r_lin
                   + jnp.sum(w_lin))                                          # (B_pad, P)

    # post-kernel (preds) invariants, folded into one (B, V) operand + one (B, H) reducer
    preds_base = (w_lin[None, :]
                  + jnp.sum(op_p, axis=1) @ wr_emb.T                          # torch.sum(wr, 2)
                  + jnp.sum(r_lin, axis=1, keepdims=True))                    # (B_pad, V)
    rhlin_sum_p = jnp.sum(rh_lin, axis=1)                                     # (B_pad, H)

    nbc = B_pad // BC                # batch-chunk grid; shards across v7x TensorCores

    def const_spec(shape):
        n = len(shape)
        return pl.BlockSpec(shape, lambda b: (0,) * n)

    in_specs = [
        pl.BlockSpec((Tm1, BC, 4 * H), lambda b: (0, b, 0)),   # emb_gates
        pl.BlockSpec((BC, H), lambda b: (b, 0)),               # h0
        pl.BlockSpec((BC, P, D), lambda b: (b, 0, 0)),         # object proposals
        const_spec((1, H)),                                    # whv_rowsum
        pl.BlockSpec((BC, P), lambda b: (b, 0)),               # logits_base
        pl.BlockSpec((BC, P, H), lambda b: (b, 0, 0)),         # rh_lin
        const_spec((D, 4 * H)),                                # W_r
        const_spec((H, 4 * H)),                                # W_h
    ]
    out_specs = [
        pl.BlockSpec((Tm1, BC, H), lambda b: (0, b, 0)),
        pl.BlockSpec((Tm1, BC, P), lambda b: (0, b, 0)),
    ]

    h_all, att_tm = pl.pallas_call(
        _caption_decode_kernel,
        out_shape=(
            jax.ShapeDtypeStruct((Tm1, B_pad, H), jnp.float32),
            jax.ShapeDtypeStruct((Tm1, B_pad, P), jnp.float32),
        ),
        grid_spec=pltpu.PrefetchScalarGridSpec(
            num_scalar_prefetch=0,
            grid=(nbc,),
            in_specs=in_specs,
            out_specs=out_specs,
        ),
        compiler_params=pltpu.CompilerParams(
            dimension_semantics=("parallel",),
            vmem_limit_bytes=32 * 1024 * 1024,
        ),
    )(emb_gates, h0_p, op_p, whv_rowsum, logits_base, rh_lin, w_r, w_h)

    # ---- hoisted vocab-wide GEMM: one lane-dense (Tm1*B, H)x(H, V) matmul, emitted ----
    # ---- directly in (B, T, V) order so no transpose of the largest tensor.        ----
    if use_bf16_vocab_gemm:
        preds_v = jnp.einsum('tbh,hv->btv', h_all.astype(jnp.bfloat16),
                             whV.astype(jnp.bfloat16),
                             preferred_element_type=jnp.float32)              # (B_pad, Tm1, V)
    else:
        preds_v = jnp.einsum('tbh,hv->btv', h_all, whV,
                             preferred_element_type=jnp.float32)              # (B_pad, Tm1, V)
    sum_rh = jnp.einsum('tbh,bh->bt', h_all, rhlin_sum_p)                     # torch.sum(rh, 1)
    preds_all = preds_v + preds_base[:, None, :] + sum_rh[:, :, None]

    # batch_size_t semantics: rows with decode_length <= t are zero in both outputs
    step_ids = jnp.arange(Tm1, dtype=jnp.int32)[None, :]
    mask = (dl_p > step_ids).astype(jnp.float32)                              # (B_pad, Tm1)
    predictions = (preds_all * mask[:, :, None])[:B, :max_dec]                # (B, max_dec, V)
    attention = (jnp.transpose(att_tm, (1, 0, 2)) * mask[:, :, None])[:B, :max_dec]
    return predictions, attention, captions_s[:, 1:], decode_lengths, sort_ind


# ----------------------------------------------------------------------------- params & reference

def init_params(key, V, E, H, D, scale=0.3):
    ks = jax.random.split(key, 15)
    w = lambda k, shp: (jax.random.normal(k, shp, jnp.float32) * scale)
    return dict(
        embedding=w(ks[0], (V, E)),
        lstm_w_ih=w(ks[1], (4 * H, E + D)),
        lstm_w_hh=w(ks[2], (4 * H, H)),
        lstm_b_ih=w(ks[3], (4 * H,)),
        lstm_b_hh=w(ks[4], (4 * H,)),
        wh_w=w(ks[5], (H, E)), wh_b=w(ks[6], (H,)),
        wr_w=w(ks[7], (D, E)), wr_b=w(ks[8], (D,)),
        rh_w=w(ks[9], (H, D)), rh_b=w(ks[10], (H,)),
        w_w=w(ks[11], (1, E)), w_b=w(ks[12], (1,)),
        r_w=w(ks[13], (1, D)), r_b=w(ks[14], (1,)),
    )


def reference_forward(params, h0, object_proposals, captions, caption_lengths):
    """Literal numpy re-implementation of the PyTorch forward (with per-step slicing)."""
    p = {k: np.asarray(v, np.float64) for k, v in params.items()}
    h0 = np.asarray(h0, np.float64)
    op_all = np.asarray(object_proposals, np.float64)
    captions = np.asarray(captions)
    lengths = np.asarray(caption_lengths)[:, 0]
    sort_ind = np.argsort(-lengths, kind="stable")
    dec = lengths[sort_ind] - 1
    max_dec = int(dec.max())
    h0, op_all, captions = h0[sort_ind], op_all[sort_ind], captions[sort_ind]

    B, H = h0.shape
    P, D = op_all.shape[1], op_all.shape[2]
    emb_w = p["embedding"]
    V, E = emb_w.shape
    embeddings = emb_w[captions]

    sigmoid = lambda x: 1.0 / (1.0 + np.exp(-x))

    def softmax(x, axis):
        x = x - x.max(axis=axis, keepdims=True)
        e = np.exp(x)
        return e / e.sum(axis=axis, keepdims=True)

    predictions = np.zeros((B, max_dec, V))
    attention = np.zeros((B, max_dec, P))
    h = c = rf = None
    for t in range(max_dec):
        bt = int(np.sum(dec > t))
        if t == 0:
            x = np.concatenate([embeddings[:bt, 0, :], np.zeros((bt, D))], axis=1)
            hp, cp = h0[:bt], h0[:bt]
        else:
            x = np.concatenate([embeddings[:bt, t, :], rf[:bt]], axis=1)
            hp, cp = h[:bt], c[:bt]
        gates = x @ p["lstm_w_ih"].T + p["lstm_b_ih"] + hp @ p["lstm_w_hh"].T + p["lstm_b_hh"]
        i = sigmoid(gates[:, :H]); f = sigmoid(gates[:, H:2 * H])
        g = np.tanh(gates[:, 2 * H:3 * H]); o = sigmoid(gates[:, 3 * H:])
        c = f * cp + i * g
        h = o * np.tanh(c)

        ob = op_all[:bt]
        we = np.broadcast_to(emb_w, (bt, V, E))
        wh = np.einsum('bvh,bh->bv', we @ p["wh_w"].T + p["wh_b"], h)
        wr = np.einsum('bvd,bpd->bvp', we @ p["wr_w"].T + p["wr_b"], ob)
        rh = np.einsum('bph,bh->bp', ob @ p["rh_w"].T + p["rh_b"], h)
        wlin = (we @ p["w_w"].T + p["w_b"])[..., 0]
        rlin = (ob @ p["r_w"].T + p["r_b"])[..., 0]
        w_ = wh + wlin
        r_ = rh + rlin
        preds = w_ + wr.sum(2) + r_.sum(1, keepdims=True)
        predictions[:bt, t, :] = preds
        logits = w_.sum(1, keepdims=True) + wr.sum(1) + r_
        ra = softmax(logits, axis=1)
        attention[:bt, t, :] = ra
        rf = np.einsum('bp,bpd->bd', ra, ob)
    return predictions, attention, captions[:, 1:], dec, sort_ind


# ----------------------------------------------------------------------------- main

if __name__ == "__main__":
    # small shapes implied by the forward:
    #   batch=4, caption seq=8, vocab=32, embedding=16, descriptor=16, hidden=32, proposals=8
    B, T, V, E, D, H, P = 4, 8, 32, 16, 16, 32, 8

    key = jax.random.PRNGKey(0)
    k_param, k_h0, k_op, k_cap = jax.random.split(key, 4)
    params = init_params(k_param, V=V, E=E, H=H, D=D)
    h0 = jax.random.normal(k_h0, (B, H), jnp.float32)
    object_proposals = jax.random.normal(k_op, (B, P, D), jnp.float32)
    captions = jax.random.randint(k_cap, (B, T), 0, V, dtype=jnp.int32)
    caption_lengths = jnp.array([[5], [8], [3], [6]], dtype=jnp.int32)

    preds, att, caps_out, dec_lens, sort_ind = caption_generator_forward(
        params, h0, object_proposals, captions, caption_lengths)
    jax.block_until_ready((preds, att))

    # correctness check against a literal numpy re-implementation of the torch forward
    ref_preds, ref_att, _, _, _ = reference_forward(
        params, h0, object_proposals, captions, caption_lengths)
    perr = np.max(np.abs(np.asarray(preds) - ref_preds))
    aerr = np.max(np.abs(np.asarray(att) - ref_att))
    assert np.allclose(np.asarray(preds), ref_preds, rtol=2e-2, atol=2e-2), f"preds max err {perr}"
    assert np.allclose(np.asarray(att), ref_att, rtol=2e-2, atol=2e-2), f"attention max err {aerr}"

    # TODO(synk): predict()/beam() greedy & beam-search methods (host-side control flow) not kernelized.
    print("KERNEL_OK")
</pallas_src>

<mosaic_0001>
module attributes {stable_mosaic.version = 11 : i64} {
  func.func @_caption_decode_kernel(%arg0: i32, %arg1: memref<7x8x128xf32, #tpu.memory_space<vmem>>, %arg2: memref<8x32xf32, #tpu.memory_space<vmem>>, %arg3: memref<8x8x16xf32, #tpu.memory_space<vmem>>, %arg4: memref<1x32xf32, #tpu.memory_space<vmem>>, %arg5: memref<8x8xf32, #tpu.memory_space<vmem>>, %arg6: memref<8x8x32xf32, #tpu.memory_space<vmem>>, %arg7: memref<16x128xf32, #tpu.memory_space<vmem>>, %arg8: memref<32x128xf32, #tpu.memory_space<vmem>>, %arg9: memref<7x8x32xf32, #tpu.memory_space<vmem>>, %arg10: memref<7x8x8xf32, #tpu.memory_space<vmem>>) attributes {dimension_semantics = [#tpu.dimension_semantics<parallel>], iteration_bounds = array<i64: 1>, scalar_prefetch = 0 : i64, scratch_operands = 0 : i64, tpu.core_type = #tpu.core_type<tc>, window_params = [{transform_indices = @transform_0, window_bounds = array<i64: 7, 8, 128>}, {transform_indices = @transform_1, window_bounds = array<i64: 8, 32>}, {transform_indices = @transform_2, window_bounds = array<i64: 8, 8, 16>}, {pipeline_mode = #tpu.pipeline_mode<synchronous>, transform_indices = @transform_3, window_bounds = array<i64: 1, 32>}, {transform_indices = @transform_4, window_bounds = array<i64: 8, 8>}, {transform_indices = @transform_5, window_bounds = array<i64: 8, 8, 32>}, {pipeline_mode = #tpu.pipeline_mode<synchronous>, transform_indices = @transform_6, window_bounds = array<i64: 16, 128>}, {pipeline_mode = #tpu.pipeline_mode<synchronous>, transform_indices = @transform_7, window_bounds = array<i64: 32, 128>}, {transform_indices = @transform_8, window_bounds = array<i64: 7, 8, 32>}, {transform_indices = @transform_9, window_bounds = array<i64: 7, 8, 8>}]} {
    %c0 = arith.constant 0 : index
    %c0_0 = arith.constant 0 : index
    %c0_1 = arith.constant 0 : index
    %0 = vector.load %arg3[%c0, %c0_0, %c0_1] : memref<8x8x16xf32, #tpu.memory_space<vmem>>, vector<8x8x16xf32>
    %c0_2 = arith.constant 0 : index
    %c0_3 = arith.constant 0 : index
    %1 = vector.load %arg4[%c0_2, %c0_3] : memref<1x32xf32, #tpu.memory_space<vmem>>, vector<1x32xf32>
    %c0_4 = arith.constant 0 : index
    %c0_5 = arith.constant 0 : index
    %2 = vector.load %arg5[%c0_4, %c0_5] : memref<8x8xf32, #tpu.memory_space<vmem>>, vector<8x8xf32>
    %c0_6 = arith.constant 0 : index
    %c0_7 = arith.constant 0 : index
    %c0_8 = arith.constant 0 : index
    %3 = vector.load %arg6[%c0_6, %c0_7, %c0_8] : memref<8x8x32xf32, #tpu.memory_space<vmem>>, vector<8x8x32xf32>
    %c0_9 = arith.constant 0 : index
    %c0_10 = arith.constant 0 : index
    %4 = vector.load %arg7[%c0_9, %c0_10] : memref<16x128xf32, #tpu.memory_space<vmem>>, vector<16x128xf32>
    %c0_11 = arith.constant 0 : index
    %c0_12 = arith.constant 0 : index
    %5 = vector.load %arg8[%c0_11, %c0_12] : memref<32x128xf32, #tpu.memory_space<vmem>>, vector<32x128xf32>
    %c0_13 = arith.constant 0 : index
    %c0_14 = arith.constant 0 : index
    %6 = vector.load %arg2[%c0_13, %c0_14] : memref<8x32xf32, #tpu.memory_space<vmem>>, vector<8x32xf32>
    %cst = arith.constant 0.000000e+00 : f32
    %7 = vector.broadcast %cst : f32 to vector<8x16xf32>
    %c0_i32 = arith.constant 0 : i32
    %8 = arith.index_cast %c0_i32 : i32 to index
    %c0_15 = arith.constant 0 : index
    %c0_16 = arith.constant 0 : index
    %9 = vector.load %arg1[%8, %c0_15, %c0_16] : memref<7x8x128xf32, #tpu.memory_space<vmem>>, vector<1x8x128xf32>
    %10 = vector.shape_cast %9 : vector<1x8x128xf32> to vector<8x128xf32>
    %cst_17 = arith.constant dense<0.000000e+00> : vector<8x128xf32>
    %11 = tpu.matmul %7, %4, %cst_17 {dimension_numbers = #tpu.dot_dimension_numbers<[1], [0], [0], [1], [0, 0, 1, 1], [], []>} : vector<8x16xf32>, vector<16x128xf32>, vector<8x128xf32> -> vector<8x128xf32>
    %12 = arith.addf %10, %11 : vector<8x128xf32>
    %cst_18 = arith.constant dense<0.000000e+00> : vector<8x128xf32>
    %13 = tpu.matmul %6, %5, %cst_18 {dimension_numbers = #tpu.dot_dimension_numbers<[1], [0], [0], [1], [0, 0, 1, 1], [], []>} : vector<8x32xf32>, vector<32x128xf32>, vector<8x128xf32> -> vector<8x128xf32>
    %14 = arith.addf %12, %13 : vector<8x128xf32>
    %15 = vector.extract_strided_slice %14 {offsets = [0, 0], sizes = [8, 32], strides = [1, 1]} : vector<8x128xf32> to vector<8x32xf32>
    %16 = arith.negf %15 : vector<8x32xf32>
    %17 = math.exp %16 : vector<8x32xf32>
    %cst_19 = arith.constant 1.000000e+00 : f32
    %18 = vector.broadcast %cst_19 : f32 to vector<8x32xf32>
    %19 = arith.addf %18, %17 : vector<8x32xf32>
    %20 = arith.divf %18, %19 : vector<8x32xf32>
    %21 = vector.extract_strided_slice %14 {offsets = [0, 32], sizes = [8, 32], strides = [1, 1]} : vector<8x128xf32> to vector<8x32xf32>
    %22 = arith.negf %21 : vector<8x32xf32>
    %23 = math.exp %22 : vector<8x32xf32>
    %cst_20 = arith.constant 1.000000e+00 : f32
    %24 = vector.broadcast %cst_20 : f32 to vector<8x32xf32>
    %25 = arith.addf %24, %23 : vector<8x32xf32>
    %26 = arith.divf %24, %25 : vector<8x32xf32>
    %27 = vector.extract_strided_slice %14 {offsets = [0, 64], sizes = [8, 32], strides = [1, 1]} : vector<8x128xf32> to vector<8x32xf32>
    %28 = math.tanh %27 : vector<8x32xf32>
    %29 = vector.extract_strided_slice %14 {offsets = [0, 96], sizes = [8, 32], strides = [1, 1]} : vector<8x128xf32> to vector<8x32xf32>
    %30 = arith.negf %29 : vector<8x32xf32>
    %31 = math.exp %30 : vector<8x32xf32>
    %cst_21 = arith.constant 1.000000e+00 : f32
    %32 = vector.broadcast %cst_21 : f32 to vector<8x32xf32>
    %33 = arith.addf %32, %31 : vector<8x32xf32>
    %34 = arith.divf %32, %33 : vector<8x32xf32>
    %35 = arith.mulf %26, %6 : vector<8x32xf32>
    %36 = arith.mulf %20, %28 : vector<8x32xf32>
    %37 = arith.addf %35, %36 : vector<8x32xf32>
    %38 = math.tanh %37 : vector<8x32xf32>
    %39 = arith.mulf %34, %38 : vector<8x32xf32>
    %40 = vector.shape_cast %39 : vector<8x32xf32> to vector<8x1x32xf32>
    %41 = vector.broadcast %40 : vector<8x1x32xf32> to vector<8x8x32xf32>
    %42 = arith.mulf %3, %41 : vector<8x8x32xf32>
    %cst_22 = arith.constant dense<0.000000e+00> : vector<8x8xf32>
    %43 = vector.multi_reduction <add>, %42, %cst_22 [2] : vector<8x8x32xf32> to vector<8x8xf32>
    %44 = vector.broadcast %1 : vector<1x32xf32> to vector<8x32xf32>
    %45 = arith.mulf %39, %44 : vector<8x32xf32>
    %cst_23 = arith.constant dense<0.000000e+00> : vector<8xf32>
    %46 = vector.multi_reduction <add>, %45, %cst_23 [1] : vector<8x32xf32> to vector<8xf32>
    %47 = vector.shape_cast %46 : vector<8xf32> to vector<8x1xf32>
    %48 = vector.broadcast %47 : vector<8x1xf32> to vector<8x8xf32>
    %49 = arith.addf %48, %2 : vector<8x8xf32>
    %50 = arith.addf %49, %43 : vector<8x8xf32>
    %cst_24 = arith.constant dense<0xFF800000> : vector<8xf32>
    %51 = vector.multi_reduction <maximumf>, %50, %cst_24 [1] : vector<8x8xf32> to vector<8xf32>
    %cst_25 = arith.constant 0xFF800000 : f32
    %52 = vector.broadcast %cst_25 : f32 to vector<8xf32>
    %53 = arith.maximumf %52, %51 : vector<8xf32>
    %54 = vector.shape_cast %53 : vector<8xf32> to vector<8x1xf32>
    %55 = vector.broadcast %54 : vector<8x1xf32> to vector<8x8xf32>
    %56 = arith.subf %50, %55 : vector<8x8xf32>
    %57 = math.exp %56 : vector<8x8xf32>
    %cst_26 = arith.constant dense<0.000000e+00> : vector<8xf32>
    %58 = vector.multi_reduction <add>, %57, %cst_26 [1] : vector<8x8xf32> to vector<8xf32>
    %59 = vector.shape_cast %58 : vector<8xf32> to vector<8x1xf32>
    %60 = vector.broadcast %59 : vector<8x1xf32> to vector<8x8xf32>
    %61 = arith.divf %57, %60 : vector<8x8xf32>
    %62 = vector.shape_cast %61 : vector<8x8xf32> to vector<8x8x1xf32>
    %63 = vector.broadcast %62 : vector<8x8x1xf32> to vector<8x8x16xf32>
    %64 = arith.mulf %63, %0 : vector<8x8x16xf32>
    %cst_27 = arith.constant dense<0.000000e+00> : vector<8x16xf32>
    %65 = vector.multi_reduction <add>, %64, %cst_27 [1] : vector<8x8x16xf32> to vector<8x16xf32>
    %66 = arith.index_cast %c0_i32 : i32 to index
    %c0_28 = arith.constant 0 : index
    %c0_29 = arith.constant 0 : index
    %67 = vector.load %arg9[%66, %c0_28, %c0_29] : memref<7x8x32xf32, #tpu.memory_space<vmem>>, vector<1x8x32xf32>
    %68 = vector.shape_cast %67 : vector<1x8x32xf32> to vector<8x32xf32>
    %69 = vector.shape_cast %39 : vector<8x32xf32> to vector<1x8x32xf32>
    tpu.vector_store %arg9[%66, %c0_28, %c0_29], %69 {strides = array<i32>} : memref<7x8x32xf32, #tpu.memory_space<vmem>>, vector<1x8x32xf32>,
    %70 = arith.index_cast %c0_i32 : i32 to index
    %c0_30 = arith.constant 0 : index
    %c0_31 = arith.constant 0 : index
    %71 = vector.load %arg10[%70, %c0_30, %c0_31] : memref<7x8x8xf32, #tpu.memory_space<vmem>>, vector<1x8x8xf32>
    %72 = vector.shape_cast %71 : vector<1x8x8xf32> to vector<8x8xf32>
    %73 = vector.shape_cast %61 : vector<8x8xf32> to vector<1x8x8xf32>
    tpu.vector_store %arg10[%70, %c0_30, %c0_31], %73 {strides = array<i32>} : memref<7x8x8xf32, #tpu.memory_space<vmem>>, vector<1x8x8xf32>,
    %c1_i32 = arith.constant 1 : i32
    %74 = arith.index_cast %c1_i32 : i32 to index
    %c0_32 = arith.constant 0 : index
    %c0_33 = arith.constant 0 : index
    %75 = vector.load %arg1[%74, %c0_32, %c0_33] : memref<7x8x128xf32, #tpu.memory_space<vmem>>, vector<1x8x128xf32>
    %76 = vector.shape_cast %75 : vector<1x8x128xf32> to vector<8x128xf32>
    %cst_34 = arith.constant dense<0.000000e+00> : vector<8x128xf32>
    %77 = tpu.matmul %65, %4, %cst_34 {dimension_numbers = #tpu.dot_dimension_numbers<[1], [0], [0], [1], [0, 0, 1, 1], [], []>} : vector<8x16xf32>, vector<16x128xf32>, vector<8x128xf32> -> vector<8x128xf32>
    %78 = arith.addf %76, %77 : vector<8x128xf32>
    %cst_35 = arith.constant dense<0.000000e+00> : vector<8x128xf32>
    %79 = tpu.matmul %39, %5, %cst_35 {dimension_numbers = #tpu.dot_dimension_numbers<[1], [0], [0], [1], [0, 0, 1, 1], [], []>} : vector<8x32xf32>, vector<32x128xf32>, vector<8x128xf32> -> vector<8x128xf32>
    %80 = arith.addf %78, %79 : vector<8x128xf32>
    %81 = vector.extract_strided_slice %80 {offsets = [0, 0], sizes = [8, 32], strides = [1, 1]} : vector<8x128xf32> to vector<8x32xf32>
    %82 = arith.negf %81 : vector<8x32xf32>
    %83 = math.exp %82 : vector<8x32xf32>
    %cst_36 = arith.constant 1.000000e+00 : f32
    %84 = vector.broadcast %cst_36 : f32 to vector<8x32xf32>
    %85 = arith.addf %84, %83 : vector<8x32xf32>
    %86 = arith.divf %84, %85 : vector<8x32xf32>
    %87 = vector.extract_strided_slice %80 {offsets = [0, 32], sizes = [8, 32], strides = [1, 1]} : vector<8x128xf32> to vector<8x32xf32>
    %88 = arith.negf %87 : vector<8x32xf32>
    %89 = math.exp %88 : vector<8x32xf32>
    %cst_37 = arith.constant 1.000000e+00 : f32
    %90 = vector.broadcast %cst_37 : f32 to vector<8x32xf32>
    %91 = arith.addf %90, %89 : vector<8x32xf32>
    %92 = arith.divf %90, %91 : vector<8x32xf32>
    %93 = vector.extract_strided_slice %80 {offsets = [0, 64], sizes = [8, 32], strides = [1, 1]} : vector<8x128xf32> to vector<8x32xf32>
    %94 = math.tanh %93 : vector<8x32xf32>
    %95 = vector.extract_strided_slice %80 {offsets = [0, 96], sizes = [8, 32], strides = [1, 1]} : vector<8x128xf32> to vector<8x32xf32>
    %96 = arith.negf %95 : vector<8x32xf32>
    %97 = math.exp %96 : vector<8x32xf32>
    %cst_38 = arith.constant 1.000000e+00 : f32
    %98 = vector.broadcast %cst_38 : f32 to vector<8x32xf32>
    %99 = arith.addf %98, %97 : vector<8x32xf32>
    %100 = arith.divf %98, %99 : vector<8x32xf32>
    %101 = arith.mulf %92, %37 : vector<8x32xf32>
    %102 = arith.mulf %86, %94 : vector<8x32xf32>
    %103 = arith.addf %101, %102 : vector<8x32xf32>
    %104 = math.tanh %103 : vector<8x32xf32>
    %105 = arith.mulf %100, %104 : vector<8x32xf32>
    %106 = vector.shape_cast %105 : vector<8x32xf32> to vector<8x1x32xf32>
    %107 = vector.broadcast %106 : vector<8x1x32xf32> to vector<8x8x32xf32>
    %108 = arith.mulf %3, %107 : vector<8x8x32xf32>
    %cst_39 = arith.constant dense<0.000000e+00> : vector<8x8xf32>
    %109 = vector.multi_reduction <add>, %108, %cst_39 [2] : vector<8x8x32xf32> to vector<8x8xf32>
    %110 = vector.broadcast %1 : vector<1x32xf32> to vector<8x32xf32>
    %111 = arith.mulf %105, %110 : vector<8x32xf32>
    %cst_40 = arith.constant dense<0.000000e+00> : vector<8xf32>
    %112 = vector.multi_reduction <add>, %111, %cst_40 [1] : vector<8x32xf32> to vector<8xf32>
    %113 = vector.shape_cast %112 : vector<8xf32> to vector<8x1xf32>
    %114 = vector.broadcast %113 : vector<8x1xf32> to vector<8x8xf32>
    %115 = arith.addf %114, %2 : vector<8x8xf32>
    %116 = arith.addf %115, %109 : vector<8x8xf32>
    %cst_41 = arith.constant dense<0xFF800000> : vector<8xf32>
    %117 = vector.multi_reduction <maximumf>, %116, %cst_41 [1] : vector<8x8xf32> to vector<8xf32>
    %cst_42 = arith.constant 0xFF800000 : f32
    %118 = vector.broadcast %cst_42 : f32 to vector<8xf32>
    %119 = arith.maximumf %118, %117 : vector<8xf32>
    %120 = vector.shape_cast %119 : vector<8xf32> to vector<8x1xf32>
    %121 = vector.broadcast %120 : vector<8x1xf32> to vector<8x8xf32>
    %122 = arith.subf %116, %121 : vector<8x8xf32>
    %123 = math.exp %122 : vector<8x8xf32>
    %cst_43 = arith.constant dense<0.000000e+00> : vector<8xf32>
    %124 = vector.multi_reduction <add>, %123, %cst_43 [1] : vector<8x8xf32> to vector<8xf32>
    %125 = vector.shape_cast %124 : vector<8xf32> to vector<8x1xf32>
    %126 = vector.broadcast %125 : vector<8x1xf32> to vector<8x8xf32>
    %127 = arith.divf %123, %126 : vector<8x8xf32>
    %128 = vector.shape_cast %127 : vector<8x8xf32> to vector<8x8x1xf32>
    %129 = vector.broadcast %128 : vector<8x8x1xf32> to vector<8x8x16xf32>
    %130 = arith.mulf %129, %0 : vector<8x8x16xf32>
    %cst_44 = arith.constant dense<0.000000e+00> : vector<8x16xf32>
    %131 = vector.multi_reduction <add>, %130, %cst_44 [1] : vector<8x8x16xf32> to vector<8x16xf32>
    %132 = arith.index_cast %c1_i32 : i32 to index
    %c0_45 = arith.constant 0 : index
    %c0_46 = arith.constant 0 : index
    %133 = vector.load %arg9[%132, %c0_45, %c0_46] : memref<7x8x32xf32, #tpu.memory_space<vmem>>, vector<1x8x32xf32>
    %134 = vector.shape_cast %133 : vector<1x8x32xf32> to vector<8x32xf32>
    %135 = vector.shape_cast %105 : vector<8x32xf32> to vector<1x8x32xf32>
    tpu.vector_store %arg9[%132, %c0_45, %c0_46], %135 {strides = array<i32>} : memref<7x8x32xf32, #tpu.memory_space<vmem>>, vector<1x8x32xf32>,
    %136 = arith.index_cast %c1_i32 : i32 to index
    %c0_47 = arith.constant 0 : index
    %c0_48 = arith.constant 0 : index
    %137 = vector.load %arg10[%136, %c0_47, %c0_48] : memref<7x8x8xf32, #tpu.memory_space<vmem>>, vector<1x8x8xf32>
    %138 = vector.shape_cast %137 : vector<1x8x8xf32> to vector<8x8xf32>
    %139 = vector.shape_cast %127 : vector<8x8xf32> to vector<1x8x8xf32>
    tpu.vector_store %arg10[%136, %c0_47, %c0_48], %139 {strides = array<i32>} : memref<7x8x8xf32, #tpu.memory_space<vmem>>, vector<1x8x8xf32>,
    %c2_i32 = arith.constant 2 : i32
    %140 = arith.index_cast %c2_i32 : i32 to index
    %c0_49 = arith.constant 0 : index
    %c0_50 = arith.constant 0 : index
    %141 = vector.load %arg1[%140, %c0_49, %c0_50] : memref<7x8x128xf32, #tpu.memory_space<vmem>>, vector<1x8x128xf32>
    %142 = vector.shape_cast %141 : vector<1x8x128xf32> to vector<8x128xf32>
    %cst_51 = arith.constant dense<0.000000e+00> : vector<8x128xf32>
    %143 = tpu.matmul %131, %4, %cst_51 {dimension_numbers = #tpu.dot_dimension_numbers<[1], [0], [0], [1], [0, 0, 1, 1], [], []>} : vector<8x16xf32>, vector<16x128xf32>, vector<8x128xf32> -> vector<8x128xf32>
    %144 = arith.addf %142, %143 : vector<8x128xf32>
    %cst_52 = arith.constant dense<0.000000e+00> : vector<8x128xf32>
    %145 = tpu.matmul %105, %5, %cst_52 {dimension_numbers = #tpu.dot_dimension_numbers<[1], [0], [0], [1], [0, 0, 1, 1], [], []>} : vector<8x32xf32>, vector<32x128xf32>, vector<8x128xf32> -> vector<8x128xf32>
    %146 = arith.addf %144, %145 : vector<8x128xf32>
    %147 = vector.extract_strided_slice %146 {offsets = [0, 0], sizes = [8, 32], strides = [1, 1]} : vector<8x128xf32> to vector<8x32xf32>
    %148 = arith.negf %147 : vector<8x32xf32>
    %149 = math.exp %148 : vector<8x32xf32>
    %cst_53 = arith.constant 1.000000e+00 : f32
    %150 = vector.broadcast %cst_53 : f32 to vector<8x32xf32>
    %151 = arith.addf %150, %149 : vector<8x32xf32>
    %152 = arith.divf %150, %151 : vector<8x32xf32>
    %153 = vector.extract_strided_slice %146 {offsets = [0, 32], sizes = [8, 32], strides = [1, 1]} : vector<8x128xf32> to vector<8x32xf32>
    %154 = arith.negf %153 : vector<8x32xf32>
    %155 = math.exp %154 : vector<8x32xf32>
    %cst_54 = arith.constant 1.000000e+00 : f32
    %156 = vector.broadcast %cst_54 : f32 to vector<8x32xf32>
    %157 = arith.addf %156, %155 : vector<8x32xf32>
    %158 = arith.divf %156, %157 : vector<8x32xf32>
    %159 = vector.extract_strided_slice %146 {offsets = [0, 64], sizes = [8, 32], strides = [1, 1]} : vector<8x128xf32> to vector<8x32xf32>
    %160 = math.tanh %159 : vector<8x32xf32>
    %161 = vector.extract_strided_slice %146 {offsets = [0, 96], sizes = [8, 32], strides = [1, 1]} : vector<8x128xf32> to vector<8x32xf32>
    %162 = arith.negf %161 : vector<8x32xf32>
    %163 = math.exp %162 : vector<8x32xf32>
    %cst_55 = arith.constant 1.000000e+00 : f32
    %164 = vector.broadcast %cst_55 : f32 to vector<8x32xf32>
    %165 = arith.addf %164, %163 : vector<8x32xf32>
    %166 = arith.divf %164, %165 : vector<8x32xf32>
    %167 = arith.mulf %158, %103 : vector<8x32xf32>
    %168 = arith.mulf %152, %160 : vector<8x32xf32>
    %169 = arith.addf %167, %168 : vector<8x32xf32>
    %170 = math.tanh %169 : vector<8x32xf32>
    %171 = arith.mulf %166, %170 : vector<8x32xf32>
    %172 = vector.shape_cast %171 : vector<8x32xf32> to vector<8x1x32xf32>
    %173 = vector.broadcast %172 : vector<8x1x32xf32> to vector<8x8x32xf32>
    %174 = arith.mulf %3, %173 : vector<8x8x32xf32>
    %cst_56 = arith.constant dense<0.000000e+00> : vector<8x8xf32>
    %175 = vector.multi_reduction <add>, %174, %cst_56 [2] : vector<8x8x32xf32> to vector<8x8xf32>
    %176 = vector.broadcast %1 : vector<1x32xf32> to vector<8x32xf32>
    %177 = arith.mulf %171, %176 : vector<8x32xf32>
    %cst_57 = arith.constant dense<0.000000e+00> : vector<8xf32>
    %178 = vector.multi_reduction <add>, %177, %cst_57 [1] : vector<8x32xf32> to vector<8xf32>
    %179 = vector.shape_cast %178 : vector<8xf32> to vector<8x1xf32>
    %180 = vector.broadcast %179 : vector<8x1xf32> to vector<8x8xf32>
    %181 = arith.addf %180, %2 : vector<8x8xf32>
    %182 = arith.addf %181, %175 : vector<8x8xf32>
    %cst_58 = arith.constant dense<0xFF800000> : vector<8xf32>
    %183 = vector.multi_reduction <maximumf>, %182, %cst_58 [1] : vector<8x8xf32> to vector<8xf32>
    %cst_59 = arith.constant 0xFF800000 : f32
    %184 = vector.broadcast %cst_59 : f32 to vector<8xf32>
    %185 = arith.maximumf %184, %183 : vector<8xf32>
    %186 = vector.shape_cast %185 : vector<8xf32> to vector<8x1xf32>
    %187 = vector.broadcast %186 : vector<8x1xf32> to vector<8x8xf32>
    %188 = arith.subf %182, %187 : vector<8x8xf32>
    %189 = math.exp %188 : vector<8x8xf32>
    %cst_60 = arith.constant dense<0.000000e+00> : vector<8xf32>
    %190 = vector.multi_reduction <add>, %189, %cst_60 [1] : vector<8x8xf32> to vector<8xf32>
    %191 = vector.shape_cast %190 : vector<8xf32> to vector<8x1xf32>
    %192 = vector.broadcast %191 : vector<8x1xf32> to vector<8x8xf32>
    %193 = arith.divf %189, %192 : vector<8x8xf32>
    %194 = vector.shape_cast %193 : vector<8x8xf32> to vector<8x8x1xf32>
    %195 = vector.broadcast %194 : vector<8x8x1xf32> to vector<8x8x16xf32>
    %196 = arith.mulf %195, %0 : vector<8x8x16xf32>
    %cst_61 = arith.constant dense<0.000000e+00> : vector<8x16xf32>
    %197 = vector.multi_reduction <add>, %196, %cst_61 [1] : vector<8x8x16xf32> to vector<8x16xf32>
    %198 = arith.index_cast %c2_i32 : i32 to index
    %c0_62 = arith.constant 0 : index
    %c0_63 = arith.constant 0 : index
    %199 = vector.load %arg9[%198, %c0_62, %c0_63] : memref<7x8x32xf32, #tpu.memory_space<vmem>>, vector<1x8x32xf32>
    %200 = vector.shape_cast %199 : vector<1x8x32xf32> to vector<8x32xf32>
    %201 = vector.shape_cast %171 : vector<8x32xf32> to vector<1x8x32xf32>
    tpu.vector_store %arg9[%198, %c0_62, %c0_63], %201 {strides = array<i32>} : memref<7x8x32xf32, #tpu.memory_space<vmem>>, vector<1x8x32xf32>,
    %202 = arith.index_cast %c2_i32 : i32 to index
    %c0_64 = arith.constant 0 : index
    %c0_65 = arith.constant 0 : index
    %203 = vector.load %arg10[%202, %c0_64, %c0_65] : memref<7x8x8xf32, #tpu.memory_space<vmem>>, vector<1x8x8xf32>
    %204 = vector.shape_cast %203 : vector<1x8x8xf32> to vector<8x8xf32>
    %205 = vector.shape_cast %193 : vector<8x8xf32> to vector<1x8x8xf32>
    tpu.vector_store %arg10[%202, %c0_64, %c0_65], %205 {strides = array<i32>} : memref<7x8x8xf32, #tpu.memory_space<vmem>>, vector<1x8x8xf32>,
    %c3_i32 = arith.constant 3 : i32
    %206 = arith.index_cast %c3_i32 : i32 to index
    %c0_66 = arith.constant 0 : index
    %c0_67 = arith.constant 0 : index
    %207 = vector.load %arg1[%206, %c0_66, %c0_67] : memref<7x8x128xf32, #tpu.memory_space<vmem>>, vector<1x8x128xf32>
    %208 = vector.shape_cast %207 : vector<1x8x128xf32> to vector<8x128xf32>
    %cst_68 = arith.constant dense<0.000000e+00> : vector<8x128xf32>
    %209 = tpu.matmul %197, %4, %cst_68 {dimension_numbers = #tpu.dot_dimension_numbers<[1], [0], [0], [1], [0, 0, 1, 1], [], []>} : vector<8x16xf32>, vector<16x128xf32>, vector<8x128xf32> -> vector<8x128xf32>
    %210 = arith.addf %208, %209 : vector<8x128xf32>
    %cst_69 = arith.constant dense<0.000000e+00> : vector<8x128xf32>
    %211 = tpu.matmul %171, %5, %cst_69 {dimension_numbers = #tpu.dot_dimension_numbers<[1], [0], [0], [1], [0, 0, 1, 1], [], []>} : vector<8x32xf32>, vector<32x128xf32>, vector<8x128xf32> -> vector<8x128xf32>
    %212 = arith.addf %210, %211 : vector<8x128xf32>
    %213 = vector.extract_strided_slice %212 {offsets = [0, 0], sizes = [8, 32], strides = [1, 1]} : vector<8x128xf32> to vector<8x32xf32>
    %214 = arith.negf %213 : vector<8x32xf32>
    %215 = math.exp %214 : vector<8x32xf32>
    %cst_70 = arith.constant 1.000000e+00 : f32
    %216 = vector.broadcast %cst_70 : f32 to vector<8x32xf32>
    %217 = arith.addf %216, %215 : vector<8x32xf32>
    %218 = arith.divf %216, %217 : vector<8x32xf32>
    %219 = vector.extract_strided_slice %212 {offsets = [0, 32], sizes = [8, 32], strides = [1, 1]} : vector<8x128xf32> to vector<8x32xf32>
    %220 = arith.negf %219 : vector<8x32xf32>
    %221 = math.exp %220 : vector<8x32xf32>
    %cst_71 = arith.constant 1.000000e+00 : f32
    %222 = vector.broadcast %cst_71 : f32 to vector<8x32xf32>
    %223 = arith.addf %222, %221 : vector<8x32xf32>
    %224 = arith.divf %222, %223 : vector<8x32xf32>
    %225 = vector.extract_strided_slice %212 {offsets = [0, 64], sizes = [8, 32], strides = [1, 1]} : vector<8x128xf32> to vector<8x32xf32>
    %226 = math.tanh %225 : vector<8x32xf32>
    %227 = vector.extract_strided_slice %212 {offsets = [0, 96], sizes = [8, 32], strides = [1, 1]} : vector<8x128xf32> to vector<8x32xf32>
    %228 = arith.negf %227 : vector<8x32xf32>
    %229 = math.exp %228 : vector<8x32xf32>
    %cst_72 = arith.constant 1.000000e+00 : f32
    %230 = vector.broadcast %cst_72 : f32 to vector<8x32xf32>
    %231 = arith.addf %230, %229 : vector<8x32xf32>
    %232 = arith.divf %230, %231 : vector<8x32xf32>
    %233 = arith.mulf %224, %169 : vector<8x32xf32>
    %234 = arith.mulf %218, %226 : vector<8x32xf32>
    %235 = arith.addf %233, %234 : vector<8x32xf32>
    %236 = math.tanh %235 : vector<8x32xf32>
    %237 = arith.mulf %232, %236 : vector<8x32xf32>
    %238 = vector.shape_cast %237 : vector<8x32xf32> to vector<8x1x32xf32>
    %239 = vector.broadcast %238 : vector<8x1x32xf32> to vector<8x8x32xf32>
    %240 = arith.mulf %3, %239 : vector<8x8x32xf32>
    %cst_73 = arith.constant dense<0.000000e+00> : vector<8x8xf32>
    %241 = vector.multi_reduction <add>, %240, %cst_73 [2] : vector<8x8x32xf32> to vector<8x8xf32>
    %242 = vector.broadcast %1 : vector<1x32xf32> to vector<8x32xf32>
    %243 = arith.mulf %237, %242 : vector<8x32xf32>
    %cst_74 = arith.constant dense<0.000000e+00> : vector<8xf32>
    %244 = vector.multi_reduction <add>, %243, %cst_74 [1] : vector<8x32xf32> to vector<8xf32>
    %245 = vector.shape_cast %244 : vector<8xf32> to vector<8x1xf32>
    %246 = vector.broadcast %245 : vector<8x1xf32> to vector<8x8xf32>
    %247 = arith.addf %246, %2 : vector<8x8xf32>
    %248 = arith.addf %247, %241 : vector<8x8xf32>
    %cst_75 = arith.constant dense<0xFF800000> : vector<8xf32>
    %249 = vector.multi_reduction <maximumf>, %248, %cst_75 [1] : vector<8x8xf32> to vector<8xf32>
    %cst_76 = arith.constant 0xFF800000 : f32
    %250 = vector.broadcast %cst_76 : f32 to vector<8xf32>
    %251 = arith.maximumf %250, %249 : vector<8xf32>
    %252 = vector.shape_cast %251 : vector<8xf32> to vector<8x1xf32>
    %253 = vector.broadcast %252 : vector<8x1xf32> to vector<8x8xf32>
    %254 = arith.subf %248, %253 : vector<8x8xf32>
    %255 = math.exp %254 : vector<8x8xf32>
    %cst_77 = arith.constant dense<0.000000e+00> : vector<8xf32>
    %256 = vector.multi_reduction <add>, %255, %cst_77 [1] : vector<8x8xf32> to vector<8xf32>
    %257 = vector.shape_cast %256 : vector<8xf32> to vector<8x1xf32>
    %258 = vector.broadcast %257 : vector<8x1xf32> to vector<8x8xf32>
    %259 = arith.divf %255, %258 : vector<8x8xf32>
    %260 = vector.shape_cast %259 : vector<8x8xf32> to vector<8x8x1xf32>
    %261 = vector.broadcast %260 : vector<8x8x1xf32> to vector<8x8x16xf32>
    %262 = arith.mulf %261, %0 : vector<8x8x16xf32>
    %cst_78 = arith.constant dense<0.000000e+00> : vector<8x16xf32>
    %263 = vector.multi_reduction <add>, %262, %cst_78 [1] : vector<8x8x16xf32> to vector<8x16xf32>
    %264 = arith.index_cast %c3_i32 : i32 to index
    %c0_79 = arith.constant 0 : index
    %c0_80 = arith.constant 0 : index
    %265 = vector.load %arg9[%264, %c0_79, %c0_80] : memref<7x8x32xf32, #tpu.memory_space<vmem>>, vector<1x8x32xf32>
    %266 = vector.shape_cast %265 : vector<1x8x32xf32> to vector<8x32xf32>
    %267 = vector.shape_cast %237 : vector<8x32xf32> to vector<1x8x32xf32>
    tpu.vector_store %arg9[%264, %c0_79, %c0_80], %267 {strides = array<i32>} : memref<7x8x32xf32, #tpu.memory_space<vmem>>, vector<1x8x32xf32>,
    %268 = arith.index_cast %c3_i32 : i32 to index
    %c0_81 = arith.constant 0 : index
    %c0_82 = arith.constant 0 : index
    %269 = vector.load %arg10[%268, %c0_81, %c0_82] : memref<7x8x8xf32, #tpu.memory_space<vmem>>, vector<1x8x8xf32>
    %270 = vector.shape_cast %269 : vector<1x8x8xf32> to vector<8x8xf32>
    %271 = vector.shape_cast %259 : vector<8x8xf32> to vector<1x8x8xf32>
    tpu.vector_store %arg10[%268, %c0_81, %c0_82], %271 {strides = array<i32>} : memref<7x8x8xf32, #tpu.memory_space<vmem>>, vector<1x8x8xf32>,
    %c4_i32 = arith.constant 4 : i32
    %272 = arith.index_cast %c4_i32 : i32 to index
    %c0_83 = arith.constant 0 : index
    %c0_84 = arith.constant 0 : index
    %273 = vector.load %arg1[%272, %c0_83, %c0_84] : memref<7x8x128xf32, #tpu.memory_space<vmem>>, vector<1x8x128xf32>
    %274 = vector.shape_cast %273 : vector<1x8x128xf32> to vector<8x128xf32>
    %cst_85 = arith.constant dense<0.000000e+00> : vector<8x128xf32>
    %275 = tpu.matmul %263, %4, %cst_85 {dimension_numbers = #tpu.dot_dimension_numbers<[1], [0], [0], [1], [0, 0, 1, 1], [], []>} : vector<8x16xf32>, vector<16x128xf32>, vector<8x128xf32> -> vector<8x128xf32>
    %276 = arith.addf %274, %275 : vector<8x128xf32>
    %cst_86 = arith.constant dense<0.000000e+00> : vector<8x128xf32>
    %277 = tpu.matmul %237, %5, %cst_86 {dimension_numbers = #tpu.dot_dimension_numbers<[1], [0], [0], [1], [0, 0, 1, 1], [], []>} : vector<8x32xf32>, vector<32x128xf32>, vector<8x128xf32> -> vector<8x128xf32>
    %278 = arith.addf %276, %277 : vector<8x128xf32>
    %279 = vector.extract_strided_slice %278 {offsets = [0, 0], sizes = [8, 32], strides = [1, 1]} : vector<8x128xf32> to vector<8x32xf32>
    %280 = arith.negf %279 : vector<8x32xf32>
    %281 = math.exp %280 : vector<8x32xf32>
    %cst_87 = arith.constant 1.000000e+00 : f32
    %282 = vector.broadcast %cst_87 : f32 to vector<8x32xf32>
    %283 = arith.addf %282, %281 : vector<8x32xf32>
    %284 = arith.divf %282, %283 : vector<8x32xf32>
    %285 = vector.extract_strided_slice %278 {offsets = [0, 32], sizes = [8, 32], strides = [1, 1]} : vector<8x128xf32> to vector<8x32xf32>
    %286 = arith.negf %285 : vector<8x32xf32>
    %287 = math.exp %286 : vector<8x32xf32>
    %cst_88 = arith.constant 1.000000e+00 : f32
    %288 = vector.broadcast %cst_88 : f32 to vector<8x32xf32>
    %289 = arith.addf %288, %287 : vector<8x32xf32>
    %290 = arith.divf %288, %289 : vector<8x32xf32>
    %291 = vector.extract_strided_slice %278 {offsets = [0, 64], sizes = [8, 32], strides = [1, 1]} : vector<8x128xf32> to vector<8x32xf32>
    %292 = math.tanh %291 : vector<8x32xf32>
    %293 = vector.extract_strided_slice %278 {offsets = [0, 96], sizes = [8, 32], strides = [1, 1]} : vector<8x128xf32> to vector<8x32xf32>
    %294 = arith.negf %293 : vector<8x32xf32>
    %295 = math.exp %294 : vector<8x32xf32>
    %cst_89 = arith.constant 1.000000e+00 : f32
    %296 = vector.broadcast %cst_89 : f32 to vector<8x32xf32>
    %297 = arith.addf %296, %295 : vector<8x32xf32>
    %298 = arith.divf %296, %297 : vector<8x32xf32>
    %299 = arith.mulf %290, %235 : vector<8x32xf32>
    %300 = arith.mulf %284, %292 : vector<8x32xf32>
    %301 = arith.addf %299, %300 : vector<8x32xf32>
    %302 = math.tanh %301 : vector<8x32xf32>
    %303 = arith.mulf %298, %302 : vector<8x32xf32>
    %304 = vector.shape_cast %303 : vector<8x32xf32> to vector<8x1x32xf32>
    %305 = vector.broadcast %304 : vector<8x1x32xf32> to vector<8x8x32xf32>
    %306 = arith.mulf %3, %305 : vector<8x8x32xf32>
    %cst_90 = arith.constant dense<0.000000e+00> : vector<8x8xf32>
    %307 = vector.multi_reduction <add>, %306, %cst_90 [2] : vector<8x8x32xf32> to vector<8x8xf32>
    %308 = vector.broadcast %1 : vector<1x32xf32> to vector<8x32xf32>
    %309 = arith.mulf %303, %308 : vector<8x32xf32>
    %cst_91 = arith.constant dense<0.000000e+00> : vector<8xf32>
    %310 = vector.multi_reduction <add>, %309, %cst_91 [1] : vector<8x32xf32> to vector<8xf32>
    %311 = vector.shape_cast %310 : vector<8xf32> to vector<8x1xf32>
    %312 = vector.broadcast %311 : vector<8x1xf32> to vector<8x8xf32>
    %313 = arith.addf %312, %2 : vector<8x8xf32>
    %314 = arith.addf %313, %307 : vector<8x8xf32>
    %cst_92 = arith.constant dense<0xFF800000> : vector<8xf32>
    %315 = vector.multi_reduction <maximumf>, %314, %cst_92 [1] : vector<8x8xf32> to vector<8xf32>
    %cst_93 = arith.constant 0xFF800000 : f32
    %316 = vector.broadcast %cst_93 : f32 to vector<8xf32>
    %317 = arith.maximumf %316, %315 : vector<8xf32>
    %318 = vector.shape_cast %317 : vector<8xf32> to vector<8x1xf32>
    %319 = vector.broadcast %318 : vector<8x1xf32> to vector<8x8xf32>
    %320 = arith.subf %314, %319 : vector<8x8xf32>
    %321 = math.exp %320 : vector<8x8xf32>
    %cst_94 = arith.constant dense<0.000000e+00> : vector<8xf32>
    %322 = vector.multi_reduction <add>, %321, %cst_94 [1] : vector<8x8xf32> to vector<8xf32>
    %323 = vector.shape_cast %322 : vector<8xf32> to vector<8x1xf32>
    %324 = vector.broadcast %323 : vector<8x1xf32> to vector<8x8xf32>
    %325 = arith.divf %321, %324 : vector<8x8xf32>
    %326 = vector.shape_cast %325 : vector<8x8xf32> to vector<8x8x1xf32>
    %327 = vector.broadcast %326 : vector<8x8x1xf32> to vector<8x8x16xf32>
    %328 = arith.mulf %327, %0 : vector<8x8x16xf32>
    %cst_95 = arith.constant dense<0.000000e+00> : vector<8x16xf32>
    %329 = vector.multi_reduction <add>, %328, %cst_95 [1] : vector<8x8x16xf32> to vector<8x16xf32>
    %330 = arith.index_cast %c4_i32 : i32 to index
    %c0_96 = arith.constant 0 : index
    %c0_97 = arith.constant 0 : index
    %331 = vector.load %arg9[%330, %c0_96, %c0_97] : memref<7x8x32xf32, #tpu.memory_space<vmem>>, vector<1x8x32xf32>
    %332 = vector.shape_cast %331 : vector<1x8x32xf32> to vector<8x32xf32>
    %333 = vector.shape_cast %303 : vector<8x32xf32> to vector<1x8x32xf32>
    tpu.vector_store %arg9[%330, %c0_96, %c0_97], %333 {strides = array<i32>} : memref<7x8x32xf32, #tpu.memory_space<vmem>>, vector<1x8x32xf32>,
    %334 = arith.index_cast %c4_i32 : i32 to index
    %c0_98 = arith.constant 0 : index
    %c0_99 = arith.constant 0 : index
    %335 = vector.load %arg10[%334, %c0_98, %c0_99] : memref<7x8x8xf32, #tpu.memory_space<vmem>>, vector<1x8x8xf32>
    %336 = vector.shape_cast %335 : vector<1x8x8xf32> to vector<8x8xf32>
    %337 = vector.shape_cast %325 : vector<8x8xf32> to vector<1x8x8xf32>
    tpu.vector_store %arg10[%334, %c0_98, %c0_99], %337 {strides = array<i32>} : memref<7x8x8xf32, #tpu.memory_space<vmem>>, vector<1x8x8xf32>,
    %c5_i32 = arith.constant 5 : i32
    %338 = arith.index_cast %c5_i32 : i32 to index
    %c0_100 = arith.constant 0 : index
    %c0_101 = arith.constant 0 : index
    %339 = vector.load %arg1[%338, %c0_100, %c0_101] : memref<7x8x128xf32, #tpu.memory_space<vmem>>, vector<1x8x128xf32>
    %340 = vector.shape_cast %339 : vector<1x8x128xf32> to vector<8x128xf32>
    %cst_102 = arith.constant dense<0.000000e+00> : vector<8x128xf32>
    %341 = tpu.matmul %329, %4, %cst_102 {dimension_numbers = #tpu.dot_dimension_numbers<[1], [0], [0], [1], [0, 0, 1, 1], [], []>} : vector<8x16xf32>, vector<16x128xf32>, vector<8x128xf32> -> vector<8x128xf32>
    %342 = arith.addf %340, %341 : vector<8x128xf32>
    %cst_103 = arith.constant dense<0.000000e+00> : vector<8x128xf32>
    %343 = tpu.matmul %303, %5, %cst_103 {dimension_numbers = #tpu.dot_dimension_numbers<[1], [0], [0], [1], [0, 0, 1, 1], [], []>} : vector<8x32xf32>, vector<32x128xf32>, vector<8x128xf32> -> vector<8x128xf32>
    %344 = arith.addf %342, %343 : vector<8x128xf32>
    %345 = vector.extract_strided_slice %344 {offsets = [0, 0], sizes = [8, 32], strides = [1, 1]} : vector<8x128xf32> to vector<8x32xf32>
    %346 = arith.negf %345 : vector<8x32xf32>
    %347 = math.exp %346 : vector<8x32xf32>
    %cst_104 = arith.constant 1.000000e+00 : f32
    %348 = vector.broadcast %cst_104 : f32 to vector<8x32xf32>
    %349 = arith.addf %348, %347 : vector<8x32xf32>
    %350 = arith.divf %348, %349 : vector<8x32xf32>
    %351 = vector.extract_strided_slice %344 {offsets = [0, 32], sizes = [8, 32], strides = [1, 1]} : vector<8x128xf32> to vector<8x32xf32>
    %352 = arith.negf %351 : vector<8x32xf32>
    %353 = math.exp %352 : vector<8x32xf32>
    %cst_105 = arith.constant 1.000000e+00 : f32
    %354 = vector.broadcast %cst_105 : f32 to vector<8x32xf32>
    %355 = arith.addf %354, %353 : vector<8x32xf32>
    %356 = arith.divf %354, %355 : vector<8x32xf32>
    %357 = vector.extract_strided_slice %344 {offsets = [0, 64], sizes = [8, 32], strides = [1, 1]} : vector<8x128xf32> to vector<8x32xf32>
    %358 = math.tanh %357 : vector<8x32xf32>
    %359 = vector.extract_strided_slice %344 {offsets = [0, 96], sizes = [8, 32], strides = [1, 1]} : vector<8x128xf32> to vector<8x32xf32>
    %360 = arith.negf %359 : vector<8x32xf32>
    %361 = math.exp %360 : vector<8x32xf32>
    %cst_106 = arith.constant 1.000000e+00 : f32
    %362 = vector.broadcast %cst_106 : f32 to vector<8x32xf32>
    %363 = arith.addf %362, %361 : vector<8x32xf32>
    %364 = arith.divf %362, %363 : vector<8x32xf32>
    %365 = arith.mulf %356, %301 : vector<8x32xf32>
    %366 = arith.mulf %350, %358 : vector<8x32xf32>
    %367 = arith.addf %365, %366 : vector<8x32xf32>
    %368 = math.tanh %367 : vector<8x32xf32>
    %369 = arith.mulf %364, %368 : vector<8x32xf32>
    %370 = vector.shape_cast %369 : vector<8x32xf32> to vector<8x1x32xf32>
    %371 = vector.broadcast %370 : vector<8x1x32xf32> to vector<8x8x32xf32>
    %372 = arith.mulf %3, %371 : vector<8x8x32xf32>
    %cst_107 = arith.constant dense<0.000000e+00> : vector<8x8xf32>
    %373 = vector.multi_reduction <add>, %372, %cst_107 [2] : vector<8x8x32xf32> to vector<8x8xf32>
    %374 = vector.broadcast %1 : vector<1x32xf32> to vector<8x32xf32>
    %375 = arith.mulf %369, %374 : vector<8x32xf32>
    %cst_108 = arith.constant dense<0.000000e+00> : vector<8xf32>
    %376 = vector.multi_reduction <add>, %375, %cst_108 [1] : vector<8x32xf32> to vector<8xf32>
    %377 = vector.shape_cast %376 : vector<8xf32> to vector<8x1xf32>
    %378 = vector.broadcast %377 : vector<8x1xf32> to vector<8x8xf32>
    %379 = arith.addf %378, %2 : vector<8x8xf32>
    %380 = arith.addf %379, %373 : vector<8x8xf32>
    %cst_109 = arith.constant dense<0xFF800000> : vector<8xf32>
    %381 = vector.multi_reduction <maximumf>, %380, %cst_109 [1] : vector<8x8xf32> to vector<8xf32>
    %cst_110 = arith.constant 0xFF800000 : f32
    %382 = vector.broadcast %cst_110 : f32 to vector<8xf32>
    %383 = arith.maximumf %382, %381 : vector<8xf32>
    %384 = vector.shape_cast %383 : vector<8xf32> to vector<8x1xf32>
    %385 = vector.broadcast %384 : vector<8x1xf32> to vector<8x8xf32>
    %386 = arith.subf %380, %385 : vector<8x8xf32>
    %387 = math.exp %386 : vector<8x8xf32>
    %cst_111 = arith.constant dense<0.000000e+00> : vector<8xf32>
    %388 = vector.multi_reduction <add>, %387, %cst_111 [1] : vector<8x8xf32> to vector<8xf32>
    %389 = vector.shape_cast %388 : vector<8xf32> to vector<8x1xf32>
    %390 = vector.broadcast %389 : vector<8x1xf32> to vector<8x8xf32>
    %391 = arith.divf %387, %390 : vector<8x8xf32>
    %392 = vector.shape_cast %391 : vector<8x8xf32> to vector<8x8x1xf32>
    %393 = vector.broadcast %392 : vector<8x8x1xf32> to vector<8x8x16xf32>
    %394 = arith.mulf %393, %0 : vector<8x8x16xf32>
    %cst_112 = arith.constant dense<0.000000e+00> : vector<8x16xf32>
    %395 = vector.multi_reduction <add>, %394, %cst_112 [1] : vector<8x8x16xf32> to vector<8x16xf32>
    %396 = arith.index_cast %c5_i32 : i32 to index
    %c0_113 = arith.constant 0 : index
    %c0_114 = arith.constant 0 : index
    %397 = vector.load %arg9[%396, %c0_113, %c0_114] : memref<7x8x32xf32, #tpu.memory_space<vmem>>, vector<1x8x32xf32>
    %398 = vector.shape_cast %397 : vector<1x8x32xf32> to vector<8x32xf32>
    %399 = vector.shape_cast %369 : vector<8x32xf32> to vector<1x8x32xf32>
    tpu.vector_store %arg9[%396, %c0_113, %c0_114], %399 {strides = array<i32>} : memref<7x8x32xf32, #tpu.memory_space<vmem>>, vector<1x8x32xf32>,
    %400 = arith.index_cast %c5_i32 : i32 to index
    %c0_115 = arith.constant 0 : index
    %c0_116 = arith.constant 0 : index
    %401 = vector.load %arg10[%400, %c0_115, %c0_116] : memref<7x8x8xf32, #tpu.memory_space<vmem>>, vector<1x8x8xf32>
    %402 = vector.shape_cast %401 : vector<1x8x8xf32> to vector<8x8xf32>
    %403 = vector.shape_cast %391 : vector<8x8xf32> to vector<1x8x8xf32>
    tpu.vector_store %arg10[%400, %c0_115, %c0_116], %403 {strides = array<i32>} : memref<7x8x8xf32, #tpu.memory_space<vmem>>, vector<1x8x8xf32>,
    %c6_i32 = arith.constant 6 : i32
    %404 = arith.index_cast %c6_i32 : i32 to index
    %c0_117 = arith.constant 0 : index
    %c0_118 = arith.constant 0 : index
    %405 = vector.load %arg1[%404, %c0_117, %c0_118] : memref<7x8x128xf32, #tpu.memory_space<vmem>>, vector<1x8x128xf32>
    %406 = vector.shape_cast %405 : vector<1x8x128xf32> to vector<8x128xf32>
    %cst_119 = arith.constant dense<0.000000e+00> : vector<8x128xf32>
    %407 = tpu.matmul %395, %4, %cst_119 {dimension_numbers = #tpu.dot_dimension_numbers<[1], [0], [0], [1], [0, 0, 1, 1], [], []>} : vector<8x16xf32>, vector<16x128xf32>, vector<8x128xf32> -> vector<8x128xf32>
    %408 = arith.addf %406, %407 : vector<8x128xf32>
    %cst_120 = arith.constant dense<0.000000e+00> : vector<8x128xf32>
    %409 = tpu.matmul %369, %5, %cst_120 {dimension_numbers = #tpu.dot_dimension_numbers<[1], [0], [0], [1], [0, 0, 1, 1], [], []>} : vector<8x32xf32>, vector<32x128xf32>, vector<8x128xf32> -> vector<8x128xf32>
    %410 = arith.addf %408, %409 : vector<8x128xf32>
    %411 = vector.extract_strided_slice %410 {offsets = [0, 0], sizes = [8, 32], strides = [1, 1]} : vector<8x128xf32> to vector<8x32xf32>
    %412 = arith.negf %411 : vector<8x32xf32>
    %413 = math.exp %412 : vector<8x32xf32>
    %cst_121 = arith.constant 1.000000e+00 : f32
    %414 = vector.broadcast %cst_121 : f32 to vector<8x32xf32>
    %415 = arith.addf %414, %413 : vector<8x32xf32>
    %416 = arith.divf %414, %415 : vector<8x32xf32>
    %417 = vector.extract_strided_slice %410 {offsets = [0, 32], sizes = [8, 32], strides = [1, 1]} : vector<8x128xf32> to vector<8x32xf32>
    %418 = arith.negf %417 : vector<8x32xf32>
    %419 = math.exp %418 : vector<8x32xf32>
    %cst_122 = arith.constant 1.000000e+00 : f32
    %420 = vector.broadcast %cst_122 : f32 to vector<8x32xf32>
    %421 = arith.addf %420, %419 : vector<8x32xf32>
    %422 = arith.divf %420, %421 : vector<8x32xf32>
    %423 = vector.extract_strided_slice %410 {offsets = [0, 64], sizes = [8, 32], strides = [1, 1]} : vector<8x128xf32> to vector<8x32xf32>
    %424 = math.tanh %423 : vector<8x32xf32>
    %425 = vector.extract_strided_slice %410 {offsets = [0, 96], sizes = [8, 32], strides = [1, 1]} : vector<8x128xf32> to vector<8x32xf32>
    %426 = arith.negf %425 : vector<8x32xf32>
    %427 = math.exp %426 : vector<8x32xf32>
    %cst_123 = arith.constant 1.000000e+00 : f32
    %428 = vector.broadcast %cst_123 : f32 to vector<8x32xf32>
    %429 = arith.addf %428, %427 : vector<8x32xf32>
    %430 = arith.divf %428, %429 : vector<8x32xf32>
    %431 = arith.mulf %422, %367 : vector<8x32xf32>
    %432 = arith.mulf %416, %424 : vector<8x32xf32>
    %433 = arith.addf %431, %432 : vector<8x32xf32>
    %434 = math.tanh %433 : vector<8x32xf32>
    %435 = arith.mulf %430, %434 : vector<8x32xf32>
    %436 = vector.shape_cast %435 : vector<8x32xf32> to vector<8x1x32xf32>
    %437 = vector.broadcast %436 : vector<8x1x32xf32> to vector<8x8x32xf32>
    %438 = arith.mulf %3, %437 : vector<8x8x32xf32>
    %cst_124 = arith.constant dense<0.000000e+00> : vector<8x8xf32>
    %439 = vector.multi_reduction <add>, %438, %cst_124 [2] : vector<8x8x32xf32> to vector<8x8xf32>
    %440 = vector.broadcast %1 : vector<1x32xf32> to vector<8x32xf32>
    %441 = arith.mulf %435, %440 : vector<8x32xf32>
    %cst_125 = arith.constant dense<0.000000e+00> : vector<8xf32>
    %442 = vector.multi_reduction <add>, %441, %cst_125 [1] : vector<8x32xf32> to vector<8xf32>
    %443 = vector.shape_cast %442 : vector<8xf32> to vector<8x1xf32>
    %444 = vector.broadcast %443 : vector<8x1xf32> to vector<8x8xf32>
    %445 = arith.addf %444, %2 : vector<8x8xf32>
    %446 = arith.addf %445, %439 : vector<8x8xf32>
    %cst_126 = arith.constant dense<0xFF800000> : vector<8xf32>
    %447 = vector.multi_reduction <maximumf>, %446, %cst_126 [1] : vector<8x8xf32> to vector<8xf32>
    %cst_127 = arith.constant 0xFF800000 : f32
    %448 = vector.broadcast %cst_127 : f32 to vector<8xf32>
    %449 = arith.maximumf %448, %447 : vector<8xf32>
    %450 = vector.shape_cast %449 : vector<8xf32> to vector<8x1xf32>
    %451 = vector.broadcast %450 : vector<8x1xf32> to vector<8x8xf32>
    %452 = arith.subf %446, %451 : vector<8x8xf32>
    %453 = math.exp %452 : vector<8x8xf32>
    %cst_128 = arith.constant dense<0.000000e+00> : vector<8xf32>
    %454 = vector.multi_reduction <add>, %453, %cst_128 [1] : vector<8x8xf32> to vector<8xf32>
    %455 = vector.shape_cast %454 : vector<8xf32> to vector<8x1xf32>
    %456 = vector.broadcast %455 : vector<8x1xf32> to vector<8x8xf32>
    %457 = arith.divf %453, %456 : vector<8x8xf32>
    %458 = vector.shape_cast %457 : vector<8x8xf32> to vector<8x8x1xf32>
    %459 = vector.broadcast %458 : vector<8x8x1xf32> to vector<8x8x16xf32>
    %460 = arith.mulf %459, %0 : vector<8x8x16xf32>
    %cst_129 = arith.constant dense<0.000000e+00> : vector<8x16xf32>
    %461 = vector.multi_reduction <add>, %460, %cst_129 [1] : vector<8x8x16xf32> to vector<8x16xf32>
    %462 = arith.index_cast %c6_i32 : i32 to index
    %c0_130 = arith.constant 0 : index
    %c0_131 = arith.constant 0 : index
    %463 = vector.load %arg9[%462, %c0_130, %c0_131] : memref<7x8x32xf32, #tpu.memory_space<vmem>>, vector<1x8x32xf32>
    %464 = vector.shape_cast %463 : vector<1x8x32xf32> to vector<8x32xf32>
    %465 = vector.shape_cast %435 : vector<8x32xf32> to vector<1x8x32xf32>
    tpu.vector_store %arg9[%462, %c0_130, %c0_131], %465 {strides = array<i32>} : memref<7x8x32xf32, #tpu.memory_space<vmem>>, vector<1x8x32xf32>,
    %466 = arith.index_cast %c6_i32 : i32 to index
    %c0_132 = arith.constant 0 : index
    %c0_133 = arith.constant 0 : index
    %467 = vector.load %arg10[%466, %c0_132, %c0_133] : memref<7x8x8xf32, #tpu.memory_space<vmem>>, vector<1x8x8xf32>
    %468 = vector.shape_cast %467 : vector<1x8x8xf32> to vector<8x8xf32>
    %469 = vector.shape_cast %457 : vector<8x8xf32> to vector<1x8x8xf32>
    tpu.vector_store %arg10[%466, %c0_132, %c0_133], %469 {strides = array<i32>} : memref<7x8x8xf32, #tpu.memory_space<vmem>>, vector<1x8x8xf32>,
    %c7_i32 = arith.constant 7 : i32
    return
  }
  func.func @transform_0(%arg0: i32) -> (i32, i32, i32) {
    %c0_i32 = arith.constant 0 : i32
    %c0_i32_0 = arith.constant 0 : i32
    %c0_i32_1 = arith.constant 0 : i32
    return %c0_i32, %arg0, %c0_i32_0 : i32, i32, i32
  }
  func.func @transform_1(%arg0: i32) -> (i32, i32) {
    %c0_i32 = arith.constant 0 : i32
    %c0_i32_0 = arith.constant 0 : i32
    return %arg0, %c0_i32 : i32, i32
  }
  func.func @transform_2(%arg0: i32) -> (i32, i32, i32) {
    %c0_i32 = arith.constant 0 : i32
    %c0_i32_0 = arith.constant 0 : i32
    %c0_i32_1 = arith.constant 0 : i32
    return %arg0, %c0_i32, %c0_i32_0 : i32, i32, i32
  }
  func.func @transform_3(%arg0: i32) -> (i32, i32) {
    %c0_i32 = arith.constant 0 : i32
    %c0_i32_0 = arith.constant 0 : i32
    %c0_i32_1 = arith.constant 0 : i32
    return %c0_i32, %c0_i32_0 : i32, i32
  }
  func.func @transform_4(%arg0: i32) -> (i32, i32) {
    %c0_i32 = arith.constant 0 : i32
    %c0_i32_0 = arith.constant 0 : i32
    return %arg0, %c0_i32 : i32, i32
  }
  func.func @transform_5(%arg0: i32) -> (i32, i32, i32) {
    %c0_i32 = arith.constant 0 : i32
    %c0_i32_0 = arith.constant 0 : i32
    %c0_i32_1 = arith.constant 0 : i32
    return %arg0, %c0_i32, %c0_i32_0 : i32, i32, i32
  }
  func.func @transform_6(%arg0: i32) -> (i32, i32) {
    %c0_i32 = arith.constant 0 : i32
    %c0_i32_0 = arith.constant 0 : i32
    %c0_i32_1 = arith.constant 0 : i32
    return %c0_i32, %c0_i32_0 : i32, i32
  }
  func.func @transform_7(%arg0: i32) -> (i32, i32) {
    %c0_i32 = arith.constant 0 : i32
    %c0_i32_0 = arith.constant 0 : i32
    %c0_i32_1 = arith.constant 0 : i32
    return %c0_i32, %c0_i32_0 : i32, i32
  }
  func.func @transform_8(%arg0: i32) -> (i32, i32, i32) {
    %c0_i32 = arith.constant 0 : i32
    %c0_i32_0 = arith.constant 0 : i32
    %c0_i32_1 = arith.constant 0 : i32
    return %c0_i32, %arg0, %c0_i32_0 : i32, i32, i32
  }
  func.func @transform_9(%arg0: i32) -> (i32, i32, i32) {
    %c0_i32 = arith.constant 0 : i32
    %c0_i32_0 = arith.constant 0 : i32
    %c0_i32_1 = arith.constant 0 : i32
    return %c0_i32, %arg0, %c0_i32_0 : i32, i32, i32
  }
}

</mosaic_0001>

<bundles_post_ra>
// kernel: tpu_custom_call.1
= control target key start
LH: loop header
LB: loop body
LE: loop exit
PB: predicated region body
PF: predicated region fallthrough
CT: control target
= control target key end

     0   :  { %15 = vsyncpa [#allocation3], 0  ;;  %s3818_s0 = inlined_call_operand.hbm [shape: f32[7,8,128], index: 0, kind: input, shape index: {}]   ;;  %s3819_s1 = inlined_call_operand.hbm [shape: f32[8,32], index: 1, kind: input, shape index: {}]   ;;  %s3820_s2 = inlined_call_operand.hbm [shape: f32[8,8,16], index: 2, kind: input, shape index: {}]   ;;  %s3821_s3 = inlined_call_operand.vmem [shape: f32[1,32], index: 3, kind: input, shape index: {}]   ;;  %s3822_s4 = inlined_call_operand.hbm [shape: f32[8,8], index: 4, kind: input, shape index: {}]   ;;  %s3823_s5 = inlined_call_operand.hbm [shape: f32[8,8,32], index: 5, kind: input, shape index: {}]   ;;  %s3824_s6 = inlined_call_operand.hbm [shape: f32[16,128], index: 6, kind: input, shape index: {}]   ;;  %s3825_s7 = inlined_call_operand.hbm [shape: f32[32,128], index: 7, kind: input, shape index: {}]   ;;  %s3826_s8 = inlined_call_operand.hbm [shape: f32[7,8,32], index: 8, kind: output, shape index: {0}]   ;;  %s3827_s9 = inlined_call_operand.hbm [shape: f32[7,8,8], index: 9, kind: output, shape index: {1}]  }
   0x1   :  { %16 = vsyncpa [#allocation6], 0 }
   0x2   :  { %17 = vsyncpa [#allocation9], 0 }
   0x3   :  { %18 = vsyncpa [#allocation12], 0 }
   0x4   :  { %19 = vsyncpa [#allocation4], 0  ;;  %s39_s11 = sshll.u32 %s3819_s1, 4  ;;  %s40_s11 = int_to_ptr.hbm [resolvable:$true] %s39_s11 }
   0x5   :  { %20 = vsyncpa [#allocation16], 0  ;;  %s2974_s12 = smov [#allocation5]   ;;  %s65_s16 = sshll.u32 %s3822_s4, 4  ;;  %s66_s16 = int_to_ptr.hbm [resolvable:$true] %s65_s16 }
   0x6   :  { %s41_s13 = sshll.u32 %s2974_s12, 4  ;;  %s2975_s17 = smov [#allocation8]   ;;  %s42_s13 = int_to_ptr.vmem [resolvable:$true] %s41_s13 }
   0x7   :  { %44 = dma.hbm_to_vmem [thread:$0]  %s40_s11, 128, %s42_s13, [#allocation6]  }
   0x8   :  { %s67_s18 = sshll.u32 %s2975_s17, 4  ;;  %s88_s21 = sshll.u32 %s3824_s6, 4  ;;  %s68_s18 = int_to_ptr.vmem [resolvable:$true] %s67_s18  ;;  %s89_s21 = int_to_ptr.hbm [resolvable:$true] %s88_s21 }
   0x9   :  { %70 = dma.hbm_to_vmem [thread:$0]  %s66_s16, 128, %s68_s18, [#allocation9]  }
   0xa   :  { %s2976_s1 = smov [#allocation11]   ;;  %s25_s25 = sshll.u32 %s3818_s0, 4  ;;  %s26_s25 = int_to_ptr.hbm [resolvable:$true] %s25_s25 }
   0xb   :  { %s90_s22 = sshll.u32 %s2976_s1, 4  ;;  %s2977_s26 = smov 128   ;;  %s91_s22 = int_to_ptr.vmem [resolvable:$true] %s90_s22 }
   0xc   :  { %s2978_s4 = smov 8   ;;  %s2979_s27 = smov [#allocation2]  }
   0xd   :  { %96 = dma.hbm_to_vmem [thread:$0]  %s89_s21, 256, %s91_s22, [#allocation12], %s2977_s26, %s2977_s26, %s2978_s4  }
   0xe   :  { %s27_s28 = sshll.u32 %s2979_s27, 4  ;;  %s49_s6 = sshll.u32 %s3820_s2, 4  ;;  %s28_s28 = int_to_ptr.vmem [resolvable:$true] %s27_s28  ;;  %s50_s6 = int_to_ptr.hbm [resolvable:$true] %s49_s6 }
   0xf   :  { %33 = dma.hbm_to_vmem [thread:$0]  %s26_s25, 896, %s28_s28, [#allocation3], %s2977_s26, %s2977_s26, %s2978_s4  }
  0x10   :  { %s75_s11 = sshll.u32 %s3823_s5, 4  ;;  %s2980_s12 = smov [#allocation7]   ;;  %s76_s11 = int_to_ptr.hbm [resolvable:$true] %s75_s11 }
  0x11   :  { %s51_s13 = sshll.u32 %s2980_s12, 4  ;;  %s2981_s14 = smov [#allocation10]   ;;  %s52_s13 = int_to_ptr.vmem [resolvable:$true] %s51_s13 }
  0x12   :  { %57 = dma.hbm_to_vmem [thread:$0]  %s50_s6, 1024, %s52_s13, [#allocation6], %s2977_s26, %s2977_s26, %s2978_s4  }
  0x13   :  { %s77_s2 = sshll.u32 %s2981_s14, 4  ;;  %s101_s17 = sshll.u32 %s3825_s7, 4  ;;  %s78_s2 = int_to_ptr.vmem [resolvable:$true] %s77_s2  ;;  %s102_s17 = int_to_ptr.hbm [resolvable:$true] %s101_s17 }
  0x14   :  { %83 = dma.hbm_to_vmem [thread:$0]  %s76_s11, 1024, %s78_s2, [#allocation9], %s2977_s26, %s2977_s26, %s2978_s4  }
  0x15   :  { %s2982_s5 = smov [#allocation13]  }
  0x16   :  { %s103_s18 = sshll.u32 %s2982_s5, 4  ;;  %s104_s18 = int_to_ptr.vmem [resolvable:$true] %s103_s18 }
  0x17   :  { %109 = dma.hbm_to_vmem [thread:$0]  %s102_s17, 512, %s104_s18, [#allocation12], %s2977_s26, %s2977_s26, %s2978_s4  }
  0x18   :  { %2962 = dma.done.wait [#allocation3], 896  }
  0x19   :  { %2963 = vsyncadd [#allocation3], 4294966400 }
  0x1a   :  { %2964 = dma.done.wait [#allocation6], 1152  }
  0x1b   :  { %2965 = vsyncadd [#allocation6], 4294966144 }
  0x1c   :  { %2966 = dma.done.wait [#allocation9], 1152  }
  0x1d   :  { %2967 = vsyncadd [#allocation9], 4294966144 }
  0x1e   :  { %2968 = dma.done.wait [#allocation12], 768  }
  0x1f   :  { %2969 = vsyncadd [#allocation12], 4294966528  ;;  %v3075_v0 = vld [vmem:[#allocation13 + $0x18] sm:$0xff]  ;;  %v3077_v2 = vld [vmem:[#allocation13 + $0x10] sm:$0xff]  ;;  %v2983_v5 = vmov 0.0   ;;  %vm189_vm0 = vcmask 261120  }
  0x20   :  { %v157_v1 = vld [vmem:[#allocation11 + $0x8] sm:$0xff]  ;;  %205 = vmatpush.msra.mxu1 %v3075_v0  ;;  %v156_v3 = vld [vmem:[#allocation11] sm:$0xff]  ;;  %v3080_v4 = vld [vmem:[#allocation13 + $0x8] sm:$0xff]  ;;  %578 = vmatpush.msra.mxu3 %v3075_v0  ;;  %s2984_s7 = smov 64   ;;  %s2985_s19 = smov 32   ;;  %vm358_vm5 = vcmask 1041409  }
  0x21   :  { %182 = vmatpush.msra.mxu0 %v157_v1  ;;  %557 = vmatpush.msra.mxu2 %v157_v1  ;;  %v3084_v6 = vld [vmem:[#allocation13] sm:$0xff]  ;;  %v163_v8 = vld [vmem:[#allocation2] sm:$0xff]  ;;  %s2986_s1 = smov 96   ;;  %v3133_v54 = vld [vmem:[#allocation10] sm:$0xff]  ;;  %vm360_vm6 = vcmask 1042434   ;;  %vm362_vm7 = vcmask 1043459  }
  0x22   :  { %206 = vmatpush.msra.mxu1 %v3077_v2  ;;  %579 = vmatpush.msra.mxu3 %v3077_v2  ;;  %v162_v7 = vld [vmem:[#allocation5] sm:$0xff]  ;;  %v2624_v29 = vld [vmem:[%s3821_s3] ss:$0 sm:$0xff]  ;;  %v3143_v63 = vld [vmem:[#allocation10 + $0x8] sm:$0xff]  ;;  %vm364_vm8 = vcmask 1044484   ;;  %vm366_vm9 = vcmask 1045509  }
  0x23   :  { %183 = vmatpush.msra.mxu0 %v156_v3  ;;  %558 = vmatpush.msra.mxu2 %v156_v3  ;;  %v3137_v58 = vld [vmem:[#allocation10 + $0x18] sm:$0xff]  ;;  %v3141_v62 = vld [vmem:[#allocation10 + $0x10] sm:$0xff]  ;;  %vm368_vm10 = vcmask 1046534   ;;  %vm370_vm11 = vcmask 1047559   ;;  %vm374_vm12 = vcmask 64512   ;;  %s2552_s23 = sshll.u32 %s3826_s8, 4  ;;  %s2553_s23 = int_to_ptr.hbm [resolvable:$true] %s2552_s23 }
  0x24   :  { %184 = vmatmul.f32.vlgmr.msra.gmra.mxu0 %v2983_v5  ;;  %207 = vmatpush.msra.mxu1 %v3080_v4  ;;  %s2987_s24 = smov [#allocation14]   ;;  %s2988_s8 = smov [#allocation15]  }
  0x25   :  { %580 = vmatpush.msra.mxu3 %v3080_v4  ;;  %935 = vmatpush.msrb.mxu2 %v3075_v0  ;;  %s2550_s25 = sshll.u32 %s2987_s24, 4  ;;  %s2563_s27 = sshll.u32 %s2988_s8, 4  ;;  %s2551_s25 = int_to_ptr.vmem [resolvable:$true] %s2550_s25  ;;  %s2564_s27 = int_to_ptr.vmem [resolvable:$true] %s2563_s27 }
  0x26   :  { %208 = vmatpush.msra.mxu1 %v3084_v6  ;;  %914 = vmatpush.msrb.mxu0 %v157_v1  ;;  %s2565_s30 = sshll.u32 %s3827_s9, 4  ;;  %s2566_s30 = int_to_ptr.hbm [resolvable:$true] %s2565_s30 }
  0x27   :  { %2586 = vmatmul.msk.f32.vlgmr.msra.gmra.mxu1 %vm189_vm0, %v162_v7  ;;  %581 = vmatpush.msra.mxu3 %v3084_v6 }
  0x28   :  { %936 = vmatpush.msrb.mxu2 %v3077_v2  ;;  %915 = vmatpush.msrb.mxu0 %v156_v3 }
  0x29   :  { %1292 = vmatpush.msrb.mxu3 %v3075_v0  ;;  %1271 = vmatpush.msrb.mxu1 %v157_v1 }
  0x2a   :  { %937 = vmatpush.msrb.mxu2 %v3080_v4  ;;  %1628 = vmatpush.msra.mxu0 %v157_v1 }
  0x2b   :  { %1293 = vmatpush.msrb.mxu3 %v3077_v2  ;;  %1272 = vmatpush.msrb.mxu1 %v156_v3 }
  0x2c   :  { %938 = vmatpush.msrb.mxu2 %v3084_v6  ;;  %1629 = vmatpush.msra.mxu0 %v156_v3 }
  0x2d   :  { %1294 = vmatpush.msrb.mxu3 %v3080_v4  ;;  %1985 = vmatpush.msra.mxu1 %v157_v1 }
  0x2e   :  { %328 = vrot.lane.b32.xlu2 %v2624_v29, %s2986_s1  ;;  %v348_v29 = vlaneseq }
  0x2f   :  { %1295 = vmatpush.msrb.mxu3 %v3084_v6  ;;  %1986 = vmatpush.msra.mxu1 %v156_v3 }
  0x88   :  { %v3126_v50 = vpop.permute.xlu2 %328 }
  0xa1   :  { %v185_v9 = vpop.f32.mrf.mxu0 }
  0xa2   :  { %v188_v10 = vadd.f32 %v185_v9, %v163_v8 }
  0xa4   :  { %v210_v11 = vpop.f32.mrf.mxu1 }
  0xa5   :  { %v213_v12 = vadd.f32 %v210_v11, %v188_v10  ;;  %v3149_v10 = vld [vmem:[#allocation10 + $0x30] sm:$0xff] }
  0xa7   :  { %2625 = vtanh.f32 %v213_v12  ;;  %v2587_v14 = vmul.f32 -1.442695, %v213_v12  ;;  %v3151_v12 = vld [vmem:[#allocation10 + $0x28] sm:$0xff] }
  0xa9   :  { %2627 = vpow2.f32 %v2587_v14 }
  0xad   :  { %v2626_v13 = vpop.eup %2625 }
  0xae   :  { %239 = vrot.lane.b32.xlu0 %v2626_v13, %s2984_s7  ;;  %v3153_v13 = vld [vmem:[#allocation10 + $0x20] sm:$0xff] }
  0xaf   :  { %v2628_v15 = vpop.eup %2627 }
  0xb0   :  { %v217_v16 = vadd.f32 1.0, %v2628_v15 }
  0xb2   :  { %2629 = vrcp.f32 %v217_v16  ;;  %v229_v22 = vand.u32 2147483648, %v217_v16  ;;  %vm223_vm2 = vweird.f32 %v217_v16  ;;  %v227_v23 = vand.u32 2147483647, %v217_v16 }
  0xb4   :  { %v230_v25 = vor.u32 1.1754944e-38, %v229_v22  ;;  %vm228_vm4 = vcmp.eq.f32.partialorder %v227_v23, 8.507059e+37  ;;  %v3161_v22 = vld [vmem:[#allocation10 + $0x38] sm:$0xff] }
  0xb6   :  { %234 = vrot.lane.b32.xlu0 %v162_v7, %s2985_s19 }
  0xb8   :  { %v2630_v17 = vpop.eup %2629 }
  0xb9   :  { %v219_v18 = vmul.f32 %v2630_v17, %v217_v16  ;;  %vm224_vm1 = vweird.f32 %v2630_v17 }
  0xba   :  { %vm225_vm3 = vmor %vm223_vm2, %vm224_vm1  ;;  %vm164_vm2 = vcmask 130048  }
  0xbb   :  { %v220_v19 = vsub.f32 1.0, %v219_v18 }
  0xbd   :  { %v221_v20 = vmul.f32 %v2630_v17, %v220_v19 }
  0xbf   :  { %v222_v21 = vadd.f32 %v2630_v17, %v221_v20 }
  0xc1   :  { %v226_v24 = vsel %vm225_vm3, %v2630_v17, %v222_v21 }
  0xc2   :  { %v231_v27 = vsel %vm228_vm4, %v230_v25, %v226_v24 }
 0x120   :  { %v240_v26 = vpop.permute.xlu0 %239 }
 0x121   :  { %v242_v28 = vmul.f32 %v240_v26, %v231_v27 }
 0x123   :  { %244 = vrot.lane.b32.xlu1 %v242_v28, %s2985_s19 }
 0x128   :  { %v235_v30 = vpop.permute.xlu0 %234 }
 0x129   :  { %v237_v31 = vmul.f32 %v235_v30, %v231_v27  ;;  %v3166_v30 = vand.u32 127, %v348_v29 }
 0x195   :  { %v245_v32 = vpop.permute.xlu1 %244 }
 0x196   :  { %v3106_v33 = vadd.f32 %v245_v32, %v237_v31 }
 0x198   :  { %2631 = vtanh.f32 %v3106_v33 }
 0x19e   :  { %v2632_v34 = vpop.eup %2631 }
 0x19f   :  { %250 = vrot.lane.b32.xlu1 %v2632_v34, %s2984_s7 }
 0x211   :  { %v251_v35 = vpop.permute.xlu1 %250 }
 0x212   :  { %v3110_v36 = vmul.f32 %v251_v35, %v231_v27 }
 0x214   :  { %v262_v37 = vperm.slane %v3110_v36, 0  ;;  %v256_v38 = vrot.slane %v3110_v36, 2  ;;  %v255_v39 = vrot.slane %v3110_v36, 1  ;;  %v257_v42 = vrot.slane %v3110_v36, 3 }
 0x215   :  { %v259_v43 = vrot.slane %v3110_v36, 5  ;;  %v258_v44 = vrot.slane %v3110_v36, 4  ;;  %v260_v48 = vrot.slane %v3110_v36, 6  ;;  %v261_v49 = vrot.slane %v3110_v36, 7 }
 0x216   :  { %270 = vrot.lane.b32.xlu2 %v262_v37, %s2985_s19  ;;  %v264_v40 = vperm.slane %v256_v38, 0  ;;  %v263_v41 = vperm.slane %v255_v39, 0  ;;  %v265_v45 = vperm.slane %v257_v42, 0  ;;  %v331_v53 = vmul.f32 %v3126_v50, %v3110_v36 }
 0x217   :  { %v267_v46 = vperm.slane %v259_v43, 0  ;;  %v266_v47 = vperm.slane %v258_v44, 0  ;;  %v268_v51 = vperm.slane %v260_v48, 0  ;;  %v269_v52 = vperm.slane %v261_v49, 0  ;;  %v3178_v49 = vld [vmem:[#allocation8] sm:$0xff] }
 0x218   :  { %274 = vrot.lane.b32.xlu1 %v264_v40, %s2985_s19  ;;  %272 = vrot.lane.b32.xlu0 %v263_v41, %s2985_s19 }
 0x21e   :  { %276 = vrot.lane.b32.xlu2 %v265_v45, %s2985_s19 }
 0x220   :  { %280 = vrot.lane.b32.xlu1 %v267_v46, %s2985_s19  ;;  %278 = vrot.lane.b32.xlu0 %v266_v47, %s2985_s19 }
 0x226   :  { %282 = vrot.lane.b32.xlu2 %v268_v51, %s2985_s19 }
 0x228   :  { %284 = vrot.lane.b32.xlu0 %v269_v52, %s2985_s19  ;;  %333 = vrot.lane.b32.xlu1 %v331_v53, %s2985_s19 }
 0x270   :  { %v271_v55 = vpop.permute.xlu2 %270 }
 0x271   :  { %v294_v56 = vmul.f32 %v271_v55, %v3133_v54 }
 0x273   :  { %v302_v57 = vsel %vm189_vm0, %v294_v56, 0.0 }
 0x274   :  { %303 = vadd.xlane.f32.xlu2 %v302_v57 }
 0x278   :  { %v277_v59 = vpop.permute.xlu2 %276 }
 0x279   :  { %v297_v60 = vmul.f32 %v277_v59, %v3137_v58 }
 0x27b   :  { %v311_v61 = vsel %vm189_vm0, %v297_v60, 0.0 }
 0x27c   :  { %312 = vadd.xlane.f32.xlu2 %v311_v61 }
 0x280   :  { %v283_v11 = vpop.permute.xlu2 %282 }
 0x281   :  { %v300_v14 = vmul.f32 %v283_v11, %v3149_v10  ;;  %v401_v11 = vshrl.u32 %v348_v29, 7 }
 0x283   :  { %v320_v21 = vsel %vm189_vm0, %v300_v14, 0.0  ;;  %2623 = vset.pattern.permute.xlu2 %v401_v11  ;;  %2622 = vset.pattern.permute.xlu1 %v401_v11 }
 0x284   :  { %2621 = vset.pattern.permute.xlu0 %v401_v11 }
 0x28a   :  { %v275_v1 = vpop.permute.xlu1 %274  ;;  %v273_v3 = vpop.permute.xlu0 %272 }
 0x28b   :  { %v296_v5 = vmul.f32 %v275_v1, %v3141_v62  ;;  %v295_v7 = vmul.f32 %v273_v3, %v3143_v63 }
 0x28d   :  { %v305_v8 = vsel %vm189_vm0, %v295_v7, 0.0  ;;  %v308_v9 = vsel %vm189_vm0, %v296_v5, 0.0 }
 0x28e   :  { %306 = vadd.xlane.f32.xlu0 %v305_v8  ;;  %309 = vadd.xlane.f32.xlu1 %v308_v9 }
 0x292   :  { %v281_v15 = vpop.permute.xlu1 %280  ;;  %v279_v16 = vpop.permute.xlu0 %278 }
 0x293   :  { %v299_v17 = vmul.f32 %v281_v15, %v3151_v12  ;;  %v298_v18 = vmul.f32 %v279_v16, %v3153_v13 }
 0x295   :  { %v317_v19 = vsel %vm189_vm0, %v299_v17, 0.0  ;;  %v314_v20 = vsel %vm189_vm0, %v298_v18, 0.0 }
 0x296   :  { %318 = vadd.xlane.f32.xlu0 %v317_v19  ;;  %315 = vadd.xlane.f32.xlu2 %v314_v20 }
 0x297   :  { %321 = vadd.xlane.f32.xlu1 %v320_v21 }
 0x29a   :  { %v285_v23 = vpop.permute.xlu0 %284  ;;  %v334_v24 = vpop.permute.xlu1 %333 }
 0x29b   :  { %v301_v25 = vmul.f32 %v285_v23, %v3161_v22  ;;  %v336_v26 = vsel %vm189_vm0, %v334_v24, 0.0 }
 0x29d   :  { %v323_v27 = vsel %vm189_vm0, %v301_v25, 0.0 }
 0x29e   :  { %337 = vadd.xlane.f32.xlu0 %v336_v26  ;;  %324 = vadd.xlane.f32.xlu2 %v323_v27 }
 0x2e7   :  { %v304_v28 = vpop.xlane.xlu2 %303 }
 0x2e8   :  { %v350_v37 = vperm.slane %v304_v28, %v3166_v30 }
 0x2ef   :  { %v313_v31 = vpop.xlane.xlu2 %312 }
 0x2f0   :  { %v353_v43 = vperm.slane %v313_v31, %v3166_v30 }
 0x301   :  { %v307_v32 = vpop.xlane.xlu0 %306  ;;  %v310_v35 = vpop.xlane.xlu1 %309 }
 0x302   :  { %v351_v34 = vperm.slane %v307_v32, %v3166_v30  ;;  %v352_v38 = vperm.slane %v310_v35, %v3166_v30 }
 0x304   :  { %v359_v39 = vsel %vm358_vm5, %v351_v34, %v350_v37 }
 0x305   :  { %v361_v40 = vsel %vm360_vm6, %v352_v38, %v359_v39 }
 0x306   :  { %v363_v46 = vsel %vm362_vm7, %v353_v43, %v361_v40  ;;  %v3191_v40 = vld [vmem:[#allocation7 + $0x10] sm:$0xff]  ;;  %v3196_v43 = vld [vmem:[#allocation7 + $0x20] sm:$0xff] }
 0x309   :  { %v319_v41 = vpop.xlane.xlu0 %318  ;;  %v316_v42 = vpop.xlane.xlu2 %315 }
 0x30a   :  { %v354_v44 = vperm.slane %v316_v42, %v3166_v30  ;;  %v355_v45 = vperm.slane %v319_v41, %v3166_v30  ;;  %v322_v48 = vpop.xlane.xlu1 %321  ;;  %v3194_v42 = vld [vmem:[#allocation7 + $0x8] sm:$0xff] }
 0x30b   :  { %v356_v52 = vperm.slane %v322_v48, %v3166_v30 }
 0x30c   :  { %v365_v47 = vsel %vm364_vm8, %v354_v44, %v363_v46  ;;  %v3198_v44 = vld [vmem:[#allocation7] sm:$0xff] }
 0x30d   :  { %v367_v51 = vsel %vm366_vm9, %v355_v45, %v365_v47  ;;  %v3200_v47 = vld [vmem:[#allocation7 + $0x30] sm:$0xff] }
 0x30e   :  { %v369_v59 = vsel %vm368_vm10, %v356_v52, %v367_v51 }
 0x311   :  { %v338_v53 = vpop.xlane.xlu0 %337  ;;  %v325_v55 = vpop.xlane.xlu2 %324 }
 0x312   :  { %v339_v56 = vadd.f32 %v338_v53, %v3178_v49  ;;  %v357_v57 = vperm.slane %v325_v55, %v3166_v30 }
 0x314   :  { %v371_v60 = vsel %vm370_vm11, %v357_v57, %v369_v59 }
 0x315   :  { %v373_v61 = vadd.f32 %v371_v60, %v339_v56 }
 0x317   :  { %v375_v1 = vsel %vm374_vm12, %v373_v61, -inf }
 0x318   :  { %376 = vmax.xlane.f32.xlu1 %v375_v1 }
 0x38b   :  { %v377_v3 = vpop.xlane.xlu1 %376 }
 0x38c   :  { %v378_v5 = vsub.f32 %v373_v61, %v377_v3 }
 0x38e   :  { %v379_v7 = vmul.f32 1.442695, %v378_v5  ;;  %v3210_v5 = vld [vmem:[#allocation7 + $0x18] sm:$0xff] }
 0x390   :  { %2633 = vpow2.f32 %v379_v7 }
 0x396   :  { %v2634_v8 = vpop.eup %2633 }
 0x397   :  { %v381_v9 = vsel %vm374_vm12, %v2634_v8, 0.0 }
 0x398   :  { %382 = vadd.xlane.f32.xlu2 %v381_v9 }
 0x40b   :  { %v383_v14 = vpop.xlane.xlu2 %382 }
 0x40c   :  { %2635 = vrcp.f32 %v383_v14  ;;  %v395_v18 = vand.u32 2147483648, %v383_v14  ;;  %v393_v20 = vand.u32 2147483647, %v383_v14  ;;  %vm389_vm14 = vweird.f32 %v383_v14 }
 0x40e   :  { %v396_v23 = vor.u32 1.1754944e-38, %v395_v18  ;;  %vm394_vm1 = vcmp.eq.f32.partialorder %v393_v20, 8.507059e+37 }
 0x412   :  { %v2636_v15 = vpop.eup %2635 }
 0x413   :  { %v385_v16 = vmul.f32 %v2636_v15, %v383_v14  ;;  %vm390_vm13 = vweird.f32 %v2636_v15 }
 0x414   :  { %vm391_vm15 = vmor %vm389_vm14, %vm390_vm13 }
 0x415   :  { %v386_v17 = vsub.f32 1.0, %v385_v16 }
 0x417   :  { %v387_v19 = vmul.f32 %v2636_v15, %v386_v17 }
 0x419   :  { %v388_v21 = vadd.f32 %v2636_v15, %v387_v19 }
 0x41b   :  { %v392_v24 = vsel %vm391_vm15, %v2636_v15, %v388_v21 }
 0x41c   :  { %v397_v25 = vsel %vm394_vm1, %v396_v23, %v392_v24 }
 0x41d   :  { %v398_v26 = vmul.f32 %v2634_v8, %v397_v25  ;;  %v3212_v8 = vld [vmem:[#allocation7 + $0x38] sm:$0xff] }
 0x41f   :  { %523 = vst.msk [vmem:[#allocation15] sm:$0xff] %vm374_vm12, %v398_v26  ;;  %v413_v27 = vperm.slane %v398_v26, 2  ;;  %v406_v28 = vperm.slane %v398_v26, 1  ;;  %v399_v29 = vperm.slane %v398_v26, 0  ;;  %v427_v31 = vperm.slane %v398_v26, 4 }
 0x420   :  { %v420_v32 = vperm.slane %v398_v26, 3  ;;  %v448_v34 = vperm.slane %v398_v26, 7  ;;  %v441_v35 = vperm.slane %v398_v26, 6  ;;  %v434_v37 = vperm.slane %v398_v26, 5 }
 0x421   :  { %418 = vperm.xlu2 %2623, %v413_v27   ;;  %411 = vperm.xlu1 %2622, %v406_v28  }
 0x422   :  { %404 = vperm.xlu0 %2621, %v399_v29  }
 0x429   :  { %432 = vperm.xlu2 %2623, %v427_v31   ;;  %425 = vperm.xlu1 %2622, %v420_v32  }
 0x42a   :  { %453 = vperm.xlu0 %2621, %v448_v34   ;;  %v3219_v34 = vld [vmem:[#allocation7 + $0x28] sm:$0xff] }
 0x431   :  { %446 = vperm.xlu2 %2623, %v441_v35   ;;  %439 = vperm.xlu1 %2622, %v434_v37  }
 0x439   :  { %519 = vrot.lane.b32.xlu1 %v3110_v36, %s2985_s19 }
 0x47b   :  { %v419_v38 = vpop.permute.xlu2 %418 }
 0x47c   :  { %v457_v41 = vmul.f32 %v419_v38, %v3191_v40 }
 0x47e   :  { %v477_v51 = vsel %vm164_vm2, %v457_v41, 0.0 }
 0x47f   :  { %v478_v60 = vrot.slane %v477_v51, 4 }
 0x481   :  { %v479_v15 = vadd.f32 %v478_v60, %v477_v51 }
 0x483   :  { %v433_v39 = vpop.permute.xlu2 %432  ;;  %v480_v28 = vrot.slane %v479_v15, 2 }
 0x484   :  { %v459_v52 = vmul.f32 %v433_v39, %v3196_v43 }
 0x486   :  { %v491_v1 = vsel %vm164_vm2, %v459_v52, 0.0 }
 0x487   :  { %v492_v16 = vrot.slane %v491_v1, 4 }
 0x489   :  { %v493_v29 = vadd.f32 %v492_v16, %v491_v1 }
 0x48b   :  { %v447_v46 = vpop.permute.xlu2 %446 }
 0x48c   :  { %v461_v56 = vmul.f32 %v447_v46, %v3200_v47  ;;  %v481_v46 = vadd.f32 %v480_v28, %v479_v15 }
 0x48e   :  { %v505_v9 = vsel %vm164_vm2, %v461_v56, 0.0 }
 0x48f   :  { %v506_v21 = vrot.slane %v505_v9, 4 }
 0x491   :  { %v507_v35 = vadd.f32 %v506_v21, %v505_v9 }
 0x493   :  { %v412_v45 = vpop.permute.xlu1 %411  ;;  %v508_v52 = vrot.slane %v507_v35, 2 }
 0x494   :  { %v456_v48 = vmul.f32 %v412_v45, %v3194_v42  ;;  %v405_v36 = vpop.permute.xlu0 %404 }
 0x495   :  { %v455_v53 = vmul.f32 %v405_v36, %v3198_v44 }
 0x496   :  { %v470_v55 = vsel %vm164_vm2, %v456_v48, 0.0  ;;  %v494_v48 = vrot.slane %v493_v29, 2 }
 0x497   :  { %v471_v57 = vrot.slane %v470_v55, 4  ;;  %v463_v59 = vsel %vm164_vm2, %v455_v53, 0.0 }
 0x498   :  { %v464_v61 = vrot.slane %v463_v59, 4  ;;  %v495_v1 = vadd.f32 %v494_v48, %v493_v29 }
 0x499   :  { %v472_v3 = vadd.f32 %v471_v57, %v470_v55 }
 0x49a   :  { %v465_v7 = vadd.f32 %v464_v61, %v463_v59  ;;  %v482_v61 = vrot.slane %v481_v46, 1 }
 0x49b   :  { %v473_v11 = vrot.slane %v472_v3, 2  ;;  %v426_v14 = vpop.permute.xlu1 %425 }
 0x49c   :  { %v466_v17 = vrot.slane %v465_v7, 2  ;;  %v458_v18 = vmul.f32 %v426_v14, %v3210_v5  ;;  %v454_v19 = vpop.permute.xlu0 %453 }
 0x49d   :  { %v462_v20 = vmul.f32 %v454_v19, %v3212_v8  ;;  %v474_v23 = vadd.f32 %v473_v11, %v472_v3 }
 0x49e   :  { %v484_v24 = vsel %vm164_vm2, %v458_v18, 0.0  ;;  %v467_v25 = vadd.f32 %v466_v17, %v465_v7  ;;  %v509_v7 = vadd.f32 %v508_v52, %v507_v35  ;;  %v483_v17 = vadd.f32 %v482_v61, %v481_v46 }
 0x49f   :  { %v485_v26 = vrot.slane %v484_v24, 4  ;;  %v512_v27 = vsel %vm164_vm2, %v462_v20, 0.0  ;;  %v475_v37 = vrot.slane %v474_v23, 1  ;;  %v496_v18 = vrot.slane %v495_v1, 1 }
 0x4a0   :  { %v513_v31 = vrot.slane %v512_v27, 4  ;;  %v468_v38 = vrot.slane %v467_v25, 1  ;;  %v510_v20 = vrot.slane %v509_v7, 1 }
 0x4a1   :  { %v486_v32 = vadd.f32 %v485_v26, %v484_v24  ;;  %v476_v53 = vadd.f32 %v475_v37, %v474_v23  ;;  %v497_v26 = vadd.f32 %v496_v18, %v495_v1 }
 0x4a2   :  { %v514_v41 = vadd.f32 %v513_v31, %v512_v27  ;;  %v469_v56 = vadd.f32 %v468_v38, %v467_v25  ;;  %v511_v28 = vadd.f32 %v510_v20, %v509_v7  ;;  %v525_v38 = vld [vmem:[#allocation2 + $0x8] sm:$0xff] }
 0x4a3   :  { %v487_v39 = vrot.slane %v486_v32, 2  ;;  %v440_v45 = vpop.permute.xlu1 %439 }
 0x4a4   :  { %v460_v36 = vmul.f32 %v440_v45, %v3219_v34  ;;  %v515_v59 = vrot.slane %v514_v41, 2  ;;  %v534_v9 = vsel %vm358_vm5, %v476_v53, %v469_v56 }
 0x4a5   :  { %v488_v51 = vadd.f32 %v487_v39, %v486_v32  ;;  %v535_v21 = vsel %vm360_vm6, %v483_v17, %v534_v9 }
 0x4a6   :  { %v498_v55 = vsel %vm164_vm2, %v460_v36, 0.0  ;;  %v516_v14 = vadd.f32 %v515_v59, %v514_v41 }
 0x4a7   :  { %v489_v57 = vrot.slane %v488_v51, 1  ;;  %v499_v60 = vrot.slane %v498_v55, 4 }
 0x4a8   :  { %v517_v24 = vrot.slane %v516_v14, 1 }
 0x4a9   :  { %v500_v3 = vadd.f32 %v499_v60, %v498_v55  ;;  %v490_v11 = vadd.f32 %v489_v57, %v488_v51 }
 0x4aa   :  { %v518_v31 = vadd.f32 %v517_v24, %v516_v14 }
 0x4ab   :  { %v501_v15 = vrot.slane %v500_v3, 2  ;;  %v520_v16 = vpop.permute.xlu1 %519  ;;  %v536_v25 = vsel %vm362_vm7, %v490_v11, %v535_v21 }
 0x4ac   :  { %522 = vst.msk [vmem:[#allocation14] sm:$0xff] %vm189_vm0, %v520_v16  ;;  %2589 = vmatmul.msk.f32.vlgmr.msra.gmra.mxu3 %vm189_vm0, %v520_v16  ;;  %v537_v29 = vsel %vm364_vm8, %v497_v26, %v536_v25 }
 0x4ad   :  { %v502_v19 = vadd.f32 %v501_v15, %v500_v3  ;;  %2006 = vmatpush.msra.mxu3 %v3075_v0 }
 0x4af   :  { %v503_v23 = vrot.slane %v502_v19, 1  ;;  %2007 = vmatpush.msra.mxu3 %v3077_v2 }
 0x4b1   :  { %v504_v27 = vadd.f32 %v503_v23, %v502_v19  ;;  %2008 = vmatpush.msra.mxu3 %v3080_v4 }
 0x4b3   :  { %v538_v32 = vsel %vm366_vm9, %v504_v27, %v537_v29  ;;  %2009 = vmatpush.msra.mxu3 %v3084_v6 }
 0x4b4   :  { %v539_v35 = vsel %vm368_vm10, %v511_v28, %v538_v32 }
 0x4b5   :  { %v540_v37 = vsel %vm370_vm11, %v518_v31, %v539_v35 }
 0x4b6   :  { %2588 = vmatmul.msk.f32.vlgmr.msra.gmra.mxu2 %vm164_vm2, %v540_v37 }
 0x4b7   :  { %1649 = vmatpush.msra.mxu2 %v3075_v0 }
 0x4b9   :  { %1650 = vmatpush.msra.mxu2 %v3077_v2 }
 0x4bb   :  { %1651 = vmatpush.msra.mxu2 %v3080_v4 }
 0x4bd   :  { %1652 = vmatpush.msra.mxu2 %v3084_v6 }
 0x52f   :  { %v583_v45 = vpop.f32.mrf.mxu3 }
 0x539   :  { %v560_v39 = vpop.f32.mrf.mxu2 }
 0x53a   :  { %v563_v41 = vadd.f32 %v560_v39, %v525_v38 }
 0x53c   :  { %v586_v46 = vadd.f32 %v583_v45, %v563_v41 }
 0x53e   :  { %2637 = vtanh.f32 %v586_v46  ;;  %v2590_v36 = vmul.f32 -1.442695, %v586_v46 }
 0x540   :  { %2639 = vpow2.f32 %v2590_v36 }
 0x544   :  { %v2638_v48 = vpop.eup %2637 }
 0x545   :  { %609 = vrot.lane.b32.xlu2 %v2638_v48, %s2984_s7 }
 0x546   :  { %v2640_v51 = vpop.eup %2639 }
 0x547   :  { %v590_v52 = vadd.f32 1.0, %v2640_v51 }
 0x549   :  { %2641 = vrcp.f32 %v590_v52  ;;  %v602_v57 = vand.u32 2147483648, %v590_v52  ;;  %vm596_vm4 = vweird.f32 %v590_v52  ;;  %v600_v59 = vand.u32 2147483647, %v590_v52 }
 0x54b   :  { %v603_v61 = vor.u32 1.1754944e-38, %v602_v57  ;;  %vm601_vm14 = vcmp.eq.f32.partialorder %v600_v59, 8.507059e+37 }
 0x54f   :  { %v2642_v0 = vpop.eup %2641 }
 0x550   :  { %v592_v2 = vmul.f32 %v2642_v0, %v590_v52  ;;  %vm597_vm3 = vweird.f32 %v2642_v0 }
 0x551   :  { %vm598_vm13 = vmor %vm596_vm4, %vm597_vm3 }
 0x552   :  { %v593_v53 = vsub.f32 1.0, %v592_v2 }
 0x554   :  { %v594_v55 = vmul.f32 %v2642_v0, %v593_v53 }
 0x556   :  { %v595_v56 = vadd.f32 %v2642_v0, %v594_v55 }
 0x558   :  { %v599_v60 = vsel %vm598_vm13, %v2642_v0, %v595_v56 }
 0x559   :  { %v604_v3 = vsel %vm601_vm14, %v603_v61, %v599_v60 }
 0x55a   :  { %v607_v9 = vmul.f32 %v604_v3, %v3106_v33 }
 0x59f   :  { %v610_v1 = vpop.permute.xlu2 %609 }
 0x5a0   :  { %v612_v7 = vmul.f32 %v610_v1, %v604_v3 }
 0x5a2   :  { %614 = vrot.lane.b32.xlu0 %v612_v7, %s2985_s19 }
 0x614   :  { %v615_v11 = vpop.permute.xlu0 %614 }
 0x615   :  { %v3244_v14 = vadd.f32 %v615_v11, %v607_v9 }
 0x617   :  { %2643 = vtanh.f32 %v3244_v14 }
 0x61d   :  { %v2644_v15 = vpop.eup %2643 }
 0x61e   :  { %620 = vrot.lane.b32.xlu1 %v2644_v15, %s2984_s7 }
 0x690   :  { %v621_v16 = vpop.permute.xlu1 %620 }
 0x691   :  { %v3248_v17 = vmul.f32 %v621_v16, %v604_v3 }
 0x693   :  { %v632_v18 = vperm.slane %v3248_v17, 0  ;;  %v626_v19 = vrot.slane %v3248_v17, 2  ;;  %v625_v20 = vrot.slane %v3248_v17, 1  ;;  %v627_v23 = vrot.slane %v3248_v17, 3 }
 0x694   :  { %v629_v24 = vrot.slane %v3248_v17, 5  ;;  %v628_v25 = vrot.slane %v3248_v17, 4  ;;  %v630_v29 = vrot.slane %v3248_v17, 6  ;;  %v631_v31 = vrot.slane %v3248_v17, 7 }
 0x695   :  { %640 = vrot.lane.b32.xlu2 %v632_v18, %s2985_s19  ;;  %v634_v33 = vperm.slane %v626_v19, 0  ;;  %v633_v21 = vperm.slane %v625_v20, 0  ;;  %v635_v26 = vperm.slane %v627_v23, 0  ;;  %v696_v35 = vmul.f32 %v3248_v17, %v3126_v50 }
 0x696   :  { %v637_v27 = vperm.slane %v629_v24, 0  ;;  %v636_v28 = vperm.slane %v628_v25, 0  ;;  %v638_v32 = vperm.slane %v630_v29, 0  ;;  %v639_v37 = vperm.slane %v631_v31, 0 }
 0x697   :  { %644 = vrot.lane.b32.xlu1 %v634_v33, %s2985_s19  ;;  %642 = vrot.lane.b32.xlu0 %v633_v21, %s2985_s19 }
 0x69d   :  { %646 = vrot.lane.b32.xlu2 %v635_v26, %s2985_s19 }
 0x69f   :  { %650 = vrot.lane.b32.xlu1 %v637_v27, %s2985_s19  ;;  %648 = vrot.lane.b32.xlu0 %v636_v28, %s2985_s19 }
 0x6a5   :  { %652 = vrot.lane.b32.xlu2 %v638_v32, %s2985_s19 }
 0x6a7   :  { %698 = vrot.lane.b32.xlu1 %v696_v35, %s2985_s19  ;;  %654 = vrot.lane.b32.xlu0 %v639_v37, %s2985_s19 }
 0x6ef   :  { %v641_v38 = vpop.permute.xlu2 %640 }
 0x6f0   :  { %v664_v39 = vmul.f32 %v641_v38, %v3133_v54 }
 0x6f2   :  { %v672_v41 = vsel %vm189_vm0, %v664_v39, 0.0 }
 0x6f3   :  { %673 = vadd.xlane.f32.xlu2 %v672_v41 }
 0x6f7   :  { %v647_v45 = vpop.permute.xlu2 %646 }
 0x6f8   :  { %v667_v46 = vmul.f32 %v647_v45, %v3137_v58 }
 0x6fa   :  { %v681_v48 = vsel %vm189_vm0, %v667_v46, 0.0 }
 0x6fb   :  { %682 = vadd.xlane.f32.xlu2 %v681_v48 }
 0x6ff   :  { %v653_v36 = vpop.permute.xlu2 %652 }
 0x700   :  { %v670_v51 = vmul.f32 %v653_v36, %v3149_v10 }
 0x702   :  { %v690_v52 = vsel %vm189_vm0, %v670_v51, 0.0 }
 0x703   :  { %691 = vadd.xlane.f32.xlu2 %v690_v52 }
 0x709   :  { %v645_v0 = vpop.permute.xlu1 %644  ;;  %v643_v2 = vpop.permute.xlu0 %642 }
 0x70a   :  { %v666_v53 = vmul.f32 %v645_v0, %v3141_v62  ;;  %v665_v54 = vmul.f32 %v643_v2, %v3143_v63 }
 0x70c   :  { %v678_v55 = vsel %vm189_vm0, %v666_v53, 0.0  ;;  %v675_v56 = vsel %vm189_vm0, %v665_v54, 0.0 }
 0x70d   :  { %679 = vadd.xlane.f32.xlu1 %v678_v55  ;;  %676 = vadd.xlane.f32.xlu0 %v675_v56 }
 0x711   :  { %v651_v58 = vpop.permute.xlu1 %650  ;;  %v649_v57 = vpop.permute.xlu0 %648 }
 0x712   :  { %v669_v59 = vmul.f32 %v651_v58, %v3151_v12  ;;  %v668_v10 = vmul.f32 %v649_v57, %v3153_v13 }
 0x714   :  { %v687_v60 = vsel %vm189_vm0, %v669_v59, 0.0  ;;  %v684_v61 = vsel %vm189_vm0, %v668_v10, 0.0 }
 0x715   :  { %688 = vadd.xlane.f32.xlu1 %v687_v60  ;;  %685 = vadd.xlane.f32.xlu0 %v684_v61 }
 0x719   :  { %v699_v62 = vpop.permute.xlu1 %698  ;;  %v655_v63 = vpop.permute.xlu0 %654 }
 0x71a   :  { %v671_v1 = vmul.f32 %v655_v63, %v3161_v22  ;;  %v701_v3 = vsel %vm189_vm0, %v699_v62, 0.0 }
 0x71c   :  { %v693_v7 = vsel %vm189_vm0, %v671_v1, 0.0 }
 0x71d   :  { %702 = vadd.xlane.f32.xlu1 %v701_v3  ;;  %694 = vadd.xlane.f32.xlu0 %v693_v7 }
 0x766   :  { %v674_v9 = vpop.xlane.xlu2 %673 }
 0x767   :  { %v713_v15 = vperm.slane %v674_v9, %v3166_v30 }
 0x76e   :  { %v683_v16 = vpop.xlane.xlu2 %682 }
 0x76f   :  { %v716_v21 = vperm.slane %v683_v16, %v3166_v30 }
 0x776   :  { %v692_v27 = vpop.xlane.xlu2 %691 }
 0x777   :  { %v719_v29 = vperm.slane %v692_v27, %v3166_v30 }
 0x780   :  { %v680_v12 = vpop.xlane.xlu1 %679  ;;  %v677_v11 = vpop.xlane.xlu0 %676 }
 0x781   :  { %v714_v13 = vperm.slane %v677_v11, %v3166_v30  ;;  %v715_v18 = vperm.slane %v680_v12, %v3166_v30 }
 0x783   :  { %v721_v19 = vsel %vm358_vm5, %v714_v13, %v713_v15 }
 0x784   :  { %v722_v22 = vsel %vm360_vm6, %v715_v18, %v721_v19  ;;  %v2709_v18 = vld [vmem:[#allocation13 + $0x18] sm:$0xff]  ;;  %v2710_v19 = vld [vmem:[#allocation13 + $0x10] sm:$0xff] }
 0x785   :  { %v723_v25 = vsel %vm362_vm7, %v716_v21, %v722_v22 }
 0x788   :  { %v689_v20 = vpop.xlane.xlu1 %688  ;;  %v686_v33 = vpop.xlane.xlu0 %685 }
 0x789   :  { %v717_v23 = vperm.slane %v686_v33, %v3166_v30  ;;  %v718_v24 = vperm.slane %v689_v20, %v3166_v30 }
 0x78b   :  { %v724_v26 = vsel %vm364_vm8, %v717_v23, %v723_v25 }
 0x78c   :  { %v725_v28 = vsel %vm366_vm9, %v718_v24, %v724_v26 }
 0x78d   :  { %v726_v38 = vsel %vm368_vm10, %v719_v29, %v725_v28 }
 0x790   :  { %v703_v31 = vpop.xlane.xlu1 %702  ;;  %v695_v32 = vpop.xlane.xlu0 %694 }
 0x791   :  { %v704_v35 = vadd.f32 %v703_v31, %v3178_v49  ;;  %v720_v37 = vperm.slane %v695_v32, %v3166_v30 }
 0x793   :  { %v727_v39 = vsel %vm370_vm11, %v720_v37, %v726_v38 }
 0x794   :  { %v729_v41 = vadd.f32 %v727_v39, %v704_v35 }
 0x796   :  { %v730_v45 = vsel %vm374_vm12, %v729_v41, -inf }
 0x797   :  { %731 = vmax.xlane.f32.xlu2 %v730_v45 }
 0x80a   :  { %v732_v46 = vpop.xlane.xlu2 %731 }
 0x80b   :  { %v733_v48 = vsub.f32 %v729_v41, %v732_v46 }
 0x80d   :  { %v734_v36 = vmul.f32 1.442695, %v733_v48 }
 0x80f   :  { %2645 = vpow2.f32 %v734_v36 }
 0x815   :  { %v2646_v51 = vpop.eup %2645 }
 0x816   :  { %v736_v52 = vsel %vm374_vm12, %v2646_v51, 0.0 }
 0x817   :  { %737 = vadd.xlane.f32.xlu0 %v736_v52 }
 0x88a   :  { %v738_v0 = vpop.xlane.xlu0 %737 }
 0x88b   :  { %2647 = vrcp.f32 %v738_v0  ;;  %v750_v54 = vand.u32 2147483648, %v738_v0  ;;  %v748_v56 = vand.u32 2147483647, %v738_v0  ;;  %vm744_vm1 = vweird.f32 %v738_v0 }
 0x88d   :  { %v751_v57 = vor.u32 1.1754944e-38, %v750_v54  ;;  %vm749_vm4 = vcmp.eq.f32.partialorder %v748_v56, 8.507059e+37 }
 0x891   :  { %v2648_v49 = vpop.eup %2647 }
 0x892   :  { %v740_v2 = vmul.f32 %v2648_v49, %v738_v0  ;;  %vm745_vm15 = vweird.f32 %v2648_v49 }
 0x893   :  { %vm746_vm3 = vmor %vm744_vm1, %vm745_vm15 }
 0x894   :  { %v741_v53 = vsub.f32 1.0, %v740_v2 }
 0x896   :  { %v742_v55 = vmul.f32 %v2648_v49, %v741_v53 }
 0x898   :  { %v743_v58 = vadd.f32 %v2648_v49, %v742_v55 }
 0x89a   :  { %v747_v59 = vsel %vm746_vm3, %v2648_v49, %v743_v58 }
 0x89b   :  { %v752_v10 = vsel %vm749_vm4, %v751_v57, %v747_v59 }
 0x89c   :  { %v753_v60 = vmul.f32 %v2646_v51, %v752_v10 }
 0x89e   :  { %880 = vst.msk [vmem:[#allocation15 + $0x8] sm:$0xff] %vm374_vm12, %v753_v60  ;;  %v768_v61 = vperm.slane %v753_v60, 2  ;;  %v761_v62 = vperm.slane %v753_v60, 1  ;;  %v754_v63 = vperm.slane %v753_v60, 0  ;;  %v782_v1 = vperm.slane %v753_v60, 4 }
 0x89f   :  { %v789_v3 = vperm.slane %v753_v60, 5  ;;  %v775_v7 = vperm.slane %v753_v60, 3  ;;  %v803_v9 = vperm.slane %v753_v60, 7  ;;  %v796_v12 = vperm.slane %v753_v60, 6 }
 0x8a0   :  { %773 = vperm.xlu0 %2621, %v768_v61   ;;  %766 = vperm.xlu2 %2623, %v761_v62  }
 0x8a1   :  { %759 = vperm.xlu1 %2622, %v754_v63  }
 0x8a8   :  { %787 = vperm.xlu0 %2621, %v782_v1   ;;  %794 = vperm.xlu2 %2623, %v789_v3  }
 0x8a9   :  { %780 = vperm.xlu1 %2622, %v775_v7  }
 0x8b0   :  { %808 = vperm.xlu0 %2621, %v803_v9   ;;  %874 = vrot.lane.b32.xlu2 %v3248_v17, %s2985_s19 }
 0x8b1   :  { %801 = vperm.xlu1 %2622, %v796_v12  }
 0x8fa   :  { %v767_v11 = vpop.permute.xlu2 %766 }
 0x8fb   :  { %v811_v16 = vmul.f32 %v767_v11, %v3194_v42 }
 0x8fd   :  { %v825_v22 = vsel %vm164_vm2, %v811_v16, 0.0 }
 0x8fe   :  { %v826_v20 = vrot.slane %v825_v22, 4 }
 0x900   :  { %v827_v25 = vadd.f32 %v826_v20, %v825_v22 }
 0x902   :  { %v795_v13 = vpop.permute.xlu2 %794  ;;  %v828_v32 = vrot.slane %v827_v25, 2 }
 0x903   :  { %v815_v23 = vmul.f32 %v795_v13, %v3219_v34 }
 0x904   :  { %v829_v46 = vadd.f32 %v828_v32, %v827_v25 }
 0x906   :  { %v830_v54 = vrot.slane %v829_v46, 1 }
 0x908   :  { %v831_v3 = vadd.f32 %v830_v54, %v829_v46 }
 0x90a   :  { %v875_v15 = vpop.permute.xlu2 %874 }
 0x90b   :  { %878 = vst.msk [vmem:[#allocation14 + $0x8] sm:$0xff] %vm189_vm0, %v875_v15  ;;  %2592 = vmatmul.msk.f32.vlgmr.msrb.gmra.mxu2 %vm189_vm0, %v875_v15 }
 0x90c   :  { %2363 = vmatpush.msrb.mxu2 %v2709_v18 }
 0x90e   :  { %2364 = vmatpush.msrb.mxu2 %v2710_v19 }
 0x910   :  { %2365 = vmatpush.msrb.mxu2 %v3080_v4  ;;  %v853_v4 = vsel %vm164_vm2, %v815_v23, 0.0 }
 0x911   :  { %v854_v38 = vrot.slane %v853_v4, 4 }
 0x912   :  { %v774_v17 = vpop.permute.xlu0 %773  ;;  %2366 = vmatpush.msrb.mxu2 %v3084_v6 }
 0x913   :  { %v812_v33 = vmul.f32 %v774_v17, %v3191_v40  ;;  %v760_v21 = vpop.permute.xlu1 %759  ;;  %v855_v0 = vadd.f32 %v854_v38, %v853_v4 }
 0x914   :  { %v810_v42 = vmul.f32 %v760_v21, %v3198_v44 }
 0x915   :  { %v832_v24 = vsel %vm164_vm2, %v812_v33, 0.0  ;;  %v856_v10 = vrot.slane %v855_v0, 2 }
 0x916   :  { %v833_v26 = vrot.slane %v832_v24, 4  ;;  %v818_v27 = vsel %vm164_vm2, %v810_v42, 0.0 }
 0x917   :  { %v819_v28 = vrot.slane %v818_v27, 4  ;;  %v857_v16 = vadd.f32 %v856_v10, %v855_v0 }
 0x918   :  { %v834_v29 = vadd.f32 %v833_v26, %v832_v24 }
 0x919   :  { %v820_v31 = vadd.f32 %v819_v28, %v818_v27  ;;  %v858_v21 = vrot.slane %v857_v16, 1 }
 0x91a   :  { %v788_v6 = vpop.permute.xlu0 %787  ;;  %v835_v35 = vrot.slane %v834_v29, 2 }
 0x91b   :  { %v821_v40 = vrot.slane %v820_v31, 2  ;;  %v814_v37 = vmul.f32 %v788_v6, %v3196_v43  ;;  %v781_v44 = vpop.permute.xlu1 %780  ;;  %v859_v28 = vadd.f32 %v858_v21, %v857_v16 }
 0x91c   :  { %v813_v39 = vmul.f32 %v781_v44, %v3210_v5  ;;  %v836_v51 = vadd.f32 %v835_v35, %v834_v29  ;;  %v2711_v35 = vld [vmem:[#allocation11 + $0x8] sm:$0xff] }
 0x91d   :  { %v822_v41 = vadd.f32 %v821_v40, %v820_v31  ;;  %v846_v45 = vsel %vm164_vm2, %v814_v37, 0.0  ;;  %v2712_v40 = vld [vmem:[#allocation11] sm:$0xff]  ;;  %v882_v37 = vld [vmem:[#allocation2 + $0x10] sm:$0xff] }
 0x91e   :  { %v847_v48 = vrot.slane %v846_v45, 4  ;;  %v839_v36 = vsel %vm164_vm2, %v813_v39, 0.0  ;;  %v837_v56 = vrot.slane %v836_v51, 1 }
 0x91f   :  { %v840_v52 = vrot.slane %v839_v36, 4  ;;  %v823_v49 = vrot.slane %v822_v41, 1 }
 0x920   :  { %v848_v2 = vadd.f32 %v847_v48, %v846_v45  ;;  %v838_v12 = vadd.f32 %v837_v56, %v836_v51 }
 0x921   :  { %v841_v53 = vadd.f32 %v840_v52, %v839_v36  ;;  %v824_v60 = vadd.f32 %v823_v49, %v822_v41 }
 0x922   :  { %v849_v55 = vrot.slane %v848_v2, 2  ;;  %v809_v43 = vpop.permute.xlu0 %808 }
 0x923   :  { %v842_v58 = vrot.slane %v841_v53, 2  ;;  %v817_v57 = vmul.f32 %v809_v43, %v3212_v8  ;;  %v802_v59 = vpop.permute.xlu1 %801  ;;  %v891_v8 = vsel %vm358_vm5, %v831_v3, %v824_v60 }
 0x924   :  { %v850_v61 = vadd.f32 %v849_v55, %v848_v2  ;;  %v816_v62 = vmul.f32 %v802_v59, %v3200_v47  ;;  %v892_v33 = vsel %vm360_vm6, %v838_v12, %v891_v8 }
 0x925   :  { %v843_v63 = vadd.f32 %v842_v58, %v841_v53  ;;  %v867_v1 = vsel %vm164_vm2, %v817_v57, 0.0 }
 0x926   :  { %v868_v7 = vrot.slane %v867_v1, 4  ;;  %v860_v9 = vsel %vm164_vm2, %v816_v62, 0.0  ;;  %v851_v11 = vrot.slane %v850_v61, 1 }
 0x927   :  { %v844_v13 = vrot.slane %v843_v63, 1  ;;  %v861_v15 = vrot.slane %v860_v9, 4 }
 0x928   :  { %v869_v18 = vadd.f32 %v868_v7, %v867_v1  ;;  %v852_v17 = vadd.f32 %v851_v11, %v850_v61 }
 0x929   :  { %v845_v19 = vadd.f32 %v844_v13, %v843_v63  ;;  %v862_v22 = vadd.f32 %v861_v15, %v860_v9 }
 0x92a   :  { %v870_v20 = vrot.slane %v869_v18, 2 }
 0x92b   :  { %v863_v47 = vrot.slane %v862_v22, 2  ;;  %v893_v23 = vsel %vm362_vm7, %v845_v19, %v892_v33  ;;  %v3363_v33 = vld [vmem:[#allocation10 + $0x10] sm:$0xff] }
 0x92c   :  { %v871_v42 = vadd.f32 %v870_v20, %v869_v18  ;;  %v894_v27 = vsel %vm364_vm8, %v852_v17, %v893_v23 }
 0x92d   :  { %v864_v24 = vadd.f32 %v863_v47, %v862_v22  ;;  %v895_v31 = vsel %vm366_vm9, %v859_v28, %v894_v27 }
 0x92e   :  { %v872_v25 = vrot.slane %v871_v42, 1 }
 0x92f   :  { %v865_v26 = vrot.slane %v864_v24, 1 }
 0x930   :  { %v873_v29 = vadd.f32 %v872_v25, %v871_v42 }
 0x931   :  { %v866_v4 = vadd.f32 %v865_v26, %v864_v24  ;;  %v3367_v24 = vld [vmem:[#allocation10 + $0x28] sm:$0xff] }
 0x933   :  { %v896_v32 = vsel %vm368_vm10, %v866_v4, %v895_v31  ;;  %v3372_v4 = vld [vmem:[#allocation10] sm:$0xff] }
 0x934   :  { %v897_v6 = vsel %vm370_vm11, %v873_v29, %v896_v32 }
 0x935   :  { %2591 = vmatmul.msk.f32.vlgmr.msrb.gmra.mxu0 %vm164_vm2, %v897_v6  ;;  %v3375_v6 = vld [vmem:[#allocation10 + $0x8] sm:$0xff] }
 0x936   :  { %2342 = vmatpush.msrb.mxu0 %v2711_v35 }
 0x938   :  { %2343 = vmatpush.msrb.mxu0 %v2712_v40 }
 0x98e   :  { %v940_v39 = vpop.f32.mrf.mxu2 }
 0x9b2   :  { %v917_v44 = vpop.f32.mrf.mxu0 }
 0x9b3   :  { %v920_v38 = vadd.f32 %v917_v44, %v882_v37 }
 0x9b5   :  { %v943_v41 = vadd.f32 %v940_v39, %v920_v38  ;;  %v3380_v38 = vld [vmem:[#allocation10 + $0x18] sm:$0xff] }
 0x9b7   :  { %2649 = vtanh.f32 %v943_v41  ;;  %v2593_v46 = vmul.f32 -1.442695, %v943_v41 }
 0x9b9   :  { %2651 = vpow2.f32 %v2593_v46 }
 0x9bd   :  { %v2650_v45 = vpop.eup %2649 }
 0x9be   :  { %966 = vrot.lane.b32.xlu1 %v2650_v45, %s2984_s7  ;;  %v3383_v45 = vld [vmem:[#allocation10 + $0x20] sm:$0xff] }
 0x9bf   :  { %v2652_v48 = vpop.eup %2651 }
 0x9c0   :  { %v947_v36 = vadd.f32 1.0, %v2652_v48 }
 0x9c2   :  { %2653 = vrcp.f32 %v947_v36  ;;  %v959_v53 = vand.u32 2147483648, %v947_v36  ;;  %vm953_vm14 = vweird.f32 %v947_v36  ;;  %v957_v54 = vand.u32 2147483647, %v947_v36 }
 0x9c4   :  { %v960_v43 = vor.u32 1.1754944e-38, %v959_v53  ;;  %vm958_vm1 = vcmp.eq.f32.partialorder %v957_v54, 8.507059e+37 }
 0x9c8   :  { %v2654_v51 = vpop.eup %2653 }
 0x9c9   :  { %v949_v52 = vmul.f32 %v2654_v51, %v947_v36  ;;  %vm954_vm13 = vweird.f32 %v2654_v51 }
 0x9ca   :  { %vm955_vm15 = vmor %vm953_vm14, %vm954_vm13 }
 0x9cb   :  { %v950_v0 = vsub.f32 1.0, %v949_v52  ;;  %v3388_v52 = vld [vmem:[#allocation10 + $0x30] sm:$0xff] }
 0x9cd   :  { %v951_v49 = vmul.f32 %v2654_v51, %v950_v0 }
 0x9cf   :  { %v952_v2 = vadd.f32 %v2654_v51, %v951_v49 }
 0x9d1   :  { %v956_v55 = vsel %vm955_vm15, %v2654_v51, %v952_v2  ;;  %v3391_v2 = vld [vmem:[#allocation10 + $0x38] sm:$0xff] }
 0x9d2   :  { %v961_v58 = vsel %vm958_vm1, %v960_v43, %v956_v55 }
 0x9d3   :  { %v964_v59 = vmul.f32 %v961_v58, %v3244_v14 }
 0xa30   :  { %v967_v56 = vpop.permute.xlu1 %966 }
 0xa31   :  { %v969_v57 = vmul.f32 %v967_v56, %v961_v58 }
 0xa33   :  { %971 = vrot.lane.b32.xlu0 %v969_v57, %s2985_s19 }
 0xaa5   :  { %v972_v10 = vpop.permute.xlu0 %971 }
 0xaa6   :  { %v3338_v60 = vadd.f32 %v972_v10, %v964_v59 }
 0xaa8   :  { %2655 = vtanh.f32 %v3338_v60 }
 0xaae   :  { %v2656_v61 = vpop.eup %2655 }
 0xaaf   :  { %977 = vrot.lane.b32.xlu2 %v2656_v61, %s2984_s7 }
 0xb09   :  { %v978_v62 = vpop.permute.xlu2 %977 }
 0xb0a   :  { %v3342_v63 = vmul.f32 %v978_v62, %v961_v58 }
 0xb0c   :  { %v989_v1 = vperm.slane %v3342_v63, 0  ;;  %v983_v3 = vrot.slane %v3342_v63, 2  ;;  %v982_v7 = vrot.slane %v3342_v63, 1  ;;  %v984_v12 = vrot.slane %v3342_v63, 3 }
 0xb0d   :  { %v986_v11 = vrot.slane %v3342_v63, 5  ;;  %v985_v13 = vrot.slane %v3342_v63, 4  ;;  %v987_v18 = vrot.slane %v3342_v63, 6  ;;  %v988_v19 = vrot.slane %v3342_v63, 7 }
 0xb0e   :  { %997 = vrot.lane.b32.xlu1 %v989_v1, %s2985_s19  ;;  %v991_v14 = vperm.slane %v983_v3, 0  ;;  %v990_v9 = vperm.slane %v982_v7, 0  ;;  %v992_v15 = vperm.slane %v984_v12, 0  ;;  %v1053_v20 = vmul.f32 %v3342_v63, %v3126_v50 }
 0xb0f   :  { %v994_v16 = vperm.slane %v986_v11, 0  ;;  %v993_v8 = vperm.slane %v985_v13, 0  ;;  %v995_v22 = vperm.slane %v987_v18, 0  ;;  %v996_v17 = vperm.slane %v988_v19, 0 }
 0xb10   :  { %1001 = vrot.lane.b32.xlu2 %v991_v14, %s2985_s19  ;;  %999 = vrot.lane.b32.xlu0 %v990_v9, %s2985_s19 }
 0xb16   :  { %1003 = vrot.lane.b32.xlu1 %v992_v15, %s2985_s19 }
 0xb18   :  { %1007 = vrot.lane.b32.xlu2 %v994_v16, %s2985_s19  ;;  %1005 = vrot.lane.b32.xlu0 %v993_v8, %s2985_s19 }
 0xb1e   :  { %1009 = vrot.lane.b32.xlu1 %v995_v22, %s2985_s19 }
 0xb20   :  { %1055 = vrot.lane.b32.xlu2 %v1053_v20, %s2985_s19  ;;  %1011 = vrot.lane.b32.xlu0 %v996_v17, %s2985_s19  ;;  %v3410_v17 = vld [vmem:[#allocation8] sm:$0xff] }
 0xb6a   :  { %v1002_v47 = vpop.permute.xlu2 %1001 }
 0xb6b   :  { %v1023_v21 = vmul.f32 %v3363_v33, %v1002_v47 }
 0xb6d   :  { %v1035_v42 = vsel %vm189_vm0, %v1023_v21, 0.0 }
 0xb6e   :  { %1036 = vadd.xlane.f32.xlu2 %v1035_v42 }
 0xb72   :  { %v1008_v23 = vpop.permute.xlu2 %1007 }
 0xb73   :  { %v1026_v25 = vmul.f32 %v3367_v24, %v1008_v23 }
 0xb75   :  { %v1044_v26 = vsel %vm189_vm0, %v1026_v25, 0.0 }
 0xb76   :  { %1045 = vadd.xlane.f32.xlu2 %v1044_v26 }
 0xb7a   :  { %v1056_v27 = vpop.permute.xlu2 %1055 }
 0xb7b   :  { %v1058_v28 = vsel %vm189_vm0, %v1056_v27, 0.0 }
 0xb7e   :  { %1059 = vadd.xlane.f32.xlu2 %v1058_v28 }
 0xb80   :  { %v998_v29 = vpop.permute.xlu1 %997 }
 0xb81   :  { %v1021_v31 = vmul.f32 %v3372_v4, %v998_v29 }
 0xb82   :  { %v1000_v32 = vpop.permute.xlu0 %999 }
 0xb83   :  { %v1022_v35 = vmul.f32 %v3375_v6, %v1000_v32  ;;  %v1029_v40 = vsel %vm189_vm0, %v1021_v31, 0.0 }
 0xb84   :  { %1030 = vadd.xlane.f32.xlu1 %v1029_v40 }
 0xb85   :  { %v1032_v37 = vsel %vm189_vm0, %v1022_v35, 0.0 }
 0xb86   :  { %1033 = vadd.xlane.f32.xlu0 %v1032_v37 }
 0xb88   :  { %v1004_v44 = vpop.permute.xlu1 %1003 }
 0xb89   :  { %v1024_v39 = vmul.f32 %v3380_v38, %v1004_v44 }
 0xb8a   :  { %v1006_v41 = vpop.permute.xlu0 %1005 }
 0xb8b   :  { %v1025_v46 = vmul.f32 %v3383_v45, %v1006_v41  ;;  %v1038_v48 = vsel %vm189_vm0, %v1024_v39, 0.0 }
 0xb8c   :  { %1039 = vadd.xlane.f32.xlu1 %v1038_v48 }
 0xb8d   :  { %v1041_v36 = vsel %vm189_vm0, %v1025_v46, 0.0 }
 0xb8e   :  { %1042 = vadd.xlane.f32.xlu0 %v1041_v36 }
 0xb90   :  { %v1010_v51 = vpop.permute.xlu1 %1009 }
 0xb91   :  { %v1027_v0 = vmul.f32 %v3388_v52, %v1010_v51 }
 0xb92   :  { %v1012_v49 = vpop.permute.xlu0 %1011 }
 0xb93   :  { %v1028_v53 = vmul.f32 %v3391_v2, %v1012_v49  ;;  %v1047_v54 = vsel %vm189_vm0, %v1027_v0, 0.0 }
 0xb94   :  { %1048 = vadd.xlane.f32.xlu1 %v1047_v54 }
 0xb95   :  { %v1050_v55 = vsel %vm189_vm0, %v1028_v53, 0.0 }
 0xb96   :  { %1051 = vadd.xlane.f32.xlu0 %v1050_v55 }
 0xbe1   :  { %v1037_v43 = vpop.xlane.xlu2 %1036 }
 0xbe2   :  { %v1072_v1 = vperm.slane %v1037_v43, %v3166_v30 }
 0xbe9   :  { %v1046_v10 = vpop.xlane.xlu2 %1045 }
 0xbea   :  { %v1075_v13 = vperm.slane %v1046_v10, %v3166_v30 }
 0xbf1   :  { %v1060_v16 = vpop.xlane.xlu2 %1059 }
 0xbf2   :  { %v1061_v47 = vadd.f32 %v3410_v17, %v1060_v16 }
 0xbf7   :  { %v1031_v56 = vpop.xlane.xlu1 %1030 }
 0xbf8   :  { %v1070_v59 = vperm.slane %v1031_v56, %v3166_v30 }
 0xbf9   :  { %v1034_v58 = vpop.xlane.xlu0 %1033 }
 0xbfa   :  { %v1071_v57 = vperm.slane %v1034_v58, %v3166_v30 }
 0xbfc   :  { %v1078_v61 = vsel %vm358_vm5, %v1071_v57, %v1070_v59  ;;  %v3419_v59 = vld [vmem:[#allocation7] sm:$0xff] }
 0xbfd   :  { %v1079_v14 = vsel %vm360_vm6, %v1072_v1, %v1078_v61 }
 0xbff   :  { %v1040_v62 = vpop.xlane.xlu1 %1039 }
 0xc00   :  { %v1073_v3 = vperm.slane %v1040_v62, %v3166_v30 }
 0xc01   :  { %v1043_v7 = vpop.xlane.xlu0 %1042 }
 0xc02   :  { %v1074_v9 = vperm.slane %v1043_v7, %v3166_v30  ;;  %v1080_v12 = vsel %vm362_vm7, %v1073_v3, %v1079_v14 }
 0xc04   :  { %v1081_v11 = vsel %vm364_vm8, %v1074_v9, %v1080_v12 }
 0xc05   :  { %v1082_v18 = vsel %vm366_vm9, %v1075_v13, %v1081_v11  ;;  %v3425_v13 = vld [vmem:[#allocation7 + $0x10] sm:$0xff] }
 0xc07   :  { %v1049_v15 = vpop.xlane.xlu1 %1048 }
 0xc08   :  { %v1076_v8 = vperm.slane %v1049_v15, %v3166_v30  ;;  %v3428_v15 = vld [vmem:[#allocation7 + $0x8] sm:$0xff] }
 0xc09   :  { %v1052_v19 = vpop.xlane.xlu0 %1051 }
 0xc0a   :  { %v1083_v22 = vsel %vm368_vm10, %v1076_v8, %v1082_v18  ;;  %v1077_v20 = vperm.slane %v1052_v19, %v3166_v30  ;;  %v3431_v18 = vld [vmem:[#allocation7 + $0x30] sm:$0xff] }
 0xc0c   :  { %v1084_v21 = vsel %vm370_vm11, %v1077_v20, %v1083_v22 }
 0xc0d   :  { %v1086_v42 = vadd.f32 %v1084_v21, %v1061_v47 }
 0xc0f   :  { %v1087_v23 = vsel %vm374_vm12, %v1086_v42, -inf }
 0xc10   :  { %1088 = vmax.xlane.f32.xlu1 %v1087_v23 }
 0xc83   :  { %v1089_v25 = vpop.xlane.xlu1 %1088 }
 0xc84   :  { %v1090_v26 = vsub.f32 %v1086_v42, %v1089_v25 }
 0xc86   :  { %v1091_v27 = vmul.f32 1.442695, %v1090_v26 }
 0xc88   :  { %2657 = vpow2.f32 %v1091_v27 }
 0xc8e   :  { %v2658_v28 = vpop.eup %2657 }
 0xc8f   :  { %v1093_v29 = vsel %vm374_vm12, %v2658_v28, 0.0 }
 0xc90   :  { %1094 = vadd.xlane.f32.xlu0 %v1093_v29 }
 0xd03   :  { %v1095_v31 = vpop.xlane.xlu0 %1094 }
 0xd04   :  { %2659 = vrcp.f32 %v1095_v31  ;;  %v1107_v37 = vand.u32 2147483648, %v1095_v31  ;;  %v1105_v39 = vand.u32 2147483647, %v1095_v31  ;;  %vm1101_vm4 = vweird.f32 %v1095_v31 }
 0xd06   :  { %v1108_v46 = vor.u32 1.1754944e-38, %v1107_v37  ;;  %vm1106_vm14 = vcmp.eq.f32.partialorder %v1105_v39, 8.507059e+37 }
 0xd0a   :  { %v2660_v32 = vpop.eup %2659 }
 0xd0b   :  { %v1097_v35 = vmul.f32 %v2660_v32, %v1095_v31  ;;  %vm1102_vm3 = vweird.f32 %v2660_v32 }
 0xd0c   :  { %vm1103_vm13 = vmor %vm1101_vm4, %vm1102_vm3 }
 0xd0d   :  { %v1098_v40 = vsub.f32 1.0, %v1097_v35 }
 0xd0f   :  { %v1099_v44 = vmul.f32 %v2660_v32, %v1098_v40  ;;  %v3437_v40 = vld [vmem:[#allocation7 + $0x20] sm:$0xff] }
 0xd11   :  { %v1100_v41 = vadd.f32 %v2660_v32, %v1099_v44 }
 0xd13   :  { %v1104_v48 = vsel %vm1103_vm13, %v2660_v32, %v1100_v41 }
 0xd14   :  { %v1109_v36 = vsel %vm1106_vm14, %v1108_v46, %v1104_v48 }
 0xd15   :  { %v1110_v51 = vmul.f32 %v2658_v28, %v1109_v36 }
 0xd17   :  { %1237 = vst.msk [vmem:[#allocation15 + $0x10] sm:$0xff] %vm374_vm12, %v1110_v51  ;;  %v1125_v0 = vperm.slane %v1110_v51, 2  ;;  %v1118_v49 = vperm.slane %v1110_v51, 1  ;;  %v1111_v53 = vperm.slane %v1110_v51, 0  ;;  %v1139_v54 = vperm.slane %v1110_v51, 4 }
 0xd18   :  { %v1146_v55 = vperm.slane %v1110_v51, 5  ;;  %v1132_v43 = vperm.slane %v1110_v51, 3  ;;  %v1160_v56 = vperm.slane %v1110_v51, 7  ;;  %v1153_v58 = vperm.slane %v1110_v51, 6 }
 0xd19   :  { %1130 = vperm.xlu0 %2621, %v1125_v0   ;;  %1123 = vperm.xlu1 %2622, %v1118_v49  }
 0xd1a   :  { %1116 = vperm.xlu2 %2623, %v1111_v53  }
 0xd21   :  { %1144 = vperm.xlu0 %2621, %v1139_v54   ;;  %1151 = vperm.xlu1 %2622, %v1146_v55  }
 0xd22   :  { %1137 = vperm.xlu2 %2623, %v1132_v43  }
 0xd29   :  { %1165 = vperm.xlu0 %2621, %v1160_v56   ;;  %1231 = vrot.lane.b32.xlu1 %v3342_v63, %s2985_s19 }
 0xd2a   :  { %1158 = vperm.xlu2 %2623, %v1153_v58  }
 0xd74   :  { %v1117_v57 = vpop.permute.xlu2 %1116 }
 0xd75   :  { %v1167_v10 = vmul.f32 %v3419_v59, %v1117_v57 }
 0xd77   :  { %v1175_v62 = vsel %vm164_vm2, %v1167_v10, 0.0 }
 0xd78   :  { %v1176_v3 = vrot.slane %v1175_v62, 4 }
 0xd7a   :  { %v1177_v9 = vadd.f32 %v1176_v3, %v1175_v62 }
 0xd7c   :  { %v1138_v61 = vpop.permute.xlu2 %1137  ;;  %v1178_v20 = vrot.slane %v1177_v9, 2 }
 0xd7d   :  { %v1170_v1 = vmul.f32 %v1138_v61, %v3210_v5 }
 0xd7e   :  { %v1179_v27 = vadd.f32 %v1178_v20, %v1177_v9 }
 0xd7f   :  { %v1196_v7 = vsel %vm164_vm2, %v1170_v1, 0.0 }
 0xd80   :  { %v1197_v8 = vrot.slane %v1196_v7, 4  ;;  %v1180_v51 = vrot.slane %v1179_v27, 1 }
 0xd82   :  { %v1198_v42 = vadd.f32 %v1197_v8, %v1196_v7  ;;  %v1181_v10 = vadd.f32 %v1180_v51, %v1179_v27 }
 0xd84   :  { %v1159_v14 = vpop.permute.xlu2 %1158  ;;  %v1199_v39 = vrot.slane %v1198_v42, 2 }
 0xd85   :  { %v1173_v5 = vmul.f32 %v3431_v18, %v1159_v14  ;;  %v3443_v14 = vld [vmem:[#allocation7 + $0x38] sm:$0xff] }
 0xd86   :  { %v1200_v43 = vadd.f32 %v1199_v39, %v1198_v42 }
 0xd87   :  { %v1217_v23 = vsel %vm164_vm2, %v1173_v5, 0.0 }
 0xd88   :  { %v1218_v35 = vrot.slane %v1217_v23, 4 }
 0xd8a   :  { %v1219_v54 = vadd.f32 %v1218_v35, %v1217_v23 }
 0xd8b   :  { %v1131_v12 = vpop.permute.xlu0 %1130  ;;  %v1124_v11 = vpop.permute.xlu1 %1123 }
 0xd8c   :  { %v1169_v63 = vmul.f32 %v3425_v13, %v1131_v12  ;;  %v1168_v16 = vmul.f32 %v3428_v15, %v1124_v11  ;;  %v1220_v3 = vrot.slane %v1219_v54, 2  ;;  %v1201_v12 = vrot.slane %v1200_v43, 1 }
 0xd8e   :  { %v1189_v19 = vsel %vm164_vm2, %v1169_v63, 0.0  ;;  %v1182_v22 = vsel %vm164_vm2, %v1168_v16, 0.0  ;;  %v1221_v20 = vadd.f32 %v1220_v3, %v1219_v54 }
 0xd8f   :  { %v1190_v47 = vrot.slane %v1189_v19, 4  ;;  %v1183_v21 = vrot.slane %v1182_v22, 4 }
 0xd91   :  { %v1191_v25 = vadd.f32 %v1190_v47, %v1189_v19  ;;  %v1184_v26 = vadd.f32 %v1183_v21, %v1182_v22  ;;  %v1202_v21 = vadd.f32 %v1201_v12, %v1200_v43 }
 0xd93   :  { %v1192_v28 = vrot.slane %v1191_v25, 2  ;;  %v1185_v29 = vrot.slane %v1184_v26, 2  ;;  %v1145_v31 = vpop.permute.xlu0 %1144  ;;  %v1152_v32 = vpop.permute.xlu1 %1151 }
 0xd94   :  { %v1171_v37 = vmul.f32 %v3437_v40, %v1145_v31  ;;  %v1172_v44 = vmul.f32 %v1152_v32, %v3219_v34 }
 0xd95   :  { %v1193_v41 = vadd.f32 %v1192_v28, %v1191_v25  ;;  %v1186_v46 = vadd.f32 %v1185_v29, %v1184_v26  ;;  %v1222_v28 = vrot.slane %v1221_v20, 1 }
 0xd96   :  { %v1203_v48 = vsel %vm164_vm2, %v1171_v37, 0.0  ;;  %v1210_v36 = vsel %vm164_vm2, %v1172_v44, 0.0 }
 0xd97   :  { %v1187_v0 = vrot.slane %v1186_v46, 1  ;;  %v1204_v49 = vrot.slane %v1203_v48, 4  ;;  %v1211_v53 = vrot.slane %v1210_v36, 4  ;;  %v1194_v55 = vrot.slane %v1193_v41, 1 }
 0xd98   :  { %v1223_v37 = vadd.f32 %v1222_v28, %v1221_v20 }
 0xd99   :  { %v1188_v56 = vadd.f32 %v1187_v0, %v1186_v46  ;;  %v1205_v58 = vadd.f32 %v1204_v49, %v1203_v48  ;;  %v1212_v57 = vadd.f32 %v1211_v53, %v1210_v36  ;;  %v1195_v7 = vadd.f32 %v1194_v55, %v1193_v41  ;;  %v1239_v46 = vld [vmem:[#allocation2 + $0x18] sm:$0xff] }
 0xd9b   :  { %v1206_v61 = vrot.slane %v1205_v58, 2  ;;  %v1213_v34 = vrot.slane %v1212_v57, 2  ;;  %v1166_v62 = vpop.permute.xlu0 %1165  ;;  %v1232_v1 = vpop.permute.xlu1 %1231  ;;  %v1248_v11 = vsel %vm358_vm5, %v1188_v56, %v1181_v10 }
 0xd9c   :  { %v1174_v9 = vmul.f32 %v3443_v14, %v1166_v62  ;;  %1235 = vst.msk [vmem:[#allocation14 + $0x10] sm:$0xff] %vm189_vm0, %v1232_v1  ;;  %2595 = vmatmul.msk.f32.vlgmr.msrb.gmra.mxu3 %vm189_vm0, %v1232_v1  ;;  %v1249_v47 = vsel %vm360_vm6, %v1195_v7, %v1248_v11 }
 0xd9d   :  { %v1207_v63 = vadd.f32 %v1206_v61, %v1205_v58  ;;  %v1214_v16 = vadd.f32 %v1213_v34, %v1212_v57  ;;  %v1250_v27 = vsel %vm362_vm7, %v1202_v21, %v1249_v47 }
 0xd9e   :  { %v1224_v8 = vsel %vm164_vm2, %v1174_v9, 0.0 }
 0xd9f   :  { %v1208_v5 = vrot.slane %v1207_v63, 1  ;;  %v1215_v19 = vrot.slane %v1214_v16, 1  ;;  %v1225_v22 = vrot.slane %v1224_v8, 4 }
 0xda1   :  { %v1209_v42 = vadd.f32 %v1208_v5, %v1207_v63  ;;  %v1226_v23 = vadd.f32 %v1225_v22, %v1224_v8  ;;  %v1216_v25 = vadd.f32 %v1215_v19, %v1214_v16 }
 0xda3   :  { %v1227_v26 = vrot.slane %v1226_v23, 2  ;;  %v1251_v29 = vsel %vm364_vm8, %v1209_v42, %v1250_v27 }
 0xda4   :  { %v1252_v35 = vsel %vm366_vm9, %v1216_v25, %v1251_v29 }
 0xda5   :  { %v1228_v31 = vadd.f32 %v1227_v26, %v1226_v23  ;;  %v1253_v39 = vsel %vm368_vm10, %v1223_v37, %v1252_v35 }
 0xda7   :  { %v1229_v32 = vrot.slane %v1228_v31, 1 }
 0xda9   :  { %v1230_v44 = vadd.f32 %v1229_v32, %v1228_v31 }
 0xdab   :  { %v1254_v41 = vsel %vm370_vm11, %v1230_v44, %v1253_v39 }
 0xdac   :  { %2594 = vmatmul.msk.f32.vlgmr.msrb.gmra.mxu1 %vm164_vm2, %v1254_v41 }
 0xe1f   :  { %v1297_v51 = vpop.f32.mrf.mxu3 }
 0xe29   :  { %v1274_v48 = vpop.f32.mrf.mxu1 }
 0xe2a   :  { %v1277_v36 = vadd.f32 %v1274_v48, %v1239_v46 }
 0xe2c   :  { %v1300_v0 = vadd.f32 %v1297_v51, %v1277_v36 }
 0xe2e   :  { %2661 = vtanh.f32 %v1300_v0  ;;  %v2596_v53 = vmul.f32 -1.442695, %v1300_v0 }
 0xe30   :  { %2663 = vpow2.f32 %v2596_v53 }
 0xe34   :  { %v2662_v49 = vpop.eup %2661 }
 0xe35   :  { %1323 = vrot.lane.b32.xlu2 %v2662_v49, %s2984_s7 }
 0xe36   :  { %v2664_v54 = vpop.eup %2663 }
 0xe37   :  { %v1304_v55 = vadd.f32 1.0, %v2664_v54 }
 0xe39   :  { %2665 = vrcp.f32 %v1304_v55  ;;  %v1316_v61 = vand.u32 2147483648, %v1304_v55  ;;  %vm1310_vm1 = vweird.f32 %v1304_v55  ;;  %v1314_v34 = vand.u32 2147483647, %v1304_v55 }
 0xe3b   :  { %v1317_v1 = vor.u32 1.1754944e-38, %v1316_v61  ;;  %vm1315_vm4 = vcmp.eq.f32.partialorder %v1314_v34, 8.507059e+37 }
 0xe3f   :  { %v2666_v43 = vpop.eup %2665 }
 0xe40   :  { %v1306_v56 = vmul.f32 %v2666_v43, %v1304_v55  ;;  %vm1311_vm15 = vweird.f32 %v2666_v43 }
 0xe41   :  { %vm1312_vm3 = vmor %vm1310_vm1, %vm1311_vm15 }
 0xe42   :  { %v1307_v58 = vsub.f32 1.0, %v1306_v56 }
 0xe44   :  { %v1308_v57 = vmul.f32 %v2666_v43, %v1307_v58 }
 0xe46   :  { %v1309_v10 = vadd.f32 %v2666_v43, %v1308_v57 }
 0xe48   :  { %v1313_v62 = vsel %vm1312_vm3, %v2666_v43, %v1309_v10 }
 0xe49   :  { %v1318_v7 = vsel %vm1315_vm4, %v1317_v1, %v1313_v62 }
 0xe4a   :  { %v1321_v12 = vmul.f32 %v1318_v7, %v3338_v60 }
 0xe8f   :  { %v1324_v3 = vpop.permute.xlu2 %1323 }
 0xe90   :  { %v1326_v9 = vmul.f32 %v1324_v3, %v1318_v7 }
 0xe92   :  { %1328 = vrot.lane.b32.xlu0 %v1326_v9, %s2985_s19 }
 0xf04   :  { %v1329_v11 = vpop.permute.xlu0 %1328 }
 0xf05   :  { %v3460_v63 = vadd.f32 %v1329_v11, %v1321_v12 }
 0xf07   :  { %2667 = vtanh.f32 %v3460_v63 }
 0xf0d   :  { %v2668_v16 = vpop.eup %2667 }
 0xf0e   :  { %1334 = vrot.lane.b32.xlu1 %v2668_v16, %s2984_s7 }
 0xf80   :  { %v1335_v8 = vpop.permute.xlu1 %1334 }
 0xf81   :  { %v3464_v5 = vmul.f32 %v1335_v8, %v1318_v7 }
 0xf83   :  { %v1346_v19 = vperm.slane %v3464_v5, 0  ;;  %v1340_v22 = vrot.slane %v3464_v5, 2  ;;  %v1339_v20 = vrot.slane %v3464_v5, 1  ;;  %v1341_v21 = vrot.slane %v3464_v5, 3 }
 0xf84   :  { %v1343_v42 = vrot.slane %v3464_v5, 5  ;;  %v1342_v23 = vrot.slane %v3464_v5, 4  ;;  %v1344_v28 = vrot.slane %v3464_v5, 6  ;;  %v1345_v29 = vrot.slane %v3464_v5, 7 }
 0xf85   :  { %1354 = vrot.lane.b32.xlu2 %v1346_v19, %s2985_s19  ;;  %v1348_v60 = vperm.slane %v1340_v22, 0  ;;  %v1347_v47 = vperm.slane %v1339_v20, 0  ;;  %v1349_v25 = vperm.slane %v1341_v21, 0  ;;  %v1410_v32 = vmul.f32 %v3464_v5, %v3126_v50 }
 0xf86   :  { %v1351_v26 = vperm.slane %v1343_v42, 0  ;;  %v1350_v27 = vperm.slane %v1342_v23, 0  ;;  %v1352_v31 = vperm.slane %v1344_v28, 0  ;;  %v1353_v35 = vperm.slane %v1345_v29, 0 }
 0xf87   :  { %1358 = vrot.lane.b32.xlu1 %v1348_v60, %s2985_s19  ;;  %1356 = vrot.lane.b32.xlu0 %v1347_v47, %s2985_s19 }
 0xf8d   :  { %1360 = vrot.lane.b32.xlu2 %v1349_v25, %s2985_s19 }
 0xf8f   :  { %1364 = vrot.lane.b32.xlu1 %v1351_v26, %s2985_s19  ;;  %1362 = vrot.lane.b32.xlu0 %v1350_v27, %s2985_s19 }
 0xf95   :  { %1366 = vrot.lane.b32.xlu2 %v1352_v31, %s2985_s19 }
 0xf97   :  { %1412 = vrot.lane.b32.xlu1 %v1410_v32, %s2985_s19  ;;  %1368 = vrot.lane.b32.xlu0 %v1353_v35, %s2985_s19 }
 0xfdf   :  { %v1355_v37 = vpop.permute.xlu2 %1354 }
 0xfe0   :  { %v1378_v44 = vmul.f32 %v3372_v4, %v1355_v37 }
 0xfe2   :  { %v1386_v39 = vsel %vm189_vm0, %v1378_v44, 0.0 }
 0xfe3   :  { %1387 = vadd.xlane.f32.xlu2 %v1386_v39 }
 0xfe7   :  { %v1361_v41 = vpop.permute.xlu2 %1360 }
 0xfe8   :  { %v1381_v46 = vmul.f32 %v3380_v38, %v1361_v41 }
 0xfea   :  { %v1395_v48 = vsel %vm189_vm0, %v1381_v46, 0.0 }
 0xfeb   :  { %1396 = vadd.xlane.f32.xlu2 %v1395_v48 }
 0xfef   :  { %v1367_v36 = vpop.permute.xlu2 %1366 }
 0xff0   :  { %v1384_v51 = vmul.f32 %v3388_v52, %v1367_v36 }
 0xff2   :  { %v1404_v0 = vsel %vm189_vm0, %v1384_v51, 0.0 }
 0xff3   :  { %1405 = vadd.xlane.f32.xlu2 %v1404_v0 }
 0xff9   :  { %v1359_v49 = vpop.permute.xlu1 %1358  ;;  %v1357_v53 = vpop.permute.xlu0 %1356 }
 0xffa   :  { %v1380_v54 = vmul.f32 %v3363_v33, %v1359_v49  ;;  %v1379_v55 = vmul.f32 %v3375_v6, %v1357_v53 }
 0xffc   :  { %v1392_v43 = vsel %vm189_vm0, %v1380_v54, 0.0  ;;  %v1389_v56 = vsel %vm189_vm0, %v1379_v55, 0.0 }
 0xffd   :  { %1393 = vadd.xlane.f32.xlu1 %v1392_v43  ;;  %1390 = vadd.xlane.f32.xlu0 %v1389_v56 }
0x1001   :  { %v1365_v58 = vpop.permute.xlu1 %1364  ;;  %v1363_v57 = vpop.permute.xlu0 %1362 }
0x1002   :  { %v1383_v10 = vmul.f32 %v3367_v24, %v1365_v58  ;;  %v1382_v61 = vmul.f32 %v3383_v45, %v1363_v57 }
0x1004   :  { %v1401_v34 = vsel %vm189_vm0, %v1383_v10, 0.0  ;;  %v1398_v62 = vsel %vm189_vm0, %v1382_v61, 0.0 }
0x1005   :  { %1402 = vadd.xlane.f32.xlu1 %v1401_v34  ;;  %1399 = vadd.xlane.f32.xlu0 %v1398_v62 }
0x1009   :  { %v1413_v1 = vpop.permute.xlu1 %1412  ;;  %v1369_v3 = vpop.permute.xlu0 %1368 }
0x100a   :  { %v1385_v7 = vmul.f32 %v3391_v2, %v1369_v3  ;;  %v1415_v9 = vsel %vm189_vm0, %v1413_v1, 0.0 }
0x100c   :  { %v1407_v12 = vsel %vm189_vm0, %v1385_v7, 0.0 }
0x100d   :  { %1416 = vadd.xlane.f32.xlu1 %v1415_v9  ;;  %1408 = vadd.xlane.f32.xlu0 %v1407_v12 }
0x1056   :  { %v1388_v11 = vpop.xlane.xlu2 %1387 }
0x1057   :  { %v1427_v22 = vperm.slane %v1388_v11, %v3166_v30 }
0x105e   :  { %v1397_v20 = vpop.xlane.xlu2 %1396 }
0x105f   :  { %v1430_v25 = vperm.slane %v1397_v20, %v3166_v30 }
0x1066   :  { %v1406_v31 = vpop.xlane.xlu2 %1405 }
0x1067   :  { %v1433_v35 = vperm.slane %v1406_v31, %v3166_v30  ;;  %v3528_v31 = vld [vmem:[#allocation7 + $0x28] sm:$0xff] }
0x1070   :  { %v1394_v16 = vpop.xlane.xlu1 %1393  ;;  %v1391_v8 = vpop.xlane.xlu0 %1390 }
0x1071   :  { %v1428_v19 = vperm.slane %v1391_v8, %v3166_v30  ;;  %v1429_v60 = vperm.slane %v1394_v16, %v3166_v30 }
0x1073   :  { %v1435_v47 = vsel %vm358_vm5, %v1428_v19, %v1427_v22 }
0x1074   :  { %v1436_v21 = vsel %vm360_vm6, %v1429_v60, %v1435_v47 }
0x1075   :  { %v1437_v28 = vsel %vm362_vm7, %v1430_v25, %v1436_v21 }
0x1078   :  { %v1403_v42 = vpop.xlane.xlu1 %1402  ;;  %v1400_v23 = vpop.xlane.xlu0 %1399 }
0x1079   :  { %v1431_v26 = vperm.slane %v1400_v23, %v3166_v30  ;;  %v1432_v27 = vperm.slane %v1403_v42, %v3166_v30 }
0x107b   :  { %v1438_v29 = vsel %vm364_vm8, %v1431_v26, %v1437_v28 }
0x107c   :  { %v1439_v32 = vsel %vm366_vm9, %v1432_v27, %v1438_v29 }
0x107d   :  { %v1440_v46 = vsel %vm368_vm10, %v1433_v35, %v1439_v32 }
0x1080   :  { %v1417_v37 = vpop.xlane.xlu1 %1416  ;;  %v1409_v44 = vpop.xlane.xlu0 %1408 }
0x1081   :  { %v1418_v39 = vadd.f32 %v3410_v17, %v1417_v37  ;;  %v1434_v41 = vperm.slane %v1409_v44, %v3166_v30 }
0x1083   :  { %v1441_v48 = vsel %vm370_vm11, %v1434_v41, %v1440_v46 }
0x1084   :  { %v1443_v36 = vadd.f32 %v1441_v48, %v1418_v39 }
0x1086   :  { %v1444_v51 = vsel %vm374_vm12, %v1443_v36, -inf }
0x1087   :  { %1445 = vmax.xlane.f32.xlu2 %v1444_v51 }
0x10fa   :  { %v1446_v0 = vpop.xlane.xlu2 %1445 }
0x10fb   :  { %v1447_v49 = vsub.f32 %v1443_v36, %v1446_v0 }
0x10fd   :  { %v1448_v53 = vmul.f32 1.442695, %v1447_v49 }
0x10ff   :  { %2669 = vpow2.f32 %v1448_v53 }
0x1105   :  { %v2670_v54 = vpop.eup %2669 }
0x1106   :  { %v1450_v55 = vsel %vm374_vm12, %v2670_v54, 0.0 }
0x1107   :  { %1451 = vadd.xlane.f32.xlu0 %v1450_v55  ;;  %v3535_v55 = vld [vmem:[#allocation7 + $0x18] sm:$0xff] }
0x117a   :  { %v1452_v43 = vpop.xlane.xlu0 %1451 }
0x117b   :  { %2671 = vrcp.f32 %v1452_v43  ;;  %v1464_v10 = vand.u32 2147483648, %v1452_v43  ;;  %v1462_v34 = vand.u32 2147483647, %v1452_v43  ;;  %vm1458_vm14 = vweird.f32 %v1452_v43 }
0x117d   :  { %v1465_v1 = vor.u32 1.1754944e-38, %v1464_v10  ;;  %vm1463_vm1 = vcmp.eq.f32.partialorder %v1462_v34, 8.507059e+37 }
0x1181   :  { %v2672_v56 = vpop.eup %2671 }
0x1182   :  { %v1454_v58 = vmul.f32 %v2672_v56, %v1452_v43  ;;  %vm1459_vm13 = vweird.f32 %v2672_v56 }
0x1183   :  { %vm1460_vm15 = vmor %vm1458_vm14, %vm1459_vm13 }
0x1184   :  { %v1455_v57 = vsub.f32 1.0, %v1454_v58 }
0x1186   :  { %v1456_v61 = vmul.f32 %v2672_v56, %v1455_v57 }
0x1188   :  { %v1457_v62 = vadd.f32 %v2672_v56, %v1456_v61 }
0x118a   :  { %v1461_v3 = vsel %vm1460_vm15, %v2672_v56, %v1457_v62 }
0x118b   :  { %v1466_v7 = vsel %vm1463_vm1, %v1465_v1, %v1461_v3 }
0x118c   :  { %v1467_v9 = vmul.f32 %v2670_v54, %v1466_v7 }
0x118e   :  { %1594 = vst.msk [vmem:[#allocation15 + $0x18] sm:$0xff] %vm374_vm12, %v1467_v9  ;;  %v1482_v12 = vperm.slane %v1467_v9, 2  ;;  %v1475_v11 = vperm.slane %v1467_v9, 1  ;;  %v1468_v16 = vperm.slane %v1467_v9, 0  ;;  %v1489_v8 = vperm.slane %v1467_v9, 3 }
0x118f   :  { %v1503_v19 = vperm.slane %v1467_v9, 5  ;;  %v1496_v22 = vperm.slane %v1467_v9, 4  ;;  %v1510_v20 = vperm.slane %v1467_v9, 6  ;;  %v1517_v60 = vperm.slane %v1467_v9, 7 }
0x1190   :  { %1487 = vperm.xlu0 %2621, %v1482_v12   ;;  %1480 = vperm.xlu2 %2623, %v1475_v11  }
0x1191   :  { %1473 = vperm.xlu1 %2622, %v1468_v16  }
0x1198   :  { %1494 = vperm.xlu0 %2621, %v1489_v8   ;;  %1508 = vperm.xlu2 %2623, %v1503_v19  }
0x1199   :  { %1501 = vperm.xlu1 %2622, %v1496_v22  }
0x11a0   :  { %1515 = vperm.xlu0 %2621, %v1510_v20   ;;  %1588 = vrot.lane.b32.xlu2 %v3464_v5, %s2985_s19 }
0x11a1   :  { %1522 = vperm.xlu1 %2622, %v1517_v60  }
0x11ea   :  { %v1481_v47 = vpop.permute.xlu2 %1480 }
0x11eb   :  { %v1525_v42 = vmul.f32 %v3428_v15, %v1481_v47 }
0x11ed   :  { %v1539_v25 = vsel %vm164_vm2, %v1525_v42, 0.0 }
0x11ee   :  { %v1540_v26 = vrot.slane %v1539_v25, 4 }
0x11f0   :  { %v1541_v35 = vadd.f32 %v1540_v26, %v1539_v25 }
0x11f2   :  { %v1509_v21 = vpop.permute.xlu2 %1508  ;;  %v1542_v36 = vrot.slane %v1541_v35, 2 }
0x11f3   :  { %v1529_v5 = vmul.f32 %v3528_v31, %v1509_v21 }
0x11f4   :  { %v1543_v58 = vadd.f32 %v1542_v36, %v1541_v35 }
0x11f5   :  { %v1567_v46 = vsel %vm164_vm2, %v1529_v5, 0.0 }
0x11f6   :  { %v1568_v53 = vrot.slane %v1567_v46, 4  ;;  %v1544_v12 = vrot.slane %v1543_v58, 1 }
0x11f8   :  { %v1569_v1 = vadd.f32 %v1568_v53, %v1567_v46  ;;  %v1545_v25 = vadd.f32 %v1544_v12, %v1543_v58 }
0x11fa   :  { %v1589_v23 = vpop.permute.xlu2 %1588  ;;  %v1570_v22 = vrot.slane %v1569_v1, 2 }
0x11fb   :  { %1592 = vst.msk [vmem:[#allocation14 + $0x18] sm:$0xff] %vm189_vm0, %v1589_v23  ;;  %2598 = vmatmul.msk.f32.vlgmr.msra.gmra.mxu2 %vm189_vm0, %v1589_v23 }
0x11fc   :  { %v1571_v35 = vadd.f32 %v1570_v22, %v1569_v1 }
0x1202   :  { %v1488_v27 = vpop.permute.xlu0 %1487 }
0x1203   :  { %v1526_v28 = vmul.f32 %v3425_v13, %v1488_v27  ;;  %v1474_v29 = vpop.permute.xlu1 %1473 }
0x1204   :  { %v1524_v32 = vmul.f32 %v3419_v59, %v1474_v29 }
0x1205   :  { %v1546_v37 = vsel %vm164_vm2, %v1526_v28, 0.0 }
0x1206   :  { %v1547_v44 = vrot.slane %v1546_v37, 4  ;;  %v1532_v39 = vsel %vm164_vm2, %v1524_v32, 0.0 }
0x1207   :  { %v1533_v41 = vrot.slane %v1532_v39, 4 }
0x1208   :  { %v1548_v48 = vadd.f32 %v1547_v44, %v1546_v37 }
0x1209   :  { %v1534_v51 = vadd.f32 %v1533_v41, %v1532_v39 }
0x120a   :  { %v1549_v0 = vrot.slane %v1548_v48, 2  ;;  %v1495_v49 = vpop.permute.xlu0 %1494 }
0x120b   :  { %v1535_v54 = vrot.slane %v1534_v51, 2  ;;  %v1527_v59 = vmul.f32 %v3535_v55, %v1495_v49  ;;  %v1502_v43 = vpop.permute.xlu1 %1501 }
0x120c   :  { %v1528_v56 = vmul.f32 %v3437_v40, %v1502_v43  ;;  %v1550_v61 = vadd.f32 %v1549_v0, %v1548_v48  ;;  %v1572_v0 = vrot.slane %v1571_v35, 1 }
0x120d   :  { %v1536_v57 = vadd.f32 %v1535_v54, %v1534_v51  ;;  %v1553_v10 = vsel %vm164_vm2, %v1527_v59, 0.0 }
0x120e   :  { %v1554_v34 = vrot.slane %v1553_v10, 4  ;;  %v1560_v62 = vsel %vm164_vm2, %v1528_v56, 0.0  ;;  %v1551_v16 = vrot.slane %v1550_v61, 1  ;;  %v1573_v58 = vadd.f32 %v1572_v0, %v1571_v35 }
0x120f   :  { %v1537_v3 = vrot.slane %v1536_v57, 1  ;;  %v1561_v7 = vrot.slane %v1560_v62, 4 }
0x1210   :  { %v1555_v9 = vadd.f32 %v1554_v34, %v1553_v10  ;;  %v1552_v28 = vadd.f32 %v1551_v16, %v1550_v61 }
0x1211   :  { %v1562_v11 = vadd.f32 %v1561_v7, %v1560_v62  ;;  %v1538_v20 = vadd.f32 %v1537_v3, %v1536_v57  ;;  %v1596_v3 = vld [vmem:[#allocation2 + $0x20] sm:$0xff] }
0x1212   :  { %v1556_v8 = vrot.slane %v1555_v9, 2  ;;  %v1516_v19 = vpop.permute.xlu0 %1515 }
0x1213   :  { %v1563_v60 = vrot.slane %v1562_v11, 2  ;;  %v1530_v47 = vmul.f32 %v3431_v18, %v1516_v19  ;;  %v1523_v21 = vpop.permute.xlu1 %1522  ;;  %v1605_v37 = vsel %vm358_vm5, %v1545_v25, %v1538_v20 }
0x1214   :  { %v1557_v42 = vadd.f32 %v1556_v8, %v1555_v9  ;;  %v1531_v23 = vmul.f32 %v3443_v14, %v1523_v21  ;;  %v1606_v48 = vsel %vm360_vm6, %v1552_v28, %v1605_v37 }
0x1215   :  { %v1564_v26 = vadd.f32 %v1563_v60, %v1562_v11  ;;  %v1574_v27 = vsel %vm164_vm2, %v1530_v47, 0.0 }
0x1216   :  { %v1558_v29 = vrot.slane %v1557_v42, 1  ;;  %v1575_v5 = vrot.slane %v1574_v27, 4  ;;  %v1581_v32 = vsel %vm164_vm2, %v1531_v23, 0.0 }
0x1217   :  { %v1565_v44 = vrot.slane %v1564_v26, 1  ;;  %v1582_v39 = vrot.slane %v1581_v32, 4 }
0x1218   :  { %v1559_v41 = vadd.f32 %v1558_v29, %v1557_v42  ;;  %v1576_v18 = vadd.f32 %v1575_v5, %v1574_v27 }
0x1219   :  { %v1583_v46 = vadd.f32 %v1582_v39, %v1581_v32  ;;  %v1566_v36 = vadd.f32 %v1565_v44, %v1564_v26 }
0x121a   :  { %v1577_v51 = vrot.slane %v1576_v18, 2  ;;  %v1607_v49 = vsel %vm362_vm7, %v1559_v41, %v1606_v48 }
0x121b   :  { %v1584_v53 = vrot.slane %v1583_v46, 2  ;;  %v1608_v43 = vsel %vm364_vm8, %v1566_v36, %v1607_v49 }
0x121c   :  { %v1578_v54 = vadd.f32 %v1577_v51, %v1576_v18  ;;  %v1609_v34 = vsel %vm366_vm9, %v1573_v58, %v1608_v43 }
0x121d   :  { %v1585_v59 = vadd.f32 %v1584_v53, %v1583_v46 }
0x121e   :  { %v1579_v56 = vrot.slane %v1578_v54, 1 }
0x121f   :  { %v1586_v57 = vrot.slane %v1585_v59, 1 }
0x1220   :  { %v1580_v10 = vadd.f32 %v1579_v56, %v1578_v54 }
0x1221   :  { %v1587_v61 = vadd.f32 %v1586_v57, %v1585_v59 }
0x1222   :  { %v1610_v62 = vsel %vm368_vm10, %v1580_v10, %v1609_v34 }
0x1223   :  { %v1611_v1 = vsel %vm370_vm11, %v1587_v61, %v1610_v62 }
0x1224   :  { %2597 = vmatmul.msk.f32.vlgmr.msra.gmra.mxu0 %vm164_vm2, %v1611_v1 }
0x127e   :  { %v1654_v12 = vpop.f32.mrf.mxu2 }
0x12a1   :  { %v1631_v7 = vpop.f32.mrf.mxu0 }
0x12a2   :  { %v1634_v9 = vadd.f32 %v1631_v7, %v1596_v3 }
0x12a4   :  { %v1657_v11 = vadd.f32 %v1654_v12, %v1634_v9 }
0x12a6   :  { %2673 = vtanh.f32 %v1657_v11  ;;  %v2599_v8 = vmul.f32 -1.442695, %v1657_v11 }
0x12a8   :  { %2675 = vpow2.f32 %v2599_v8 }
0x12ac   :  { %v2674_v16 = vpop.eup %2673 }
0x12ad   :  { %1680 = vrot.lane.b32.xlu0 %v2674_v16, %s2984_s7 }
0x12ae   :  { %v2676_v19 = vpop.eup %2675 }
0x12af   :  { %v1661_v22 = vadd.f32 1.0, %v2676_v19 }
0x12b1   :  { %2677 = vrcp.f32 %v1661_v22  ;;  %v1673_v23 = vand.u32 2147483648, %v1661_v22  ;;  %vm1667_vm4 = vweird.f32 %v1661_v22  ;;  %v1671_v25 = vand.u32 2147483647, %v1661_v22 }
0x12b3   :  { %v1674_v27 = vor.u32 1.1754944e-38, %v1673_v23  ;;  %vm1672_vm14 = vcmp.eq.f32.partialorder %v1671_v25, 8.507059e+37 }
0x12b7   :  { %v2678_v20 = vpop.eup %2677 }
0x12b8   :  { %v1663_v60 = vmul.f32 %v2678_v20, %v1661_v22  ;;  %vm1668_vm3 = vweird.f32 %v2678_v20 }
0x12b9   :  { %vm1669_vm13 = vmor %vm1667_vm4, %vm1668_vm3 }
0x12ba   :  { %v1664_v47 = vsub.f32 1.0, %v1663_v60 }
0x12bc   :  { %v1665_v21 = vmul.f32 %v2678_v20, %v1664_v47 }
0x12be   :  { %v1666_v42 = vadd.f32 %v2678_v20, %v1665_v21 }
0x12c0   :  { %v1670_v26 = vsel %vm1669_vm13, %v2678_v20, %v1666_v42 }
0x12c1   :  { %v1675_v29 = vsel %vm1672_vm14, %v1674_v27, %v1670_v26 }
0x12c2   :  { %v1678_v32 = vmul.f32 %v1675_v29, %v3460_v63 }
0x131f   :  { %v1681_v28 = vpop.permute.xlu0 %1680 }
0x1320   :  { %v1683_v5 = vmul.f32 %v1681_v28, %v1675_v29 }
0x1322   :  { %1685 = vrot.lane.b32.xlu1 %v1683_v5, %s2985_s19 }
0x1394   :  { %v1686_v35 = vpop.permute.xlu1 %1685 }
0x1395   :  { %v3556_v37 = vadd.f32 %v1686_v35, %v1678_v32 }
0x1397   :  { %2679 = vtanh.f32 %v3556_v37 }
0x139d   :  { %v2680_v44 = vpop.eup %2679 }
0x139e   :  { %1691 = vrot.lane.b32.xlu2 %v2680_v44, %s2984_s7 }
0x13f8   :  { %v1692_v39 = vpop.permute.xlu2 %1691 }
0x13f9   :  { %v3560_v41 = vmul.f32 %v1692_v39, %v1675_v29 }
0x13fb   :  { %v1703_v18 = vperm.slane %v3560_v41, 0  ;;  %v1697_v46 = vrot.slane %v3560_v41, 2  ;;  %v1696_v48 = vrot.slane %v3560_v41, 1  ;;  %v1698_v51 = vrot.slane %v3560_v41, 3 }
0x13fc   :  { %v1700_v0 = vrot.slane %v3560_v41, 5  ;;  %v1699_v49 = vrot.slane %v3560_v41, 4  ;;  %v1701_v43 = vrot.slane %v3560_v41, 6  ;;  %v1702_v56 = vrot.slane %v3560_v41, 7 }
0x13fd   :  { %1711 = vrot.lane.b32.xlu0 %v1703_v18, %s2985_s19  ;;  %v1705_v63 = vperm.slane %v1697_v46, 0  ;;  %v1704_v36 = vperm.slane %v1696_v48, 0  ;;  %v1706_v53 = vperm.slane %v1698_v51, 0  ;;  %v1767_v57 = vmul.f32 %v3560_v41, %v3126_v50 }
0x13fe   :  { %v1708_v54 = vperm.slane %v1700_v0, 0  ;;  %v1707_v59 = vperm.slane %v1699_v49, 0  ;;  %v1709_v58 = vperm.slane %v1701_v43, 0  ;;  %v1710_v10 = vperm.slane %v1702_v56, 0 }
0x13ff   :  { %1715 = vrot.lane.b32.xlu2 %v1705_v63, %s2985_s19  ;;  %1713 = vrot.lane.b32.xlu1 %v1704_v36, %s2985_s19 }
0x1405   :  { %1717 = vrot.lane.b32.xlu0 %v1706_v53, %s2985_s19 }
0x1407   :  { %1721 = vrot.lane.b32.xlu2 %v1708_v54, %s2985_s19  ;;  %1719 = vrot.lane.b32.xlu1 %v1707_v59, %s2985_s19 }
0x140d   :  { %1723 = vrot.lane.b32.xlu0 %v1709_v58, %s2985_s19 }
0x140f   :  { %1769 = vrot.lane.b32.xlu2 %v1767_v57, %s2985_s19  ;;  %1725 = vrot.lane.b32.xlu1 %v1710_v10, %s2985_s19 }
0x1459   :  { %v1716_v61 = vpop.permute.xlu2 %1715 }
0x145a   :  { %v1737_v34 = vmul.f32 %v3363_v33, %v1716_v61 }
0x145c   :  { %v1749_v62 = vsel %vm189_vm0, %v1737_v34, 0.0 }
0x145d   :  { %1750 = vadd.xlane.f32.xlu2 %v1749_v62 }
0x1461   :  { %v1722_v16 = vpop.permute.xlu2 %1721 }
0x1462   :  { %v1740_v19 = vmul.f32 %v3367_v24, %v1722_v16 }
0x1469   :  { %v1770_v42 = vpop.permute.xlu2 %1769 }
0x146f   :  { %v1712_v1 = vpop.permute.xlu0 %1711 }
0x1470   :  { %v1735_v3 = vmul.f32 %v3372_v4, %v1712_v1 }
0x1471   :  { %v1714_v7 = vpop.permute.xlu1 %1713 }
0x1472   :  { %v1736_v9 = vmul.f32 %v3375_v6, %v1714_v7  ;;  %v1743_v12 = vsel %vm189_vm0, %v1735_v3, 0.0  ;;  %v1758_v6 = vsel %vm189_vm0, %v1740_v19, 0.0 }
0x1473   :  { %1744 = vadd.xlane.f32.xlu0 %v1743_v12 }
0x1474   :  { %v1746_v11 = vsel %vm189_vm0, %v1736_v9, 0.0 }
0x1475   :  { %1747 = vadd.xlane.f32.xlu1 %v1746_v11 }
0x1477   :  { %v1718_v8 = vpop.permute.xlu0 %1717 }
0x1478   :  { %v1738_v33 = vmul.f32 %v3380_v38, %v1718_v8 }
0x1479   :  { %v1720_v22 = vpop.permute.xlu1 %1719 }
0x147a   :  { %v1739_v20 = vmul.f32 %v3383_v45, %v1720_v22  ;;  %v1752_v4 = vsel %vm189_vm0, %v1738_v33, 0.0  ;;  %v1772_v45 = vsel %vm189_vm0, %v1770_v42, 0.0 }
0x147b   :  { %1753 = vadd.xlane.f32.xlu2 %v1752_v4 }
0x147c   :  { %v1755_v60 = vsel %vm189_vm0, %v1739_v20, 0.0 }
0x147d   :  { %1759 = vadd.xlane.f32.xlu1 %v1758_v6  ;;  %1756 = vadd.xlane.f32.xlu0 %v1755_v60 }
0x147f   :  { %v1724_v47 = vpop.permute.xlu0 %1723 }
0x1480   :  { %v1741_v21 = vmul.f32 %v3388_v52, %v1724_v47 }
0x1481   :  { %v1726_v23 = vpop.permute.xlu1 %1725 }
0x1482   :  { %v1742_v24 = vmul.f32 %v3391_v2, %v1726_v23  ;;  %v1761_v38 = vsel %vm189_vm0, %v1741_v21, 0.0 }
0x1483   :  { %1762 = vadd.xlane.f32.xlu2 %v1761_v38 }
0x1484   :  { %v1764_v25 = vsel %vm189_vm0, %v1742_v24, 0.0 }
0x1485   :  { %1773 = vadd.xlane.f32.xlu1 %v1772_v45  ;;  %1765 = vadd.xlane.f32.xlu0 %v1764_v25 }
0x14d0   :  { %v1751_v26 = vpop.xlane.xlu2 %1750 }
0x14d1   :  { %v1786_v2 = vperm.slane %v1751_v26, %v3166_v30 }
0x14e6   :  { %v1745_v27 = vpop.xlane.xlu0 %1744 }
0x14e7   :  { %v1784_v52 = vperm.slane %v1745_v27, %v3166_v30 }
0x14e8   :  { %v1748_v28 = vpop.xlane.xlu1 %1747 }
0x14e9   :  { %v1785_v29 = vperm.slane %v1748_v28, %v3166_v30 }
0x14eb   :  { %v1792_v5 = vsel %vm358_vm5, %v1785_v29, %v1784_v52 }
0x14ec   :  { %v1793_v18 = vsel %vm360_vm6, %v1786_v2, %v1792_v5  ;;  %v3624_v2 = vld [vmem:[#allocation7] sm:$0xff] }
0x14ee   :  { %v1754_v32 = vpop.xlane.xlu2 %1753 }
0x14ef   :  { %v1787_v35 = vperm.slane %v1754_v32, %v3166_v30 }
0x14f0   :  { %v1757_v44 = vpop.xlane.xlu0 %1756  ;;  %v1760_v39 = vpop.xlane.xlu1 %1759 }
0x14f1   :  { %v1788_v46 = vperm.slane %v1757_v44, %v3166_v30  ;;  %v1794_v48 = vsel %vm362_vm7, %v1787_v35, %v1793_v18  ;;  %v1789_v63 = vperm.slane %v1760_v39, %v3166_v30 }
0x14f3   :  { %v1795_v36 = vsel %vm364_vm8, %v1788_v46, %v1794_v48 }
0x14f4   :  { %v1796_v49 = vsel %vm366_vm9, %v1789_v63, %v1795_v36 }
0x14f6   :  { %v1763_v51 = vpop.xlane.xlu2 %1762 }
0x14f7   :  { %v1790_v0 = vperm.slane %v1763_v51, %v3166_v30 }
0x14f8   :  { %v1766_v53 = vpop.xlane.xlu0 %1765  ;;  %v1774_v54 = vpop.xlane.xlu1 %1773 }
0x14f9   :  { %v1797_v59 = vsel %vm368_vm10, %v1790_v0, %v1796_v49  ;;  %v1791_v43 = vperm.slane %v1766_v53, %v3166_v30  ;;  %v1775_v56 = vadd.f32 %v3410_v17, %v1774_v54 }
0x14fb   :  { %v1798_v58 = vsel %vm370_vm11, %v1791_v43, %v1797_v59 }
0x14fc   :  { %v1800_v57 = vadd.f32 %v1798_v58, %v1775_v56 }
0x14fe   :  { %v1801_v10 = vsel %vm374_vm12, %v1800_v57, -inf }
0x14ff   :  { %1802 = vmax.xlane.f32.xlu2 %v1801_v10 }
0x1572   :  { %v1803_v61 = vpop.xlane.xlu2 %1802 }
0x1573   :  { %v1804_v34 = vsub.f32 %v1800_v57, %v1803_v61 }
0x1575   :  { %v1805_v62 = vmul.f32 1.442695, %v1804_v34 }
0x1577   :  { %2681 = vpow2.f32 %v1805_v62 }
0x157d   :  { %v2682_v1 = vpop.eup %2681 }
0x157e   :  { %v1807_v3 = vsel %vm374_vm12, %v2682_v1, 0.0 }
0x157f   :  { %1808 = vadd.xlane.f32.xlu0 %v1807_v3 }
0x15f2   :  { %v1809_v7 = vpop.xlane.xlu0 %1808 }
0x15f3   :  { %2683 = vrcp.f32 %v1809_v7  ;;  %v1821_v17 = vand.u32 2147483648, %v1809_v7  ;;  %v1819_v8 = vand.u32 2147483647, %v1809_v7  ;;  %vm1815_vm1 = vweird.f32 %v1809_v7 }
0x15f5   :  { %v1822_v33 = vor.u32 1.1754944e-38, %v1821_v17  ;;  %vm1820_vm4 = vcmp.eq.f32.partialorder %v1819_v8, 8.507059e+37 }
0x15f9   :  { %v2684_v9 = vpop.eup %2683 }
0x15fa   :  { %v1811_v12 = vmul.f32 %v2684_v9, %v1809_v7  ;;  %vm1816_vm15 = vweird.f32 %v2684_v9 }
0x15fb   :  { %vm1817_vm3 = vmor %vm1815_vm1, %vm1816_vm15 }
0x15fc   :  { %v1812_v11 = vsub.f32 1.0, %v1811_v12 }
0x15fe   :  { %v1813_v16 = vmul.f32 %v2684_v9, %v1812_v11 }
0x1600   :  { %v1814_v19 = vadd.f32 %v2684_v9, %v1813_v16 }
0x1602   :  { %v1818_v22 = vsel %vm1817_vm3, %v2684_v9, %v1814_v19 }
0x1603   :  { %v1823_v20 = vsel %vm1820_vm4, %v1822_v33, %v1818_v22 }
0x1604   :  { %v1824_v4 = vmul.f32 %v2682_v1, %v1823_v20  ;;  %v3636_v20 = vld [vmem:[#allocation7 + $0x30] sm:$0xff] }
0x1606   :  { %1951 = vst.msk [vmem:[#allocation15 + $0x20] sm:$0xff] %vm374_vm12, %v1824_v4  ;;  %v1839_v6 = vperm.slane %v1824_v4, 2  ;;  %v1832_v60 = vperm.slane %v1824_v4, 1  ;;  %v1825_v47 = vperm.slane %v1824_v4, 0  ;;  %v1853_v21 = vperm.slane %v1824_v4, 4 }
0x1607   :  { %v1860_v42 = vperm.slane %v1824_v4, 5  ;;  %v1846_v23 = vperm.slane %v1824_v4, 3  ;;  %v1874_v24 = vperm.slane %v1824_v4, 7  ;;  %v1867_v38 = vperm.slane %v1824_v4, 6 }
0x1608   :  { %1844 = vperm.xlu0 %2621, %v1839_v6   ;;  %1837 = vperm.xlu2 %2623, %v1832_v60  }
0x1609   :  { %1830 = vperm.xlu1 %2622, %v1825_v47  }
0x1610   :  { %1858 = vperm.xlu0 %2621, %v1853_v21   ;;  %1865 = vperm.xlu2 %2623, %v1860_v42  }
0x1611   :  { %1851 = vperm.xlu1 %2622, %v1846_v23  }
0x1618   :  { %1879 = vperm.xlu0 %2621, %v1874_v24   ;;  %1945 = vrot.lane.b32.xlu2 %v3560_v41, %s2985_s19 }
0x1619   :  { %1872 = vperm.xlu1 %2622, %v1867_v38  }
0x1662   :  { %v1838_v45 = vpop.permute.xlu2 %1837 }
0x1663   :  { %v1882_v27 = vmul.f32 %v3428_v15, %v1838_v45 }
0x1665   :  { %v1896_v28 = vsel %vm164_vm2, %v1882_v27, 0.0 }
0x1666   :  { %v1897_v29 = vrot.slane %v1896_v28, 4 }
0x1668   :  { %v1898_v15 = vadd.f32 %v1897_v29, %v1896_v28 }
0x166a   :  { %v1866_v25 = vpop.permute.xlu2 %1865  ;;  %v1899_v51 = vrot.slane %v1898_v15, 2 }
0x166b   :  { %v1886_v35 = vmul.f32 %v3528_v31, %v1866_v25 }
0x166c   :  { %v1900_v58 = vadd.f32 %v1899_v51, %v1898_v15 }
0x166d   :  { %v1924_v63 = vsel %vm164_vm2, %v1886_v35, 0.0 }
0x166e   :  { %v1925_v59 = vrot.slane %v1924_v63, 4  ;;  %v1901_v9 = vrot.slane %v1900_v58, 1 }
0x1670   :  { %v1926_v62 = vadd.f32 %v1925_v59, %v1924_v63  ;;  %v1902_v47 = vadd.f32 %v1901_v9, %v1900_v58 }
0x1672   :  { %v1946_v26 = vpop.permute.xlu2 %1945  ;;  %v1927_v19 = vrot.slane %v1926_v62, 2 }
0x1673   :  { %1949 = vst.msk [vmem:[#allocation14 + $0x20] sm:$0xff] %vm189_vm0, %v1946_v26  ;;  %2601 = vmatmul.msk.f32.vlgmr.msra.gmra.mxu3 %vm189_vm0, %v1946_v26 }
0x167a   :  { %v1845_v52 = vpop.permute.xlu0 %1844 }
0x167b   :  { %v1883_v5 = vmul.f32 %v3425_v13, %v1845_v52  ;;  %v1831_v32 = vpop.permute.xlu1 %1830 }
0x167c   :  { %v1881_v41 = vmul.f32 %v3624_v2, %v1831_v32 }
0x167d   :  { %v1903_v44 = vsel %vm164_vm2, %v1883_v5, 0.0 }
0x167e   :  { %v1904_v39 = vrot.slane %v1903_v44, 4  ;;  %v1889_v18 = vsel %vm164_vm2, %v1881_v41, 0.0 }
0x167f   :  { %v1890_v46 = vrot.slane %v1889_v18, 4 }
0x1680   :  { %v1905_v48 = vadd.f32 %v1904_v39, %v1903_v44 }
0x1681   :  { %v1891_v36 = vadd.f32 %v1890_v46, %v1889_v18 }
0x1682   :  { %v1859_v13 = vpop.permute.xlu0 %1858  ;;  %v1906_v0 = vrot.slane %v1905_v48, 2 }
0x1683   :  { %v1892_v49 = vrot.slane %v1891_v36, 2  ;;  %v1885_v53 = vmul.f32 %v3437_v40, %v1859_v13  ;;  %v1852_v54 = vpop.permute.xlu1 %1851 }
0x1684   :  { %v1884_v31 = vmul.f32 %v3535_v55, %v1852_v54  ;;  %v1907_v61 = vadd.f32 %v1906_v0, %v1905_v48 }
0x1685   :  { %v1893_v43 = vadd.f32 %v1892_v49, %v1891_v36  ;;  %v1917_v56 = vsel %vm164_vm2, %v1885_v53, 0.0  ;;  %v1953_v49 = vld [vmem:[#allocation2 + $0x28] sm:$0xff] }
0x1686   :  { %v1918_v57 = vrot.slane %v1917_v56, 4  ;;  %v1910_v10 = vsel %vm164_vm2, %v1884_v31, 0.0  ;;  %v1908_v11 = vrot.slane %v1907_v61, 1 }
0x1687   :  { %v1911_v34 = vrot.slane %v1910_v10, 4  ;;  %v1894_v1 = vrot.slane %v1893_v43, 1 }
0x1688   :  { %v1919_v3 = vadd.f32 %v1918_v57, %v1917_v56  ;;  %v1909_v23 = vadd.f32 %v1908_v11, %v1907_v61 }
0x1689   :  { %v1912_v7 = vadd.f32 %v1911_v34, %v1910_v10  ;;  %v1895_v33 = vadd.f32 %v1894_v1, %v1893_v43 }
0x168a   :  { %v1920_v12 = vrot.slane %v1919_v3, 2  ;;  %v1880_v40 = vpop.permute.xlu0 %1879 }
0x168b   :  { %v1913_v17 = vrot.slane %v1912_v7, 2  ;;  %v1888_v16 = vmul.f32 %v3443_v14, %v1880_v40  ;;  %v1873_v8 = vpop.permute.xlu1 %1872  ;;  %v1928_v14 = vadd.f32 %v1927_v19, %v1926_v62  ;;  %v1962_v25 = vsel %vm358_vm5, %v1902_v47, %v1895_v33 }
0x168c   :  { %v1921_v22 = vadd.f32 %v1920_v12, %v1919_v3  ;;  %v1887_v4 = vmul.f32 %v3636_v20, %v1873_v8  ;;  %v1963_v5 = vsel %vm360_vm6, %v1909_v23, %v1962_v25 }
0x168d   :  { %v1914_v6 = vadd.f32 %v1913_v17, %v1912_v7  ;;  %v1938_v60 = vsel %vm164_vm2, %v1888_v16, 0.0  ;;  %v1929_v41 = vrot.slane %v1928_v14, 1 }
0x168e   :  { %v1939_v21 = vrot.slane %v1938_v60, 4  ;;  %v1931_v42 = vsel %vm164_vm2, %v1887_v4, 0.0  ;;  %v1922_v24 = vrot.slane %v1921_v22, 1 }
0x168f   :  { %v1915_v38 = vrot.slane %v1914_v6, 1  ;;  %v1932_v45 = vrot.slane %v1931_v42, 4  ;;  %v1930_v48 = vadd.f32 %v1929_v41, %v1928_v14 }
0x1690   :  { %v1940_v26 = vadd.f32 %v1939_v21, %v1938_v60  ;;  %v1923_v52 = vadd.f32 %v1922_v24, %v1921_v22 }
0x1691   :  { %v1916_v27 = vadd.f32 %v1915_v38, %v1914_v6  ;;  %v1933_v28 = vadd.f32 %v1932_v45, %v1931_v42 }
0x1692   :  { %v1941_v29 = vrot.slane %v1940_v26, 2 }
0x1693   :  { %v1934_v32 = vrot.slane %v1933_v28, 2  ;;  %v1964_v35 = vsel %vm362_vm7, %v1916_v27, %v1963_v5  ;;  %v3677_v5 = vld [vmem:[#allocation10 + $0x10] sm:$0xff] }
0x1694   :  { %v1942_v44 = vadd.f32 %v1941_v29, %v1940_v26  ;;  %v1965_v46 = vsel %vm364_vm8, %v1923_v52, %v1964_v35 }
0x1695   :  { %v1935_v15 = vadd.f32 %v1934_v32, %v1933_v28  ;;  %v1966_v51 = vsel %vm366_vm9, %v1930_v48, %v1965_v46 }
0x1696   :  { %v1943_v39 = vrot.slane %v1942_v44, 1 }
0x1697   :  { %v1936_v18 = vrot.slane %v1935_v15, 1 }
0x1698   :  { %v1944_v63 = vadd.f32 %v1943_v39, %v1942_v44  ;;  %v3681_v44 = vld [vmem:[#allocation10 + $0x28] sm:$0xff] }
0x1699   :  { %v1937_v36 = vadd.f32 %v1936_v18, %v1935_v15 }
0x169b   :  { %v1967_v13 = vsel %vm368_vm10, %v1937_v36, %v1966_v51 }
0x169c   :  { %v1968_v0 = vsel %vm370_vm11, %v1944_v63, %v1967_v13  ;;  %v3686_v63 = vld [vmem:[#allocation10] sm:$0xff]  ;;  %v3689_v13 = vld [vmem:[#allocation10 + $0x8] sm:$0xff] }
0x169d   :  { %2600 = vmatmul.msk.f32.vlgmr.msra.gmra.mxu1 %vm164_vm2, %v1968_v0 }
0x16f6   :  { %v2011_v59 = vpop.f32.mrf.mxu3 }
0x171a   :  { %v1988_v53 = vpop.f32.mrf.mxu1 }
0x171b   :  { %v1991_v54 = vadd.f32 %v1988_v53, %v1953_v49 }
0x171d   :  { %v2014_v31 = vadd.f32 %v2011_v59, %v1991_v54  ;;  %v3694_v59 = vld [vmem:[#allocation10 + $0x18] sm:$0xff] }
0x171f   :  { %2685 = vtanh.f32 %v2014_v31  ;;  %v2602_v56 = vmul.f32 -1.442695, %v2014_v31 }
0x1721   :  { %2687 = vpow2.f32 %v2602_v56  ;;  %v3697_v56 = vld [vmem:[#allocation10 + $0x20] sm:$0xff] }
0x1725   :  { %v2686_v43 = vpop.eup %2685 }
0x1726   :  { %2037 = vrot.lane.b32.xlu1 %v2686_v43, %s2984_s7 }
0x1727   :  { %v2688_v58 = vpop.eup %2687 }
0x1728   :  { %v2018_v57 = vadd.f32 1.0, %v2688_v58 }
0x172a   :  { %2689 = vrcp.f32 %v2018_v57  ;;  %v2030_v3 = vand.u32 2147483648, %v2018_v57  ;;  %vm2024_vm14 = vweird.f32 %v2018_v57  ;;  %v2028_v7 = vand.u32 2147483647, %v2018_v57 }
0x172c   :  { %v2031_v12 = vor.u32 1.1754944e-38, %v2030_v3  ;;  %vm2029_vm1 = vcmp.eq.f32.partialorder %v2028_v7, 8.507059e+37  ;;  %v3705_v3 = vld [vmem:[#allocation10 + $0x38] sm:$0xff] }
0x1730   :  { %v2690_v10 = vpop.eup %2689 }
0x1731   :  { %v2020_v61 = vmul.f32 %v2690_v10, %v2018_v57  ;;  %vm2025_vm13 = vweird.f32 %v2690_v10 }
0x1732   :  { %vm2026_vm15 = vmor %vm2024_vm14, %vm2025_vm13 }
0x1733   :  { %v2021_v34 = vsub.f32 1.0, %v2020_v61 }
0x1735   :  { %v2022_v62 = vmul.f32 %v2690_v10, %v2021_v34  ;;  %v3702_v34 = vld [vmem:[#allocation10 + $0x30] sm:$0xff] }
0x1737   :  { %v2023_v1 = vadd.f32 %v2690_v10, %v2022_v62 }
0x1739   :  { %v2027_v9 = vsel %vm2026_vm15, %v2690_v10, %v2023_v1 }
0x173a   :  { %v2032_v11 = vsel %vm2029_vm1, %v2031_v12, %v2027_v9 }
0x173b   :  { %v2035_v16 = vmul.f32 %v2032_v11, %v3556_v37 }
0x1798   :  { %v2038_v40 = vpop.permute.xlu1 %2037 }
0x1799   :  { %v2040_v17 = vmul.f32 %v2038_v40, %v2032_v11 }
0x179b   :  { %2042 = vrot.lane.b32.xlu0 %v2040_v17, %s2985_s19 }
0x180d   :  { %v2043_v8 = vpop.permute.xlu0 %2042 }
0x180e   :  { %v3652_v19 = vadd.f32 %v2043_v8, %v2035_v16 }
0x1810   :  { %2691 = vtanh.f32 %v3652_v19 }
0x1816   :  { %v2692_v33 = vpop.eup %2691 }
0x1817   :  { %2048 = vrot.lane.b32.xlu2 %v2692_v33, %s2984_s7 }
0x1871   :  { %v2049_v22 = vpop.permute.xlu2 %2048 }
0x1872   :  { %v3656_v4 = vmul.f32 %v2049_v22, %v2032_v11 }
0x1874   :  { %v2060_v6 = vperm.slane %v3656_v4, 0  ;;  %v2054_v60 = vrot.slane %v3656_v4, 2  ;;  %v2053_v47 = vrot.slane %v3656_v4, 1  ;;  %v2055_v42 = vrot.slane %v3656_v4, 3 }
0x1875   :  { %v2057_v23 = vrot.slane %v3656_v4, 5  ;;  %v2056_v24 = vrot.slane %v3656_v4, 4  ;;  %v2058_v25 = vrot.slane %v3656_v4, 6  ;;  %v2059_v26 = vrot.slane %v3656_v4, 7 }
0x1876   :  { %2068 = vrot.lane.b32.xlu1 %v2060_v6, %s2985_s19  ;;  %v2062_v37 = vperm.slane %v2054_v60, 0  ;;  %v2061_v21 = vperm.slane %v2053_v47, 0  ;;  %v2063_v38 = vperm.slane %v2055_v42, 0  ;;  %v2124_v28 = vmul.f32 %v3656_v4, %v3126_v50 }
0x1877   :  { %v2065_v45 = vperm.slane %v2057_v23, 0  ;;  %v2064_v14 = vperm.slane %v2056_v24, 0  ;;  %v2066_v27 = vperm.slane %v2058_v25, 0  ;;  %v2067_v29 = vperm.slane %v2059_v26, 0 }
0x1878   :  { %2072 = vrot.lane.b32.xlu2 %v2062_v37, %s2985_s19  ;;  %2070 = vrot.lane.b32.xlu0 %v2061_v21, %s2985_s19 }
0x187e   :  { %2074 = vrot.lane.b32.xlu1 %v2063_v38, %s2985_s19 }
0x1880   :  { %2078 = vrot.lane.b32.xlu2 %v2065_v45, %s2985_s19  ;;  %2076 = vrot.lane.b32.xlu0 %v2064_v14, %s2985_s19 }
0x1886   :  { %2080 = vrot.lane.b32.xlu1 %v2066_v27, %s2985_s19 }
0x1888   :  { %2126 = vrot.lane.b32.xlu2 %v2124_v28, %s2985_s19  ;;  %2082 = vrot.lane.b32.xlu0 %v2067_v29, %s2985_s19 }
0x18d2   :  { %v2073_v52 = vpop.permute.xlu2 %2072 }
0x18d3   :  { %v2094_v32 = vmul.f32 %v3677_v5, %v2073_v52  ;;  %v3724_v52 = vld [vmem:[#allocation8] sm:$0xff] }
0x18d5   :  { %v2106_v41 = vsel %vm189_vm0, %v2094_v32, 0.0 }
0x18d6   :  { %2107 = vadd.xlane.f32.xlu2 %v2106_v41 }
0x18da   :  { %v2079_v35 = vpop.permute.xlu2 %2078 }
0x18db   :  { %v2097_v15 = vmul.f32 %v3681_v44, %v2079_v35 }
0x18dd   :  { %v2115_v39 = vsel %vm189_vm0, %v2097_v15, 0.0 }
0x18de   :  { %2116 = vadd.xlane.f32.xlu2 %v2115_v39 }
0x18e2   :  { %v2127_v18 = vpop.permute.xlu2 %2126 }
0x18e3   :  { %v2129_v46 = vsel %vm189_vm0, %v2127_v18, 0.0 }
0x18e6   :  { %2130 = vadd.xlane.f32.xlu2 %v2129_v46 }
0x18e8   :  { %v2069_v48 = vpop.permute.xlu1 %2068 }
0x18e9   :  { %v2092_v36 = vmul.f32 %v3686_v63, %v2069_v48 }
0x18ea   :  { %v2071_v51 = vpop.permute.xlu0 %2070 }
0x18eb   :  { %v2093_v0 = vmul.f32 %v3689_v13, %v2071_v51  ;;  %v2100_v49 = vsel %vm189_vm0, %v2092_v36, 0.0 }
0x18ec   :  { %2101 = vadd.xlane.f32.xlu1 %v2100_v49 }
0x18ed   :  { %v2103_v53 = vsel %vm189_vm0, %v2093_v0, 0.0 }
0x18ee   :  { %2104 = vadd.xlane.f32.xlu0 %v2103_v53 }
0x18f0   :  { %v2075_v54 = vpop.permute.xlu1 %2074 }
0x18f1   :  { %v2095_v31 = vmul.f32 %v3694_v59, %v2075_v54 }
0x18f2   :  { %v2077_v43 = vpop.permute.xlu0 %2076 }
0x18f3   :  { %v2096_v58 = vmul.f32 %v3697_v56, %v2077_v43  ;;  %v2109_v57 = vsel %vm189_vm0, %v2095_v31, 0.0 }
0x18f4   :  { %2110 = vadd.xlane.f32.xlu1 %v2109_v57 }
0x18f5   :  { %v2112_v10 = vsel %vm189_vm0, %v2096_v58, 0.0 }
0x18f6   :  { %2113 = vadd.xlane.f32.xlu0 %v2112_v10 }
0x18f8   :  { %v2081_v61 = vpop.permute.xlu1 %2080 }
0x18f9   :  { %v2098_v62 = vmul.f32 %v3702_v34, %v2081_v61 }
0x18fa   :  { %v2083_v1 = vpop.permute.xlu0 %2082 }
0x18fb   :  { %v2099_v7 = vmul.f32 %v3705_v3, %v2083_v1  ;;  %v2118_v9 = vsel %vm189_vm0, %v2098_v62, 0.0 }
0x18fc   :  { %2119 = vadd.xlane.f32.xlu1 %v2118_v9 }
0x18fd   :  { %v2121_v12 = vsel %vm189_vm0, %v2099_v7, 0.0 }
0x18fe   :  { %2122 = vadd.xlane.f32.xlu0 %v2121_v12 }
0x1949   :  { %v2108_v40 = vpop.xlane.xlu2 %2107 }
0x194a   :  { %v2143_v60 = vperm.slane %v2108_v40, %v3166_v30 }
0x1951   :  { %v2117_v33 = vpop.xlane.xlu2 %2116 }
0x1952   :  { %v2146_v38 = vperm.slane %v2117_v33, %v3166_v30 }
0x1959   :  { %v2131_v14 = vpop.xlane.xlu2 %2130 }
0x195a   :  { %v2132_v32 = vadd.f32 %v3724_v52, %v2131_v14  ;;  %v2742_v14 = vld [vmem:[#allocation7 + $0x8] sm:$0xff] }
0x195f   :  { %v2102_v11 = vpop.xlane.xlu1 %2101 }
0x1960   :  { %v2141_v8 = vperm.slane %v2102_v11, %v3166_v30 }
0x1961   :  { %v2105_v17 = vpop.xlane.xlu0 %2104 }
0x1962   :  { %v2142_v16 = vperm.slane %v2105_v17, %v3166_v30 }
0x1964   :  { %v2149_v22 = vsel %vm358_vm5, %v2142_v16, %v2141_v8 }
0x1965   :  { %v2150_v21 = vsel %vm360_vm6, %v2143_v60, %v2149_v22 }
0x1967   :  { %v2111_v6 = vpop.xlane.xlu1 %2110 }
0x1968   :  { %v2144_v47 = vperm.slane %v2111_v6, %v3166_v30 }
0x1969   :  { %v2114_v37 = vpop.xlane.xlu0 %2113 }
0x196a   :  { %v2145_v42 = vperm.slane %v2114_v37, %v3166_v30  ;;  %v2151_v23 = vsel %vm362_vm7, %v2144_v47, %v2150_v21 }
0x196c   :  { %v2152_v24 = vsel %vm364_vm8, %v2145_v42, %v2151_v23 }
0x196d   :  { %v2153_v26 = vsel %vm366_vm9, %v2146_v38, %v2152_v24  ;;  %v2741_v38 = vld [vmem:[#allocation7 + $0x10] sm:$0xff] }
0x196f   :  { %v2120_v45 = vpop.xlane.xlu1 %2119 }
0x1970   :  { %v2147_v25 = vperm.slane %v2120_v45, %v3166_v30 }
0x1971   :  { %v2123_v27 = vpop.xlane.xlu0 %2122 }
0x1972   :  { %v2154_v28 = vsel %vm368_vm10, %v2147_v25, %v2153_v26  ;;  %v2148_v29 = vperm.slane %v2123_v27, %v3166_v30 }
0x1974   :  { %v2155_v41 = vsel %vm370_vm11, %v2148_v29, %v2154_v28 }
0x1975   :  { %v2157_v35 = vadd.f32 %v2155_v41, %v2132_v32 }
0x1977   :  { %v2158_v15 = vsel %vm374_vm12, %v2157_v35, -inf }
0x1978   :  { %2159 = vmax.xlane.f32.xlu1 %v2158_v15 }
0x19eb   :  { %v2160_v39 = vpop.xlane.xlu1 %2159 }
0x19ec   :  { %v2161_v18 = vsub.f32 %v2157_v35, %v2160_v39 }
0x19ee   :  { %v2162_v46 = vmul.f32 1.442695, %v2161_v18 }
0x19f0   :  { %2693 = vpow2.f32 %v2162_v46 }
0x19f6   :  { %v2694_v48 = vpop.eup %2693 }
0x19f7   :  { %v2164_v36 = vsel %vm374_vm12, %v2694_v48, 0.0 }
0x19f8   :  { %2165 = vadd.xlane.f32.xlu0 %v2164_v36 }
0x1a6b   :  { %v2166_v51 = vpop.xlane.xlu0 %2165 }
0x1a6c   :  { %2695 = vrcp.f32 %v2166_v51  ;;  %v2178_v54 = vand.u32 2147483648, %v2166_v51  ;;  %v2176_v43 = vand.u32 2147483647, %v2166_v51  ;;  %vm2172_vm4 = vweird.f32 %v2166_v51 }
0x1a6e   :  { %v2179_v57 = vor.u32 1.1754944e-38, %v2178_v54  ;;  %vm2177_vm14 = vcmp.eq.f32.partialorder %v2176_v43, 8.507059e+37 }
0x1a72   :  { %v2696_v0 = vpop.eup %2695 }
0x1a73   :  { %v2168_v49 = vmul.f32 %v2696_v0, %v2166_v51  ;;  %vm2173_vm3 = vweird.f32 %v2696_v0 }
0x1a74   :  { %vm2174_vm13 = vmor %vm2172_vm4, %vm2173_vm3 }
0x1a75   :  { %v2169_v53 = vsub.f32 1.0, %v2168_v49  ;;  %v2744_v49 = vld [vmem:[#allocation7 + $0x28] sm:$0xff] }
0x1a77   :  { %v2170_v31 = vmul.f32 %v2696_v0, %v2169_v53 }
0x1a79   :  { %v2171_v58 = vadd.f32 %v2696_v0, %v2170_v31 }
0x1a7b   :  { %v2175_v10 = vsel %vm2174_vm13, %v2696_v0, %v2171_v58  ;;  %v2743_v0 = vld [vmem:[#allocation7 + $0x20] sm:$0xff] }
0x1a7c   :  { %v2180_v61 = vsel %vm2177_vm14, %v2179_v57, %v2175_v10 }
0x1a7d   :  { %v2181_v62 = vmul.f32 %v2694_v48, %v2180_v61 }
0x1a7f   :  { %2308 = vst.msk [vmem:[#allocation15 + $0x28] sm:$0xff] %vm374_vm12, %v2181_v62  ;;  %v2196_v1 = vperm.slane %v2181_v62, 2  ;;  %v2189_v7 = vperm.slane %v2181_v62, 1  ;;  %v2182_v9 = vperm.slane %v2181_v62, 0  ;;  %v2210_v12 = vperm.slane %v2181_v62, 4 }
0x1a80   :  { %v2217_v40 = vperm.slane %v2181_v62, 5  ;;  %v2203_v11 = vperm.slane %v2181_v62, 3  ;;  %v2231_v17 = vperm.slane %v2181_v62, 7  ;;  %v2224_v16 = vperm.slane %v2181_v62, 6 }
0x1a81   :  { %2201 = vperm.xlu0 %2621, %v2196_v1   ;;  %2194 = vperm.xlu1 %2622, %v2189_v7  }
0x1a82   :  { %2187 = vperm.xlu2 %2623, %v2182_v9  }
0x1a89   :  { %2215 = vperm.xlu0 %2621, %v2210_v12   ;;  %2222 = vperm.xlu1 %2622, %v2217_v40  }
0x1a8a   :  { %2208 = vperm.xlu2 %2623, %v2203_v11  }
0x1a91   :  { %2236 = vperm.xlu0 %2621, %v2231_v17   ;;  %2302 = vrot.lane.b32.xlu1 %v3656_v4, %s2985_s19 }
0x1a92   :  { %2229 = vperm.xlu2 %2623, %v2224_v16  }
0x1adc   :  { %v2188_v8 = vpop.permute.xlu2 %2187 }
0x1add   :  { %v2238_v33 = vmul.f32 %v3624_v2, %v2188_v8 }
0x1adf   :  { %v2246_v6 = vsel %vm164_vm2, %v2238_v33, 0.0 }
0x1ae0   :  { %v2247_v47 = vrot.slane %v2246_v6, 4 }
0x1ae2   :  { %v2248_v42 = vadd.f32 %v2247_v47, %v2246_v6 }
0x1ae4   :  { %v2209_v22 = vpop.permute.xlu2 %2208  ;;  %v2249_v28 = vrot.slane %v2248_v42, 2 }
0x1ae5   :  { %v2241_v60 = vmul.f32 %v3535_v55, %v2209_v22 }
0x1ae6   :  { %v2250_v39 = vadd.f32 %v2249_v28, %v2248_v42 }
0x1ae7   :  { %v2267_v37 = vsel %vm164_vm2, %v2241_v60, 0.0 }
0x1ae8   :  { %v2268_v25 = vrot.slane %v2267_v37, 4  ;;  %v2251_v10 = vrot.slane %v2250_v39, 1 }
0x1aea   :  { %v2269_v32 = vadd.f32 %v2268_v25, %v2267_v37  ;;  %v2252_v16 = vadd.f32 %v2251_v10, %v2250_v39  ;;  %v2745_v37 = vld [vmem:[#allocation7 + $0x38] sm:$0xff] }
0x1aec   :  { %v2230_v21 = vpop.permute.xlu2 %2229  ;;  %v2270_v54 = vrot.slane %v2269_v32, 2 }
0x1aed   :  { %v2244_v26 = vmul.f32 %v3636_v20, %v2230_v21 }
0x1aee   :  { %v2271_v12 = vadd.f32 %v2270_v54, %v2269_v32 }
0x1aef   :  { %v2288_v41 = vsel %vm164_vm2, %v2244_v26, 0.0 }
0x1af0   :  { %v2289_v51 = vrot.slane %v2288_v41, 4  ;;  %v2272_v42 = vrot.slane %v2271_v12, 1 }
0x1af2   :  { %v2290_v7 = vadd.f32 %v2289_v51, %v2288_v41 }
0x1af3   :  { %v2202_v23 = vpop.permute.xlu0 %2201  ;;  %v2195_v24 = vpop.permute.xlu1 %2194 }
0x1af4   :  { %v2240_v45 = vmul.f32 %v2741_v38, %v2202_v23  ;;  %v2239_v4 = vmul.f32 %v2742_v14, %v2195_v24  ;;  %v2291_v60 = vrot.slane %v2290_v7, 2 }
0x1af6   :  { %v2260_v2 = vsel %vm164_vm2, %v2240_v45, 0.0  ;;  %v2253_v27 = vsel %vm164_vm2, %v2239_v4, 0.0  ;;  %v2292_v26 = vadd.f32 %v2291_v60, %v2290_v7 }
0x1af7   :  { %v2261_v55 = vrot.slane %v2260_v2, 4  ;;  %v2254_v29 = vrot.slane %v2253_v27, 4 }
0x1af9   :  { %v2262_v35 = vadd.f32 %v2261_v55, %v2260_v2  ;;  %v2255_v15 = vadd.f32 %v2254_v29, %v2253_v27  ;;  %v2273_v27 = vadd.f32 %v2272_v42, %v2271_v12 }
0x1afb   :  { %v2263_v18 = vrot.slane %v2262_v35, 2  ;;  %v2256_v46 = vrot.slane %v2255_v15, 2  ;;  %v2216_v48 = vpop.permute.xlu0 %2215  ;;  %v2223_v36 = vpop.permute.xlu1 %2222 }
0x1afc   :  { %v2242_v20 = vmul.f32 %v2743_v0, %v2216_v48  ;;  %v2243_v53 = vmul.f32 %v2744_v49, %v2223_v36 }
0x1afd   :  { %v2264_v31 = vadd.f32 %v2263_v18, %v2262_v35  ;;  %v2257_v43 = vadd.f32 %v2256_v46, %v2255_v15  ;;  %v2293_v35 = vrot.slane %v2292_v26, 1 }
0x1afe   :  { %v2274_v58 = vsel %vm164_vm2, %v2242_v20, 0.0  ;;  %v2281_v57 = vsel %vm164_vm2, %v2243_v53, 0.0  ;;  %v2310_v20 = vld [vmem:[#allocation2 + $0x30] sm:$0xff] }
0x1aff   :  { %v2258_v61 = vrot.slane %v2257_v43, 1  ;;  %v2275_v62 = vrot.slane %v2274_v58, 4  ;;  %v2282_v1 = vrot.slane %v2281_v57, 4  ;;  %v2265_v9 = vrot.slane %v2264_v31, 1 }
0x1b00   :  { %v2294_v48 = vadd.f32 %v2293_v35, %v2292_v26 }
0x1b01   :  { %v2259_v40 = vadd.f32 %v2258_v61, %v2257_v43  ;;  %v2276_v11 = vadd.f32 %v2275_v62, %v2274_v58  ;;  %v2283_v17 = vadd.f32 %v2282_v1, %v2281_v57  ;;  %v2266_v47 = vadd.f32 %v2265_v9, %v2264_v31 }
0x1b03   :  { %v2277_v8 = vrot.slane %v2276_v11, 2  ;;  %v2284_v33 = vrot.slane %v2283_v17, 2  ;;  %v2237_v22 = vpop.permute.xlu0 %2236  ;;  %v2303_v6 = vpop.permute.xlu1 %2302  ;;  %v2319_v23 = vsel %vm358_vm5, %v2259_v40, %v2252_v16 }
0x1b04   :  { %v2245_v21 = vmul.f32 %v2745_v37, %v2237_v22  ;;  %2306 = vst.msk [vmem:[#allocation14 + $0x28] sm:$0xff] %vm189_vm0, %v2303_v6  ;;  %2604 = vmatmul.msk.f32.vlgmr.msrb.gmra.mxu2 %vm189_vm0, %v2303_v6  ;;  %v2320_v2 = vsel %vm360_vm6, %v2266_v47, %v2319_v23 }
0x1b05   :  { %v2278_v24 = vadd.f32 %v2277_v8, %v2276_v11  ;;  %v2285_v38 = vadd.f32 %v2284_v33, %v2283_v17  ;;  %v2321_v29 = vsel %vm362_vm7, %v2273_v27, %v2320_v2 }
0x1b06   :  { %v2295_v45 = vsel %vm164_vm2, %v2245_v21, 0.0 }
0x1b07   :  { %v2279_v14 = vrot.slane %v2278_v24, 1  ;;  %v2286_v4 = vrot.slane %v2285_v38, 1  ;;  %v2296_v25 = vrot.slane %v2295_v45, 4 }
0x1b09   :  { %v2280_v28 = vadd.f32 %v2279_v14, %v2278_v24  ;;  %v2297_v55 = vadd.f32 %v2296_v25, %v2295_v45  ;;  %v2287_v32 = vadd.f32 %v2286_v4, %v2285_v38 }
0x1b0b   :  { %v2298_v41 = vrot.slane %v2297_v55, 2  ;;  %v2322_v15 = vsel %vm364_vm8, %v2280_v28, %v2321_v29 }
0x1b0c   :  { %v2323_v46 = vsel %vm366_vm9, %v2287_v32, %v2322_v15 }
0x1b0d   :  { %v2299_v39 = vadd.f32 %v2298_v41, %v2297_v55  ;;  %v2324_v51 = vsel %vm368_vm10, %v2294_v48, %v2323_v46 }
0x1b0f   :  { %v2300_v18 = vrot.slane %v2299_v39, 1 }
0x1b11   :  { %v2301_v36 = vadd.f32 %v2300_v18, %v2299_v39 }
0x1b13   :  { %v2325_v0 = vsel %vm370_vm11, %v2301_v36, %v2324_v51 }
0x1b14   :  { %2603 = vmatmul.msk.f32.vlgmr.msrb.gmra.mxu0 %vm164_vm2, %v2325_v0 }
0x1b87   :  { %v2368_v54 = vpop.f32.mrf.mxu2 }
0x1b91   :  { %v2345_v49 = vpop.f32.mrf.mxu0 }
0x1b92   :  { %v2348_v53 = vadd.f32 %v2345_v49, %v2310_v20 }
0x1b94   :  { %v2371_v31 = vadd.f32 %v2368_v54, %v2348_v53 }
0x1b96   :  { %2697 = vtanh.f32 %v2371_v31  ;;  %v2605_v58 = vmul.f32 -1.442695, %v2371_v31 }
0x1b98   :  { %2699 = vpow2.f32 %v2605_v58 }
0x1b9c   :  { %v2698_v43 = vpop.eup %2697 }
0x1b9d   :  { %2394 = vrot.lane.b32.xlu2 %v2698_v43, %s2984_s7 }
0x1b9e   :  { %v2700_v57 = vpop.eup %2699 }
0x1b9f   :  { %v2375_v10 = vadd.f32 1.0, %v2700_v57 }
0x1ba1   :  { %2701 = vrcp.f32 %v2375_v10  ;;  %v2387_v12 = vand.u32 2147483648, %v2375_v10  ;;  %vm2381_vm15 = vweird.f32 %v2375_v10  ;;  %v2385_v40 = vand.u32 2147483647, %v2375_v10 }
0x1ba3   :  { %v2388_v17 = vor.u32 1.1754944e-38, %v2387_v12  ;;  %vm2386_vm3 = vcmp.eq.f32.partialorder %v2385_v40, 8.507059e+37 }
0x1ba7   :  { %v2702_v61 = vpop.eup %2701 }
0x1ba8   :  { %v2377_v62 = vmul.f32 %v2702_v61, %v2375_v10  ;;  %vm2382_vm2 = vweird.f32 %v2702_v61 }
0x1ba9   :  { %vm2383_vm1 = vmor %vm2381_vm15, %vm2382_vm2 }
0x1baa   :  { %v2378_v1 = vsub.f32 1.0, %v2377_v62 }
0x1bac   :  { %v2379_v7 = vmul.f32 %v2702_v61, %v2378_v1 }
0x1bae   :  { %v2380_v9 = vadd.f32 %v2702_v61, %v2379_v7 }
0x1bb0   :  { %v2384_v11 = vsel %vm2383_vm1, %v2702_v61, %v2380_v9 }
0x1bb1   :  { %v2389_v8 = vsel %vm2386_vm3, %v2388_v17, %v2384_v11 }
0x1bb2   :  { %v2392_v22 = vmul.f32 %v2389_v8, %v3652_v19 }
0x1bf7   :  { %v2395_v16 = vpop.permute.xlu2 %2394 }
0x1bf8   :  { %v2397_v33 = vmul.f32 %v2395_v16, %v2389_v8 }
0x1bfa   :  { %2399 = vrot.lane.b32.xlu0 %v2397_v33, %s2985_s19 }
0x1c6c   :  { %v2400_v6 = vpop.permute.xlu0 %2399 }
0x1c6d   :  { %v2402_v60 = vadd.f32 %v2400_v6, %v2392_v22 }
0x1c6f   :  { %2703 = vtanh.f32 %v2402_v60 }
0x1c75   :  { %v2704_v47 = vpop.eup %2703 }
0x1c76   :  { %2405 = vrot.lane.b32.xlu1 %v2704_v47, %s2984_s7 }
0x1ce8   :  { %v2406_v37 = vpop.permute.xlu1 %2405 }
0x1ce9   :  { %v2408_v21 = vmul.f32 %v2406_v37, %v2389_v8 }
0x1ceb   :  { %v2417_v42 = vperm.slane %v2408_v21, 0  ;;  %v2411_v23 = vrot.slane %v2408_v21, 2  ;;  %v2410_v24 = vrot.slane %v2408_v21, 1  ;;  %v2412_v19 = vrot.slane %v2408_v21, 3 }
0x1cec   :  { %v2414_v14 = vrot.slane %v2408_v21, 5  ;;  %v2413_v4 = vrot.slane %v2408_v21, 4  ;;  %v2415_v27 = vrot.slane %v2408_v21, 6  ;;  %v2416_v28 = vrot.slane %v2408_v21, 7 }
0x1ced   :  { %2425 = vrot.lane.b32.xlu2 %v2417_v42, %s2985_s19  ;;  %v2419_v38 = vperm.slane %v2411_v23, 0  ;;  %v2418_v45 = vperm.slane %v2410_v24, 0  ;;  %v2420_v25 = vperm.slane %v2412_v19, 0  ;;  %v2481_v29 = vmul.f32 %v2408_v21, %v3126_v50 }
0x1cee   :  { %v2422_v26 = vperm.slane %v2414_v14, 0  ;;  %v2421_v2 = vperm.slane %v2413_v4, 0  ;;  %v2423_v55 = vperm.slane %v2415_v27, 0  ;;  %v2424_v32 = vperm.slane %v2416_v28, 0 }
0x1cef   :  { %2429 = vrot.lane.b32.xlu1 %v2419_v38, %s2985_s19  ;;  %2427 = vrot.lane.b32.xlu0 %v2418_v45, %s2985_s19 }
0x1cf5   :  { %2431 = vrot.lane.b32.xlu2 %v2420_v25, %s2985_s19 }
0x1cf7   :  { %2435 = vrot.lane.b32.xlu1 %v2422_v26, %s2985_s19  ;;  %2433 = vrot.lane.b32.xlu0 %v2421_v2, %s2985_s19 }
0x1cfd   :  { %2437 = vrot.lane.b32.xlu2 %v2423_v55, %s2985_s19 }
0x1cff   :  { %2483 = vrot.lane.b32.xlu1 %v2481_v29, %s2985_s19  ;;  %2439 = vrot.lane.b32.xlu0 %v2424_v32, %s2985_s19 }
0x1d47   :  { %v2426_v41 = vpop.permute.xlu2 %2425 }
0x1d48   :  { %v2449_v35 = vmul.f32 %v3686_v63, %v2426_v41 }
0x1d4a   :  { %v2457_v15 = vsel %vm189_vm0, %v2449_v35, 0.0 }
0x1d4b   :  { %2458 = vadd.xlane.f32.xlu2 %v2457_v15 }
0x1d4f   :  { %v2432_v39 = vpop.permute.xlu2 %2431 }
0x1d50   :  { %v2452_v18 = vmul.f32 %v3694_v59, %v2432_v39 }
0x1d52   :  { %v2466_v46 = vsel %vm189_vm0, %v2452_v18, 0.0 }
0x1d53   :  { %2467 = vadd.xlane.f32.xlu2 %v2466_v46 }
0x1d57   :  { %v2438_v48 = vpop.permute.xlu2 %2437 }
0x1d58   :  { %v2455_v50 = vmul.f32 %v3702_v34, %v2438_v48 }
0x1d5a   :  { %v2475_v36 = vsel %vm189_vm0, %v2455_v50, 0.0 }
0x1d5b   :  { %2476 = vadd.xlane.f32.xlu2 %v2475_v36 }
0x1d61   :  { %v2430_v51 = vpop.permute.xlu1 %2429  ;;  %v2428_v0 = vpop.permute.xlu0 %2427 }
0x1d62   :  { %v2451_v20 = vmul.f32 %v3677_v5, %v2430_v51  ;;  %v2450_v63 = vmul.f32 %v3689_v13, %v2428_v0 }
0x1d64   :  { %v2463_v49 = vsel %vm189_vm0, %v2451_v20, 0.0  ;;  %v2460_v53 = vsel %vm189_vm0, %v2450_v63, 0.0 }
0x1d65   :  { %2464 = vadd.xlane.f32.xlu1 %v2463_v49  ;;  %2461 = vadd.xlane.f32.xlu0 %v2460_v53 }
0x1d69   :  { %v2436_v59 = vpop.permute.xlu1 %2435  ;;  %v2434_v54 = vpop.permute.xlu0 %2433 }
0x1d6a   :  { %v2454_v31 = vmul.f32 %v3681_v44, %v2436_v59  ;;  %v2453_v34 = vmul.f32 %v3697_v56, %v2434_v54 }
0x1d6c   :  { %v2472_v43 = vsel %vm189_vm0, %v2454_v31, 0.0  ;;  %v2469_v58 = vsel %vm189_vm0, %v2453_v34, 0.0 }
0x1d6d   :  { %2473 = vadd.xlane.f32.xlu1 %v2472_v43  ;;  %2470 = vadd.xlane.f32.xlu0 %v2469_v58 }
0x1d71   :  { %v2484_v5 = vpop.permute.xlu1 %2483  ;;  %v2440_v13 = vpop.permute.xlu0 %2439 }
0x1d72   :  { %v2456_v57 = vmul.f32 %v3705_v3, %v2440_v13  ;;  %v2486_v10 = vsel %vm189_vm0, %v2484_v5, 0.0 }
0x1d74   :  { %v2478_v61 = vsel %vm189_vm0, %v2456_v57, 0.0 }
0x1d75   :  { %2487 = vadd.xlane.f32.xlu1 %v2486_v10  ;;  %2479 = vadd.xlane.f32.xlu0 %v2478_v61 }
0x1d8e   :  { %2539 = vrot.lane.b32.xlu1 %v2408_v21, %s2985_s19 }
0x1dbe   :  { %v2459_v44 = vpop.xlane.xlu2 %2458 }
0x1dbf   :  { %v2498_v7 = vperm.slane %v2459_v44, %v3166_v30 }
0x1dc6   :  { %v2468_v9 = vpop.xlane.xlu2 %2467 }
0x1dc7   :  { %v2501_v16 = vperm.slane %v2468_v9, %v3166_v30 }
0x1dce   :  { %v2477_v60 = vpop.xlane.xlu2 %2476 }
0x1dcf   :  { %v2504_v37 = vperm.slane %v2477_v60, %v3166_v30 }
0x1dd8   :  { %v2465_v56 = vpop.xlane.xlu1 %2464  ;;  %v2462_v62 = vpop.xlane.xlu0 %2461 }
0x1dd9   :  { %v2499_v1 = vperm.slane %v2462_v62, %v3166_v30  ;;  %v2500_v12 = vperm.slane %v2465_v56, %v3166_v30 }
0x1ddb   :  { %v2506_v3 = vsel %vm358_vm5, %v2499_v1, %v2498_v7 }
0x1ddc   :  { %v2507_v40 = vsel %vm360_vm6, %v2500_v12, %v2506_v3 }
0x1ddd   :  { %v2508_v22 = vsel %vm362_vm7, %v2501_v16, %v2507_v40 }
0x1de0   :  { %v2474_v11 = vpop.xlane.xlu1 %2473  ;;  %v2471_v17 = vpop.xlane.xlu0 %2470 }
0x1de1   :  { %v2502_v8 = vperm.slane %v2471_v17, %v3166_v30  ;;  %v2503_v33 = vperm.slane %v2474_v11, %v3166_v30 }
0x1de3   :  { %v2509_v6 = vsel %vm364_vm8, %v2502_v8, %v2508_v22 }
0x1de4   :  { %v2510_v47 = vsel %vm366_vm9, %v2503_v33, %v2509_v6 }
0x1de5   :  { %v2511_v38 = vsel %vm368_vm10, %v2504_v37, %v2510_v47 }
0x1de8   :  { %v2488_v21 = vpop.xlane.xlu1 %2487  ;;  %v2480_v42 = vpop.xlane.xlu0 %2479 }
0x1de9   :  { %v2489_v23 = vadd.f32 %v3724_v52, %v2488_v21  ;;  %v2505_v24 = vperm.slane %v2480_v42, %v3166_v30 }
0x1deb   :  { %v2512_v45 = vsel %vm370_vm11, %v2505_v24, %v2511_v38 }
0x1dec   :  { %v2514_v19 = vadd.f32 %v2512_v45, %v2489_v23 }
0x1dee   :  { %v2515_v14 = vsel %vm374_vm12, %v2514_v19, -inf }
0x1def   :  { %2516 = vmax.xlane.f32.xlu2 %v2515_v14 }
0x1e00   :  { %v2540_v4 = vpop.permute.xlu1 %2539 }
0x1e01   :  { %2543 = vst.msk [vmem:[#allocation14 + $0x30] sm:$0xff] %vm189_vm0, %v2540_v4 }
0x1e02   :  { %2558 = dma.vmem_to_hbm [thread:$0]  %s2551_s25, 896, %s2553_s23, [#allocation4], %s2977_s26, %s2977_s26, %s2978_s4  }
0x1e62   :  { %v2517_v25 = vpop.xlane.xlu2 %2516 }
0x1e63   :  { %v2518_v26 = vsub.f32 %v2514_v19, %v2517_v25 }
0x1e65   :  { %v2519_v2 = vmul.f32 1.442695, %v2518_v26 }
0x1e67   :  { %2705 = vpow2.f32 %v2519_v2 }
0x1e6d   :  { %v2706_v27 = vpop.eup %2705 }
0x1e6e   :  { %v2521_v52 = vsel %vm374_vm12, %v2706_v27, 0.0 }
0x1e6f   :  { %2522 = vadd.xlane.f32.xlu0 %v2521_v52 }
0x1ee2   :  { %v2523_v30 = vpop.xlane.xlu0 %2522 }
0x1ee3   :  { %2707 = vrcp.f32 %v2523_v30  ;;  %v2535_v32 = vand.u32 2147483648, %v2523_v30  ;;  %v2533_v35 = vand.u32 2147483647, %v2523_v30  ;;  %vm2529_vm5 = vweird.f32 %v2523_v30 }
0x1ee5   :  { %v2536_v39 = vor.u32 1.1754944e-38, %v2535_v32  ;;  %vm2534_vm7 = vcmp.eq.f32.partialorder %v2533_v35, 8.507059e+37 }
0x1ee9   :  { %v2708_v28 = vpop.eup %2707 }
0x1eea   :  { %v2525_v55 = vmul.f32 %v2708_v28, %v2523_v30  ;;  %vm2530_vm0 = vweird.f32 %v2708_v28 }
0x1eeb   :  { %vm2531_vm6 = vmor %vm2529_vm5, %vm2530_vm0 }
0x1eec   :  { %v2526_v29 = vsub.f32 1.0, %v2525_v55 }
0x1eee   :  { %v2527_v41 = vmul.f32 %v2708_v28, %v2526_v29 }
0x1ef0   :  { %v2528_v15 = vadd.f32 %v2708_v28, %v2527_v41 }
0x1ef2   :  { %v2532_v18 = vsel %vm2531_vm6, %v2708_v28, %v2528_v15 }
0x1ef3   :  { %v2537_v46 = vsel %vm2534_vm7, %v2536_v39, %v2532_v18 }
0x1ef4   :  { %v2538_v48 = vmul.f32 %v2706_v27, %v2537_v46 }
0x1ef6   :  { %2545 = vst.msk [vmem:[#allocation15 + $0x30] sm:$0xff] %vm374_vm12, %v2538_v48 }
0x1ef7   :  { %2571 = dma.vmem_to_hbm [thread:$0]  %s2564_s27, 896, %s2566_s30, [#allocation16], %s2977_s26, %s2977_s26, %s2978_s4  }
0x1ef8   :  { %2970 = dma.done.wait [#allocation4], 896  }
0x1ef9   :  { %2971 = vsyncadd [#allocation4], 4294966400 }
0x1efa   :  { %2972 = dma.done.wait [#allocation16], 896  }
0x1efb   :  { %2973 = vsyncadd [#allocation16], 4294966400 }
0x1efc   :  { %2580 = vsyncpa [#allocation3], 1 }
0x1efd   :  { %2581 = vsyncpa [#allocation6], 1 }
0x1efe   :  { %2582 = vsyncpa [#allocation9], 1 }
0x1eff   :  { %2583 = vsyncpa [#allocation12], 1 }
0x1f00   :  { %2584 = vsyncpa [#allocation4], 1 }
0x1f01   :  { %2585 = vsyncpa [#allocation16], 1 }

</bundles_post_ra>
